<compile_context>
chip_gen: v7x
topology: tpu7x:2x2x1
jax: 0.10.0
libtpu: 0.0.40
codegen_flags: <defaults>
</compile_context>

<pallas_src>
import math
import jax
import jax.numpy as jnp
from jax import lax
from jax.experimental import pallas as pl
from jax.experimental.pallas import tpu as pltpu


# ----------------------------- in-kernel math helpers ---------------------------------
def _layer_norm(x, gamma, beta, eps):
    mu = jnp.mean(x, axis=-1, keepdims=True)
    xc = x - mu
    var = jnp.mean(xc * xc, axis=-1, keepdims=True)
    return xc * lax.rsqrt(var + eps) * gamma + beta


def _new_gelu(x):
    c = math.sqrt(2.0 / math.pi)
    return 0.5 * x * (1.0 + jnp.tanh(c * (x + 0.044715 * x * x * x)))


def _softmax_last(s):
    m = jnp.max(s, axis=-1, keepdims=True)
    e = jnp.exp(s - m)
    return e * pl.reciprocal(jnp.sum(e, axis=-1, keepdims=True), approx=True)  # EUP slot


# ----------------------------------- kernel -------------------------------------------
def _make_block_kernel(Bb, T, D, H, dh, eps, write_probs, head_batched):
    A = H * dh
    R = Bb * T
    bf16 = jnp.bfloat16
    f32 = jnp.float32

    def kernel(x_ref, g1_ref, be1_ref, wqkv_ref, bqkv_ref, wo_ref, bo_ref,
               g2_ref, be2_ref, w1_ref, b1_ref, w2_ref, b2_ref, *out_refs):
        if write_probs:
            o_ref, p_ref = out_refs
        else:
            (o_ref,) = out_refs

        x = x_ref[...].reshape(R, D)                                    # (R, D) f32

        # ---- LayerNorm 1 (f32, VPU/EUP) ----
        h1 = _layer_norm(x, g1_ref[0], be1_ref[0], eps)

        # ---- fused QKV: one wide MXU matmul; weights already bf16; q pre-scaled ----
        qkv = jnp.dot(h1.astype(bf16), wqkv_ref[...],
                      preferred_element_type=f32) + bqkv_ref[0]         # (R, 3A) f32

        # ---- multi-head self-attention (per batch row of the block) ----
        ctx_rows = []
        for b in range(Bb):                                             # static unroll, Bb small
            qkv_b = qkv[b * T:(b + 1) * T].astype(bf16)                 # (T, 3A) bf16

            if head_batched:
                # one head-major relayout per tensor, then head-batched MXU matmuls
                def to_heads(m):                                        # (T, A) -> (H, T, dh)
                    return pltpu.einshape("thd->htd", m.reshape(T, H, dh))
                qh = to_heads(qkv_b[:, 0 * A:1 * A])                    # already / sqrt(dh)
                kh = to_heads(qkv_b[:, 1 * A:2 * A])
                vh = to_heads(qkv_b[:, 2 * A:3 * A])
                s = jnp.einsum("htd,hsd->hts", qh, kh,
                               preferred_element_type=f32)              # (H, T, T)
                probs = _softmax_last(s)
                if write_probs:
                    p_ref[b] = probs.astype(p_ref.dtype)
                ctx = jnp.einsum("hts,hsd->htd", probs.astype(bf16), vh,
                                 preferred_element_type=f32)            # (H, T, dh)
                ctx_rows.append(
                    pltpu.einshape("htd->thd", ctx).reshape(T, A))      # (T, A)
            else:
                # conservative fallback path: per-head loop (tiny matmuls + lane concat)
                head_outs = []
                for h in range(H):
                    qh = qkv_b[:, h * dh:(h + 1) * dh]
                    kh = qkv_b[:, A + h * dh:A + (h + 1) * dh]
                    vh = qkv_b[:, 2 * A + h * dh:2 * A + (h + 1) * dh]
                    s = lax.dot_general(qh, kh, (((1,), (1,)), ((), ())),
                                        preferred_element_type=f32)     # (T, T)
                    probs = _softmax_last(s)
                    if write_probs:
                        p_ref[b, h] = probs.astype(p_ref.dtype)
                    head_outs.append(jnp.dot(probs.astype(bf16), vh,
                                             preferred_element_type=f32))
                ctx_rows.append(jnp.concatenate(head_outs, axis=-1))    # (T, A)

        concat = ctx_rows[0] if Bb == 1 else jnp.concatenate(ctx_rows, axis=0)   # (R, A)

        attn_out = jnp.dot(concat.astype(bf16), wo_ref[...],
                           preferred_element_type=f32) + bo_ref[0]      # (R, D)
        # TODO(synk): attention / output dropout are identity (eval mode).

        x1 = x + attn_out                                               # residual 1

        # ---- LayerNorm 2 + MLP (GELU tanh approx) ----
        h2 = _layer_norm(x1, g2_ref[0], be2_ref[0], eps)
        z = jnp.dot(h2.astype(bf16), w1_ref[...],
                    preferred_element_type=f32) + b1_ref[0]             # (R, I)
        z = _new_gelu(z)
        mlp = jnp.dot(z.astype(bf16), w2_ref[...],
                      preferred_element_type=f32) + b2_ref[0]           # (R, D)

        o_ref[...] = (x1 + mlp).reshape(Bb, T, D).astype(o_ref.dtype)   # residual 2

    return kernel


# ----------------------------- one-time parameter prep --------------------------------
def prepare_params(params, weight_dtype=jnp.bfloat16):
    """One-time (per model) parameter preparation, outside the per-call path:
       * per-head q/k/v fused into a single (D, 3A) matrix, 1/sqrt(dh) folded into q,
       * all weight matrices pre-cast to bf16 (half the HBM->VMEM DMA & VMEM residency,
         no in-kernel cast); biases / LayerNorm params stay f32."""
    H, D, dh = params["wq"].shape
    A = H * dh
    scale = 1.0 / math.sqrt(dh)
    f32 = jnp.float32

    def cat_heads(w):                                   # (H, D, dh) -> (D, A)
        return jnp.transpose(w, (1, 0, 2)).reshape(D, A)

    wqkv = jnp.concatenate([cat_heads(params["wq"]) * scale,
                            cat_heads(params["wk"]),
                            cat_heads(params["wv"])], axis=1)
    bqkv = jnp.concatenate([params["bq"].reshape(1, A) * scale,
                            params["bk"].reshape(1, A),
                            params["bv"].reshape(1, A)], axis=1)
    return {
        "dims": (int(H), int(dh)),
        "wqkv": wqkv.astype(weight_dtype), "bqkv": bqkv.astype(f32),
        "wo": params["wo"].astype(weight_dtype), "bo": params["bo"].astype(f32),
        "w1": params["w1"].astype(weight_dtype), "b1": params["b1"].astype(f32),
        "w2": params["w2"].astype(weight_dtype), "b2": params["b2"].astype(f32),
        "ln1_g": params["ln1_g"].astype(f32), "ln1_b": params["ln1_b"].astype(f32),
        "ln2_g": params["ln2_g"].astype(f32), "ln2_b": params["ln2_b"].astype(f32),
    }


# ----------------------------------- wrapper ------------------------------------------
def vit_block(x, prep, output_attentions=False, eps=1e-5, batch_block=None,
              probs_dtype=jnp.float32):
    """x: (B, T, D) float32, prep = prepare_params(raw_params).
       Returns (out, attention_probs | None)."""
    B, T, D = x.shape
    H, dh = prep["dims"]
    A = H * dh
    I = prep["w1"].shape[1]

    # Fold batch elements per grid step (denser blocks, fewer grid steps) but keep >= 2
    # grid points by default so the v7x megacore can shard the batch axis.
    if batch_block is None:
        batch_block = B // 2 if (B >= 2 and B % 2 == 0) else 1
    assert B % batch_block == 0, "batch_block must divide B"
    G = B // batch_block

    # Advisory cost estimate so XLA schedules neighbours around this fused custom call.
    flops = 2 * B * T * (D * 3 * A + A * D + 2 * D * I) + 4 * B * H * T * T * dh
    transcendentals = B * T * (I + H * T)
    bytes_accessed = 8 * B * T * D                                   # x in + out (f32)
    bytes_accessed += 2 * (D * 3 * A + A * D + 2 * D * I)            # bf16 weights
    bytes_accessed += 4 * (3 * A + 2 * I + 7 * D)                    # f32 biases + LN
    if output_attentions:
        bytes_accessed += B * H * T * T * jnp.dtype(probs_dtype).itemsize
    cost = pl.CostEstimate(flops=int(flops), transcendentals=int(transcendentals),
                           bytes_accessed=int(bytes_accessed))

    operands = (x, prep["ln1_g"], prep["ln1_b"], prep["wqkv"], prep["bqkv"],
                prep["wo"], prep["bo"], prep["ln2_g"], prep["ln2_b"],
                prep["w1"], prep["b1"], prep["w2"], prep["b2"])

    def build(single_buffer_weights, head_batched):
        kernel = _make_block_kernel(batch_block, T, D, H, dh, eps,
                                    output_attentions, head_batched)

        def w_spec(shape):
            # Constant-index weight blocks are fetched once; single-buffer them so the
            # second pipeline buffer does not waste VMEM (critical at ViT-B on v7x).
            if single_buffer_weights and hasattr(pl, "Buffered"):
                return pl.BlockSpec(shape, lambda g: (0,) * len(shape),
                                    pipeline_mode=pl.Buffered(1))
            return pl.BlockSpec(shape, lambda g: (0,) * len(shape))

        in_specs = [
            pl.BlockSpec((batch_block, T, D), lambda g: (g, 0, 0)),   # x
            w_spec((1, D)), w_spec((1, D)),                           # ln1 gamma / beta
            w_spec((D, 3 * A)), w_spec((1, 3 * A)),                   # fused wqkv / bqkv
            w_spec((A, D)), w_spec((1, D)),                           # wo / bo
            w_spec((1, D)), w_spec((1, D)),                           # ln2 gamma / beta
            w_spec((D, I)), w_spec((1, I)),                           # mlp w1 / b1
            w_spec((I, D)), w_spec((1, D)),                           # mlp w2 / b2
        ]
        out_shapes = [jax.ShapeDtypeStruct((B, T, D), x.dtype)]
        out_specs = [pl.BlockSpec((batch_block, T, D), lambda g: (g, 0, 0))]
        if output_attentions:
            # TODO(synk): at real seq lengths (T=197) pad the key axis to 256 for
            # lane-dense (unmasked) probs stores; probs_dtype=bf16 halves the writeback.
            out_shapes.append(jax.ShapeDtypeStruct((B, H, T, T), probs_dtype))
            out_specs.append(pl.BlockSpec((batch_block, H, T, T),
                                          lambda g: (g, 0, 0, 0)))

        return pl.pallas_call(
            kernel,
            out_shape=tuple(out_shapes),
            grid_spec=pltpu.PrefetchScalarGridSpec(
                num_scalar_prefetch=0,
                grid=(G,),
                in_specs=in_specs,
                out_specs=tuple(out_specs)),
            compiler_params=pltpu.CompilerParams(
                dimension_semantics=("parallel",),
                vmem_limit_bytes=48 * 1024 * 1024),
            cost_estimate=cost,
        )

    # Preferred config first; fall back if this jax/Mosaic build rejects single-buffered
    # weight specs or the head-batched relayout path.
    configs = ((True, True), (False, True), (False, False))
    results = None
    for idx, (single_buf, head_batched) in enumerate(configs):
        try:
            results = jax.block_until_ready(build(single_buf, head_batched)(*operands))
            break
        except Exception:
            if idx == len(configs) - 1:
                raise

    out = results[0]
    probs = results[1] if output_attentions else None
    return out, probs


# ----------------------------------- params -------------------------------------------
def init_params(key, hidden_size, num_heads, intermediate_size):
    D, H, I = hidden_size, num_heads, intermediate_size
    dh = D // H
    A = H * dh
    ks = jax.random.split(key, 16)
    s = 1.0 / math.sqrt(D)
    si = 1.0 / math.sqrt(I)
    u = jax.random.uniform
    return {
        "wq": u(ks[0], (H, D, dh), jnp.float32, -s, s),
        "bq": u(ks[1], (H, 1, dh), jnp.float32, -s, s),
        "wk": u(ks[2], (H, D, dh), jnp.float32, -s, s),
        "bk": u(ks[3], (H, 1, dh), jnp.float32, -s, s),
        "wv": u(ks[4], (H, D, dh), jnp.float32, -s, s),
        "bv": u(ks[5], (H, 1, dh), jnp.float32, -s, s),
        "wo": u(ks[6], (A, D), jnp.float32, -s, s),
        "bo": u(ks[7], (1, D), jnp.float32, -s, s),
        "ln1_g": u(ks[8], (1, D), jnp.float32, 0.5, 1.5),
        "ln1_b": u(ks[9], (1, D), jnp.float32, -0.1, 0.1),
        "ln2_g": u(ks[10], (1, D), jnp.float32, 0.5, 1.5),
        "ln2_b": u(ks[11], (1, D), jnp.float32, -0.1, 0.1),
        "w1": u(ks[12], (D, I), jnp.float32, -s, s),
        "b1": u(ks[13], (1, I), jnp.float32, -s, s),
        "w2": u(ks[14], (I, D), jnp.float32, -si, si),
        "b2": u(ks[15], (1, D), jnp.float32, -si, si),
    }


# ---------------- pure-JAX reference (mirrors the torch module; bf16 MXU, f32 acc) -----
def _ref_mm(a, b):
    return jnp.dot(a.astype(jnp.bfloat16), b.astype(jnp.bfloat16),
                   preferred_element_type=jnp.float32)


def _ref_ein(eq, a, b):
    return jnp.einsum(eq, a.astype(jnp.bfloat16), b.astype(jnp.bfloat16),
                      preferred_element_type=jnp.float32)


def ref_block(x, p, eps=1e-5):
    def ln(v, g, b):
        mu = v.mean(-1, keepdims=True)
        var = ((v - mu) ** 2).mean(-1, keepdims=True)
        return (v - mu) / jnp.sqrt(var + eps) * g + b

    H, D, dh = p["wq"].shape
    h1 = ln(x, p["ln1_g"][0], p["ln1_b"][0])
    heads, probs_all = [], []
    for h in range(H):
        q = _ref_mm(h1, p["wq"][h]) + p["bq"][h, 0]
        k = _ref_mm(h1, p["wk"][h]) + p["bk"][h, 0]
        v = _ref_mm(h1, p["wv"][h]) + p["bv"][h, 0]
        s = _ref_ein("btd,bsd->bts", q, k) / math.sqrt(dh)
        pr = jax.nn.softmax(s, axis=-1)
        heads.append(_ref_ein("bts,bsd->btd", pr, v))
        probs_all.append(pr)
    attn = jnp.concatenate(heads, axis=-1)
    attn = _ref_mm(attn, p["wo"]) + p["bo"][0]
    x1 = x + attn
    h2 = ln(x1, p["ln2_g"][0], p["ln2_b"][0])
    z = _ref_mm(h2, p["w1"]) + p["b1"][0]
    c = math.sqrt(2.0 / math.pi)
    z = 0.5 * z * (1.0 + jnp.tanh(c * (z + 0.044715 * z ** 3)))
    mlp = _ref_mm(z, p["w2"]) + p["b2"][0]
    return x1 + mlp, jnp.stack(probs_all, axis=1)


if __name__ == "__main__":
    # config: hidden_size=32, num_attention_heads=4, intermediate_size=128,
    #         qkv_bias=True, dropouts=0 (eval mode)
    B, T, D, H, I = 2, 8, 32, 4, 128

    key = jax.random.PRNGKey(0)
    kx, kp = jax.random.split(key)
    x = jax.random.normal(kx, (B, T, D), jnp.float32)
    params = init_params(kp, D, H, I)
    prep = prepare_params(params)          # one-time fusion + bf16 weight cast

    out, probs = vit_block(x, prep, output_attentions=True)
    jax.block_until_ready(out)
    jax.block_until_ready(probs)

    out2, none_probs = vit_block(x, prep, output_attentions=False)
    jax.block_until_ready(out2)
    assert none_probs is None

    # batch-folded variant: whole batch in a single, denser grid step
    out3, probs3 = vit_block(x, prep, output_attentions=True, batch_block=B)
    jax.block_until_ready(out3)

    ref_out, ref_probs = ref_block(x, params)
    for name, o in (("default", out), ("no-probs", out2), ("batch-folded", out3)):
        assert jnp.allclose(o, ref_out, atol=2e-2, rtol=2e-2), \
            f"{name} output mismatch, max abs diff {jnp.max(jnp.abs(o - ref_out))}"
    for name, p in (("default", probs), ("batch-folded", probs3)):
        assert jnp.allclose(p.astype(jnp.float32), ref_probs, atol=1e-2, rtol=1e-2), \
            f"{name} probs mismatch, max abs diff {jnp.max(jnp.abs(p.astype(jnp.float32) - ref_probs))}"
    print("KERNEL_OK")
</pallas_src>

<mosaic_0001>
module attributes {stable_mosaic.version = 11 : i64} {
  func.func @kernel(%arg0: i32, %arg1: memref<1x8x32xf32, #tpu.memory_space<vmem>>, %arg2: memref<1x32xf32, #tpu.memory_space<vmem>>, %arg3: memref<1x32xf32, #tpu.memory_space<vmem>>, %arg4: memref<32x96xbf16, #tpu.memory_space<vmem>>, %arg5: memref<1x96xf32, #tpu.memory_space<vmem>>, %arg6: memref<32x32xbf16, #tpu.memory_space<vmem>>, %arg7: memref<1x32xf32, #tpu.memory_space<vmem>>, %arg8: memref<1x32xf32, #tpu.memory_space<vmem>>, %arg9: memref<1x32xf32, #tpu.memory_space<vmem>>, %arg10: memref<32x128xbf16, #tpu.memory_space<vmem>>, %arg11: memref<1x128xf32, #tpu.memory_space<vmem>>, %arg12: memref<128x32xbf16, #tpu.memory_space<vmem>>, %arg13: memref<1x32xf32, #tpu.memory_space<vmem>>, %arg14: memref<1x8x32xf32, #tpu.memory_space<vmem>>, %arg15: memref<1x4x8x8xf32, #tpu.memory_space<vmem>>) attributes {dimension_semantics = [#tpu.dimension_semantics<parallel>], iteration_bounds = array<i64: 2>, scalar_prefetch = 0 : i64, scratch_operands = 0 : i64, tpu.core_type = #tpu.core_type<tc>, window_params = [{transform_indices = @transform_0, window_bounds = array<i64: 1, 8, 32>}, {pipeline_mode = #tpu.pipeline_mode<synchronous>, transform_indices = @transform_1, window_bounds = array<i64: 1, 32>}, {pipeline_mode = #tpu.pipeline_mode<synchronous>, transform_indices = @transform_2, window_bounds = array<i64: 1, 32>}, {pipeline_mode = #tpu.pipeline_mode<synchronous>, transform_indices = @transform_3, window_bounds = array<i64: 32, 96>}, {pipeline_mode = #tpu.pipeline_mode<synchronous>, transform_indices = @transform_4, window_bounds = array<i64: 1, 96>}, {pipeline_mode = #tpu.pipeline_mode<synchronous>, transform_indices = @transform_5, window_bounds = array<i64: 32, 32>}, {pipeline_mode = #tpu.pipeline_mode<synchronous>, transform_indices = @transform_6, window_bounds = array<i64: 1, 32>}, {pipeline_mode = #tpu.pipeline_mode<synchronous>, transform_indices = @transform_7, window_bounds = array<i64: 1, 32>}, {pipeline_mode = #tpu.pipeline_mode<synchronous>, transform_indices = @transform_8, window_bounds = array<i64: 1, 32>}, {pipeline_mode = #tpu.pipeline_mode<synchronous>, transform_indices = @transform_9, window_bounds = array<i64: 32, 128>}, {pipeline_mode = #tpu.pipeline_mode<synchronous>, transform_indices = @transform_10, window_bounds = array<i64: 1, 128>}, {pipeline_mode = #tpu.pipeline_mode<synchronous>, transform_indices = @transform_11, window_bounds = array<i64: 128, 32>}, {pipeline_mode = #tpu.pipeline_mode<synchronous>, transform_indices = @transform_12, window_bounds = array<i64: 1, 32>}, {transform_indices = @transform_13, window_bounds = array<i64: 1, 8, 32>}, {transform_indices = @transform_14, window_bounds = array<i64: 1, 4, 8, 8>}]} {
    %c0 = arith.constant 0 : index
    %c0_0 = arith.constant 0 : index
    %c0_1 = arith.constant 0 : index
    %0 = vector.load %arg1[%c0, %c0_0, %c0_1] : memref<1x8x32xf32, #tpu.memory_space<vmem>>, vector<1x8x32xf32>
    %1 = vector.shape_cast %0 : vector<1x8x32xf32> to vector<8x32xf32>
    %c0_2 = arith.constant 0 : index
    %c0_3 = arith.constant 0 : index
    %2 = vector.load %arg2[%c0_2, %c0_3] : memref<1x32xf32, #tpu.memory_space<vmem>>, vector<1x32xf32>
    %3 = vector.shape_cast %2 : vector<1x32xf32> to vector<32xf32>
    %c0_4 = arith.constant 0 : index
    %c0_5 = arith.constant 0 : index
    %4 = vector.load %arg3[%c0_4, %c0_5] : memref<1x32xf32, #tpu.memory_space<vmem>>, vector<1x32xf32>
    %5 = vector.shape_cast %4 : vector<1x32xf32> to vector<32xf32>
    %cst = arith.constant dense<0.000000e+00> : vector<8xf32>
    %6 = vector.multi_reduction <add>, %1, %cst [1] : vector<8x32xf32> to vector<8xf32>
    %7 = vector.shape_cast %6 : vector<8xf32> to vector<8x1xf32>
    %cst_6 = arith.constant 3.200000e+01 : f32
    %8 = vector.broadcast %cst_6 : f32 to vector<8x1xf32>
    %9 = arith.divf %7, %8 : vector<8x1xf32>
    %10 = vector.broadcast %9 : vector<8x1xf32> to vector<8x32xf32>
    %11 = arith.subf %1, %10 : vector<8x32xf32>
    %12 = arith.mulf %11, %11 : vector<8x32xf32>
    %cst_7 = arith.constant dense<0.000000e+00> : vector<8xf32>
    %13 = vector.multi_reduction <add>, %12, %cst_7 [1] : vector<8x32xf32> to vector<8xf32>
    %14 = vector.shape_cast %13 : vector<8xf32> to vector<8x1xf32>
    %cst_8 = arith.constant 3.200000e+01 : f32
    %15 = vector.broadcast %cst_8 : f32 to vector<8x1xf32>
    %16 = arith.divf %14, %15 : vector<8x1xf32>
    %cst_9 = arith.constant 9.99999974E-6 : f32
    %17 = vector.broadcast %cst_9 : f32 to vector<8x1xf32>
    %18 = arith.addf %16, %17 : vector<8x1xf32>
    %19 = math.rsqrt %18 : vector<8x1xf32>
    %20 = vector.broadcast %19 : vector<8x1xf32> to vector<8x32xf32>
    %21 = arith.mulf %11, %20 : vector<8x32xf32>
    %22 = vector.shape_cast %3 : vector<32xf32> to vector<1x32xf32>
    %23 = vector.broadcast %22 : vector<1x32xf32> to vector<8x32xf32>
    %24 = arith.mulf %21, %23 : vector<8x32xf32>
    %25 = vector.shape_cast %5 : vector<32xf32> to vector<1x32xf32>
    %26 = vector.broadcast %25 : vector<1x32xf32> to vector<8x32xf32>
    %27 = arith.addf %24, %26 : vector<8x32xf32>
    %28 = arith.truncf %27 : vector<8x32xf32> to vector<8x32xbf16>
    %c0_10 = arith.constant 0 : index
    %c0_11 = arith.constant 0 : index
    %29 = vector.load %arg4[%c0_10, %c0_11] : memref<32x96xbf16, #tpu.memory_space<vmem>>, vector<32x96xbf16>
    %cst_12 = arith.constant dense<0.000000e+00> : vector<8x96xf32>
    %30 = tpu.matmul %28, %29, %cst_12 {dimension_numbers = #tpu.dot_dimension_numbers<[1], [0], [0], [1], [0, 0, 1, 1], [], []>} : vector<8x32xbf16>, vector<32x96xbf16>, vector<8x96xf32> -> vector<8x96xf32>
    %c0_13 = arith.constant 0 : index
    %c0_14 = arith.constant 0 : index
    %31 = vector.load %arg5[%c0_13, %c0_14] : memref<1x96xf32, #tpu.memory_space<vmem>>, vector<1x96xf32>
    %32 = vector.shape_cast %31 : vector<1x96xf32> to vector<96xf32>
    %33 = vector.shape_cast %32 : vector<96xf32> to vector<1x96xf32>
    %34 = vector.broadcast %33 : vector<1x96xf32> to vector<8x96xf32>
    %35 = arith.addf %30, %34 : vector<8x96xf32>
    %36 = arith.truncf %35 : vector<8x96xf32> to vector<8x96xbf16>
    %37 = vector.extract_strided_slice %36 {offsets = [0, 0], sizes = [8, 32], strides = [1, 1]} : vector<8x96xbf16> to vector<8x32xbf16>
    %38 = vector.shape_cast %37 : vector<8x32xbf16> to vector<8x4x8xbf16>
    %39 = tpu.transpose %38, [1, 0, 2] : vector<8x4x8xbf16> -> vector<4x8x8xbf16>
    %40 = vector.extract_strided_slice %36 {offsets = [0, 32], sizes = [8, 32], strides = [1, 1]} : vector<8x96xbf16> to vector<8x32xbf16>
    %41 = vector.shape_cast %40 : vector<8x32xbf16> to vector<8x4x8xbf16>
    %42 = tpu.transpose %41, [1, 0, 2] : vector<8x4x8xbf16> -> vector<4x8x8xbf16>
    %43 = vector.extract_strided_slice %36 {offsets = [0, 64], sizes = [8, 32], strides = [1, 1]} : vector<8x96xbf16> to vector<8x32xbf16>
    %44 = vector.shape_cast %43 : vector<8x32xbf16> to vector<8x4x8xbf16>
    %45 = tpu.transpose %44, [1, 0, 2] : vector<8x4x8xbf16> -> vector<4x8x8xbf16>
    "tpu.trace_start"() <{level = 10 : i32, message = "htd,hsd->hts"}> : () -> ()
    %cst_15 = arith.constant dense<0.000000e+00> : vector<4x8x8xf32>
    %46 = tpu.matmul %39, %42, %cst_15 {dimension_numbers = #tpu.dot_dimension_numbers<[2], [2], [1], [1], [0, 0, 0, 1, 1, 1], [0], [0]>} : vector<4x8x8xbf16>, vector<4x8x8xbf16>, vector<4x8x8xf32> -> vector<4x8x8xf32>
    "tpu.trace_stop"() : () -> ()
    %cst_16 = arith.constant dense<0xFF800000> : vector<4x8xf32>
    %47 = vector.multi_reduction <maximumf>, %46, %cst_16 [2] : vector<4x8x8xf32> to vector<4x8xf32>
    %48 = vector.shape_cast %47 : vector<4x8xf32> to vector<4x8x1xf32>
    %49 = vector.broadcast %48 : vector<4x8x1xf32> to vector<4x8x8xf32>
    %50 = arith.subf %46, %49 : vector<4x8x8xf32>
    %51 = math.exp %50 : vector<4x8x8xf32>
    %cst_17 = arith.constant dense<0.000000e+00> : vector<4x8xf32>
    %52 = vector.multi_reduction <add>, %51, %cst_17 [2] : vector<4x8x8xf32> to vector<4x8xf32>
    %53 = vector.shape_cast %52 : vector<4x8xf32> to vector<4x8x1xf32>
    %54 = tpu.reciprocal %53 {approx = true} : vector<4x8x1xf32> -> vector<4x8x1xf32>
    %55 = vector.broadcast %54 : vector<4x8x1xf32> to vector<4x8x8xf32>
    %56 = arith.mulf %51, %55 : vector<4x8x8xf32>
    %c0_18 = arith.constant 0 : index
    %c0_19 = arith.constant 0 : index
    %c0_20 = arith.constant 0 : index
    %c0_21 = arith.constant 0 : index
    %57 = vector.load %arg15[%c0_18, %c0_19, %c0_20, %c0_21] : memref<1x4x8x8xf32, #tpu.memory_space<vmem>>, vector<1x4x8x8xf32>
    %58 = vector.shape_cast %57 : vector<1x4x8x8xf32> to vector<4x8x8xf32>
    %59 = vector.shape_cast %56 : vector<4x8x8xf32> to vector<1x4x8x8xf32>
    tpu.vector_store %arg15[%c0_18, %c0_19, %c0_20, %c0_21], %59 {strides = array<i32>} : memref<1x4x8x8xf32, #tpu.memory_space<vmem>>, vector<1x4x8x8xf32>,
    %60 = arith.truncf %56 : vector<4x8x8xf32> to vector<4x8x8xbf16>
    "tpu.trace_start"() <{level = 10 : i32, message = "hts,hsd->htd"}> : () -> ()
    %cst_22 = arith.constant dense<0.000000e+00> : vector<4x8x8xf32>
    %61 = tpu.matmul %60, %45, %cst_22 {dimension_numbers = #tpu.dot_dimension_numbers<[2], [1], [1], [2], [0, 0, 0, 1, 1, 2], [0], [0]>} : vector<4x8x8xbf16>, vector<4x8x8xbf16>, vector<4x8x8xf32> -> vector<4x8x8xf32>
    "tpu.trace_stop"() : () -> ()
    %62 = tpu.transpose %61, [1, 0, 2] : vector<4x8x8xf32> -> vector<8x4x8xf32>
    %63 = vector.shape_cast %62 : vector<8x4x8xf32> to vector<8x32xf32>
    %64 = arith.truncf %63 : vector<8x32xf32> to vector<8x32xbf16>
    %c0_23 = arith.constant 0 : index
    %c0_24 = arith.constant 0 : index
    %65 = vector.load %arg6[%c0_23, %c0_24] : memref<32x32xbf16, #tpu.memory_space<vmem>>, vector<32x32xbf16>
    %cst_25 = arith.constant dense<0.000000e+00> : vector<8x32xf32>
    %66 = tpu.matmul %64, %65, %cst_25 {dimension_numbers = #tpu.dot_dimension_numbers<[1], [0], [0], [1], [0, 0, 1, 1], [], []>} : vector<8x32xbf16>, vector<32x32xbf16>, vector<8x32xf32> -> vector<8x32xf32>
    %c0_26 = arith.constant 0 : index
    %c0_27 = arith.constant 0 : index
    %67 = vector.load %arg7[%c0_26, %c0_27] : memref<1x32xf32, #tpu.memory_space<vmem>>, vector<1x32xf32>
    %68 = vector.shape_cast %67 : vector<1x32xf32> to vector<32xf32>
    %69 = vector.shape_cast %68 : vector<32xf32> to vector<1x32xf32>
    %70 = vector.broadcast %69 : vector<1x32xf32> to vector<8x32xf32>
    %71 = arith.addf %66, %70 : vector<8x32xf32>
    %72 = arith.addf %1, %71 : vector<8x32xf32>
    %c0_28 = arith.constant 0 : index
    %c0_29 = arith.constant 0 : index
    %73 = vector.load %arg8[%c0_28, %c0_29] : memref<1x32xf32, #tpu.memory_space<vmem>>, vector<1x32xf32>
    %74 = vector.shape_cast %73 : vector<1x32xf32> to vector<32xf32>
    %c0_30 = arith.constant 0 : index
    %c0_31 = arith.constant 0 : index
    %75 = vector.load %arg9[%c0_30, %c0_31] : memref<1x32xf32, #tpu.memory_space<vmem>>, vector<1x32xf32>
    %76 = vector.shape_cast %75 : vector<1x32xf32> to vector<32xf32>
    %cst_32 = arith.constant dense<0.000000e+00> : vector<8xf32>
    %77 = vector.multi_reduction <add>, %72, %cst_32 [1] : vector<8x32xf32> to vector<8xf32>
    %78 = vector.shape_cast %77 : vector<8xf32> to vector<8x1xf32>
    %cst_33 = arith.constant 3.200000e+01 : f32
    %79 = vector.broadcast %cst_33 : f32 to vector<8x1xf32>
    %80 = arith.divf %78, %79 : vector<8x1xf32>
    %81 = vector.broadcast %80 : vector<8x1xf32> to vector<8x32xf32>
    %82 = arith.subf %72, %81 : vector<8x32xf32>
    %83 = arith.mulf %82, %82 : vector<8x32xf32>
    %cst_34 = arith.constant dense<0.000000e+00> : vector<8xf32>
    %84 = vector.multi_reduction <add>, %83, %cst_34 [1] : vector<8x32xf32> to vector<8xf32>
    %85 = vector.shape_cast %84 : vector<8xf32> to vector<8x1xf32>
    %cst_35 = arith.constant 3.200000e+01 : f32
    %86 = vector.broadcast %cst_35 : f32 to vector<8x1xf32>
    %87 = arith.divf %85, %86 : vector<8x1xf32>
    %cst_36 = arith.constant 9.99999974E-6 : f32
    %88 = vector.broadcast %cst_36 : f32 to vector<8x1xf32>
    %89 = arith.addf %87, %88 : vector<8x1xf32>
    %90 = math.rsqrt %89 : vector<8x1xf32>
    %91 = vector.broadcast %90 : vector<8x1xf32> to vector<8x32xf32>
    %92 = arith.mulf %82, %91 : vector<8x32xf32>
    %93 = vector.shape_cast %74 : vector<32xf32> to vector<1x32xf32>
    %94 = vector.broadcast %93 : vector<1x32xf32> to vector<8x32xf32>
    %95 = arith.mulf %92, %94 : vector<8x32xf32>
    %96 = vector.shape_cast %76 : vector<32xf32> to vector<1x32xf32>
    %97 = vector.broadcast %96 : vector<1x32xf32> to vector<8x32xf32>
    %98 = arith.addf %95, %97 : vector<8x32xf32>
    %99 = arith.truncf %98 : vector<8x32xf32> to vector<8x32xbf16>
    %c0_37 = arith.constant 0 : index
    %c0_38 = arith.constant 0 : index
    %100 = vector.load %arg10[%c0_37, %c0_38] : memref<32x128xbf16, #tpu.memory_space<vmem>>, vector<32x128xbf16>
    %cst_39 = arith.constant dense<0.000000e+00> : vector<8x128xf32>
    %101 = tpu.matmul %99, %100, %cst_39 {dimension_numbers = #tpu.dot_dimension_numbers<[1], [0], [0], [1], [0, 0, 1, 1], [], []>} : vector<8x32xbf16>, vector<32x128xbf16>, vector<8x128xf32> -> vector<8x128xf32>
    %c0_40 = arith.constant 0 : index
    %c0_41 = arith.constant 0 : index
    %102 = vector.load %arg11[%c0_40, %c0_41] : memref<1x128xf32, #tpu.memory_space<vmem>>, vector<1x128xf32>
    %103 = vector.shape_cast %102 : vector<1x128xf32> to vector<128xf32>
    %104 = vector.shape_cast %103 : vector<128xf32> to vector<1x128xf32>
    %105 = vector.broadcast %104 : vector<1x128xf32> to vector<8x128xf32>
    %106 = arith.addf %101, %105 : vector<8x128xf32>
    %cst_42 = arith.constant 5.000000e-01 : f32
    %107 = vector.broadcast %cst_42 : f32 to vector<8x128xf32>
    %108 = arith.mulf %107, %106 : vector<8x128xf32>
    %cst_43 = arith.constant 4.471500e-02 : f32
    %109 = vector.broadcast %cst_43 : f32 to vector<8x128xf32>
    %110 = arith.mulf %109, %106 : vector<8x128xf32>
    %111 = arith.mulf %110, %106 : vector<8x128xf32>
    %112 = arith.mulf %111, %106 : vector<8x128xf32>
    %113 = arith.addf %106, %112 : vector<8x128xf32>
    %cst_44 = arith.constant 0.797884583 : f32
    %114 = vector.broadcast %cst_44 : f32 to vector<8x128xf32>
    %115 = arith.mulf %114, %113 : vector<8x128xf32>
    %116 = math.tanh %115 : vector<8x128xf32>
    %cst_45 = arith.constant 1.000000e+00 : f32
    %117 = vector.broadcast %cst_45 : f32 to vector<8x128xf32>
    %118 = arith.addf %117, %116 : vector<8x128xf32>
    %119 = arith.mulf %108, %118 : vector<8x128xf32>
    %120 = arith.truncf %119 : vector<8x128xf32> to vector<8x128xbf16>
    %c0_46 = arith.constant 0 : index
    %c0_47 = arith.constant 0 : index
    %121 = vector.load %arg12[%c0_46, %c0_47] : memref<128x32xbf16, #tpu.memory_space<vmem>>, vector<128x32xbf16>
    %cst_48 = arith.constant dense<0.000000e+00> : vector<8x32xf32>
    %122 = tpu.matmul %120, %121, %cst_48 {dimension_numbers = #tpu.dot_dimension_numbers<[1], [0], [0], [1], [0, 0, 1, 1], [], []>} : vector<8x128xbf16>, vector<128x32xbf16>, vector<8x32xf32> -> vector<8x32xf32>
    %c0_49 = arith.constant 0 : index
    %c0_50 = arith.constant 0 : index
    %123 = vector.load %arg13[%c0_49, %c0_50] : memref<1x32xf32, #tpu.memory_space<vmem>>, vector<1x32xf32>
    %124 = vector.shape_cast %123 : vector<1x32xf32> to vector<32xf32>
    %125 = vector.shape_cast %124 : vector<32xf32> to vector<1x32xf32>
    %126 = vector.broadcast %125 : vector<1x32xf32> to vector<8x32xf32>
    %127 = arith.addf %122, %126 : vector<8x32xf32>
    %128 = arith.addf %72, %127 : vector<8x32xf32>
    %129 = vector.shape_cast %128 : vector<8x32xf32> to vector<1x8x32xf32>
    %c0_51 = arith.constant 0 : index
    %c0_52 = arith.constant 0 : index
    %c0_53 = arith.constant 0 : index
    %130 = vector.load %arg14[%c0_51, %c0_52, %c0_53] : memref<1x8x32xf32, #tpu.memory_space<vmem>>, vector<1x8x32xf32>
    tpu.vector_store %arg14[%c0_51, %c0_52, %c0_53], %129 {strides = array<i32>} : memref<1x8x32xf32, #tpu.memory_space<vmem>>, vector<1x8x32xf32>,
    return
  }
  func.func @transform_0(%arg0: i32) -> (i32, i32, i32) {
    %c0_i32 = arith.constant 0 : i32
    %c0_i32_0 = arith.constant 0 : i32
    %c0_i32_1 = arith.constant 0 : i32
    return %arg0, %c0_i32, %c0_i32_0 : i32, i32, i32
  }
  func.func @transform_1(%arg0: i32) -> (i32, i32) {
    %c0_i32 = arith.constant 0 : i32
    %c0_i32_0 = arith.constant 0 : i32
    %c0_i32_1 = arith.constant 0 : i32
    return %c0_i32, %c0_i32_0 : i32, i32
  }
  func.func @transform_2(%arg0: i32) -> (i32, i32) {
    %c0_i32 = arith.constant 0 : i32
    %c0_i32_0 = arith.constant 0 : i32
    %c0_i32_1 = arith.constant 0 : i32
    return %c0_i32, %c0_i32_0 : i32, i32
  }
  func.func @transform_3(%arg0: i32) -> (i32, i32) {
    %c0_i32 = arith.constant 0 : i32
    %c0_i32_0 = arith.constant 0 : i32
    %c0_i32_1 = arith.constant 0 : i32
    return %c0_i32, %c0_i32_0 : i32, i32
  }
  func.func @transform_4(%arg0: i32) -> (i32, i32) {
    %c0_i32 = arith.constant 0 : i32
    %c0_i32_0 = arith.constant 0 : i32
    %c0_i32_1 = arith.constant 0 : i32
    return %c0_i32, %c0_i32_0 : i32, i32
  }
  func.func @transform_5(%arg0: i32) -> (i32, i32) {
    %c0_i32 = arith.constant 0 : i32
    %c0_i32_0 = arith.constant 0 : i32
    %c0_i32_1 = arith.constant 0 : i32
    return %c0_i32, %c0_i32_0 : i32, i32
  }
  func.func @transform_6(%arg0: i32) -> (i32, i32) {
    %c0_i32 = arith.constant 0 : i32
    %c0_i32_0 = arith.constant 0 : i32
    %c0_i32_1 = arith.constant 0 : i32
    return %c0_i32, %c0_i32_0 : i32, i32
  }
  func.func @transform_7(%arg0: i32) -> (i32, i32) {
    %c0_i32 = arith.constant 0 : i32
    %c0_i32_0 = arith.constant 0 : i32
    %c0_i32_1 = arith.constant 0 : i32
    return %c0_i32, %c0_i32_0 : i32, i32
  }
  func.func @transform_8(%arg0: i32) -> (i32, i32) {
    %c0_i32 = arith.constant 0 : i32
    %c0_i32_0 = arith.constant 0 : i32
    %c0_i32_1 = arith.constant 0 : i32
    return %c0_i32, %c0_i32_0 : i32, i32
  }
  func.func @transform_9(%arg0: i32) -> (i32, i32) {
    %c0_i32 = arith.constant 0 : i32
    %c0_i32_0 = arith.constant 0 : i32
    %c0_i32_1 = arith.constant 0 : i32
    return %c0_i32, %c0_i32_0 : i32, i32
  }
  func.func @transform_10(%arg0: i32) -> (i32, i32) {
    %c0_i32 = arith.constant 0 : i32
    %c0_i32_0 = arith.constant 0 : i32
    %c0_i32_1 = arith.constant 0 : i32
    return %c0_i32, %c0_i32_0 : i32, i32
  }
  func.func @transform_11(%arg0: i32) -> (i32, i32) {
    %c0_i32 = arith.constant 0 : i32
    %c0_i32_0 = arith.constant 0 : i32
    %c0_i32_1 = arith.constant 0 : i32
    return %c0_i32, %c0_i32_0 : i32, i32
  }
  func.func @transform_12(%arg0: i32) -> (i32, i32) {
    %c0_i32 = arith.constant 0 : i32
    %c0_i32_0 = arith.constant 0 : i32
    %c0_i32_1 = arith.constant 0 : i32
    return %c0_i32, %c0_i32_0 : i32, i32
  }
  func.func @transform_13(%arg0: i32) -> (i32, i32, i32) {
    %c0_i32 = arith.constant 0 : i32
    %c0_i32_0 = arith.constant 0 : i32
    %c0_i32_1 = arith.constant 0 : i32
    return %arg0, %c0_i32, %c0_i32_0 : i32, i32, i32
  }
  func.func @transform_14(%arg0: i32) -> (i32, i32, i32, i32) {
    %c0_i32 = arith.constant 0 : i32
    %c0_i32_0 = arith.constant 0 : i32
    %c0_i32_1 = arith.constant 0 : i32
    %c0_i32_2 = arith.constant 0 : i32
    return %arg0, %c0_i32, %c0_i32_0, %c0_i32_1 : i32, i32, i32, i32
  }
}

module attributes {stable_mosaic.version = 11 : i64} {
  func.func @kernel(%arg0: i32, %arg1: memref<1x8x32xf32, #tpu.memory_space<vmem>>, %arg2: memref<1x32xf32, #tpu.memory_space<vmem>>, %arg3: memref<1x32xf32, #tpu.memory_space<vmem>>, %arg4: memref<32x96xbf16, #tpu.memory_space<vmem>>, %arg5: memref<1x96xf32, #tpu.memory_space<vmem>>, %arg6: memref<32x32xbf16, #tpu.memory_space<vmem>>, %arg7: memref<1x32xf32, #tpu.memory_space<vmem>>, %arg8: memref<1x32xf32, #tpu.memory_space<vmem>>, %arg9: memref<1x32xf32, #tpu.memory_space<vmem>>, %arg10: memref<32x128xbf16, #tpu.memory_space<vmem>>, %arg11: memref<1x128xf32, #tpu.memory_space<vmem>>, %arg12: memref<128x32xbf16, #tpu.memory_space<vmem>>, %arg13: memref<1x32xf32, #tpu.memory_space<vmem>>, %arg14: memref<1x8x32xf32, #tpu.memory_space<vmem>>, %arg15: memref<1x4x8x8xf32, #tpu.memory_space<vmem>>) attributes {dimension_semantics = [#tpu.dimension_semantics<parallel>], iteration_bounds = array<i64: 2>, scalar_prefetch = 0 : i64, scratch_operands = 0 : i64, tpu.core_type = #tpu.core_type<tc>, window_params = [{transform_indices = @transform_0, window_bounds = array<i64: 1, 8, 32>}, {pipeline_mode = #tpu.pipeline_mode<synchronous>, transform_indices = @transform_1, window_bounds = array<i64: 1, 32>}, {pipeline_mode = #tpu.pipeline_mode<synchronous>, transform_indices = @transform_2, window_bounds = array<i64: 1, 32>}, {pipeline_mode = #tpu.pipeline_mode<synchronous>, transform_indices = @transform_3, window_bounds = array<i64: 32, 96>}, {pipeline_mode = #tpu.pipeline_mode<synchronous>, transform_indices = @transform_4, window_bounds = array<i64: 1, 96>}, {pipeline_mode = #tpu.pipeline_mode<synchronous>, transform_indices = @transform_5, window_bounds = array<i64: 32, 32>}, {pipeline_mode = #tpu.pipeline_mode<synchronous>, transform_indices = @transform_6, window_bounds = array<i64: 1, 32>}, {pipeline_mode = #tpu.pipeline_mode<synchronous>, transform_indices = @transform_7, window_bounds = array<i64: 1, 32>}, {pipeline_mode = #tpu.pipeline_mode<synchronous>, transform_indices = @transform_8, window_bounds = array<i64: 1, 32>}, {pipeline_mode = #tpu.pipeline_mode<synchronous>, transform_indices = @transform_9, window_bounds = array<i64: 32, 128>}, {pipeline_mode = #tpu.pipeline_mode<synchronous>, transform_indices = @transform_10, window_bounds = array<i64: 1, 128>}, {pipeline_mode = #tpu.pipeline_mode<synchronous>, transform_indices = @transform_11, window_bounds = array<i64: 128, 32>}, {pipeline_mode = #tpu.pipeline_mode<synchronous>, transform_indices = @transform_12, window_bounds = array<i64: 1, 32>}, {transform_indices = @transform_13, window_bounds = array<i64: 1, 8, 32>}, {transform_indices = @transform_14, window_bounds = array<i64: 1, 4, 8, 8>}]} {
    %c0 = arith.constant 0 : index
    %c0_0 = arith.constant 0 : index
    %c0_1 = arith.constant 0 : index
    %0 = vector.load %arg1[%c0, %c0_0, %c0_1] : memref<1x8x32xf32, #tpu.memory_space<vmem>>, vector<1x8x32xf32>
    %1 = vector.shape_cast %0 : vector<1x8x32xf32> to vector<8x32xf32>
    %c0_2 = arith.constant 0 : index
    %c0_3 = arith.constant 0 : index
    %2 = vector.load %arg2[%c0_2, %c0_3] : memref<1x32xf32, #tpu.memory_space<vmem>>, vector<1x32xf32>
    %3 = vector.shape_cast %2 : vector<1x32xf32> to vector<32xf32>
    %c0_4 = arith.constant 0 : index
    %c0_5 = arith.constant 0 : index
    %4 = vector.load %arg3[%c0_4, %c0_5] : memref<1x32xf32, #tpu.memory_space<vmem>>, vector<1x32xf32>
    %5 = vector.shape_cast %4 : vector<1x32xf32> to vector<32xf32>
    %cst = arith.constant dense<0.000000e+00> : vector<8xf32>
    %6 = vector.multi_reduction <add>, %1, %cst [1] : vector<8x32xf32> to vector<8xf32>
    %7 = vector.shape_cast %6 : vector<8xf32> to vector<8x1xf32>
    %cst_6 = arith.constant 3.200000e+01 : f32
    %8 = vector.broadcast %cst_6 : f32 to vector<8x1xf32>
    %9 = arith.divf %7, %8 : vector<8x1xf32>
    %10 = vector.broadcast %9 : vector<8x1xf32> to vector<8x32xf32>
    %11 = arith.subf %1, %10 : vector<8x32xf32>
    %12 = arith.mulf %11, %11 : vector<8x32xf32>
    %cst_7 = arith.constant dense<0.000000e+00> : vector<8xf32>
    %13 = vector.multi_reduction <add>, %12, %cst_7 [1] : vector<8x32xf32> to vector<8xf32>
    %14 = vector.shape_cast %13 : vector<8xf32> to vector<8x1xf32>
    %cst_8 = arith.constant 3.200000e+01 : f32
    %15 = vector.broadcast %cst_8 : f32 to vector<8x1xf32>
    %16 = arith.divf %14, %15 : vector<8x1xf32>
    %cst_9 = arith.constant 9.99999974E-6 : f32
    %17 = vector.broadcast %cst_9 : f32 to vector<8x1xf32>
    %18 = arith.addf %16, %17 : vector<8x1xf32>
    %19 = math.rsqrt %18 : vector<8x1xf32>
    %20 = vector.broadcast %19 : vector<8x1xf32> to vector<8x32xf32>
    %21 = arith.mulf %11, %20 : vector<8x32xf32>
    %22 = vector.shape_cast %3 : vector<32xf32> to vector<1x32xf32>
    %23 = vector.broadcast %22 : vector<1x32xf32> to vector<8x32xf32>
    %24 = arith.mulf %21, %23 : vector<8x32xf32>
    %25 = vector.shape_cast %5 : vector<32xf32> to vector<1x32xf32>
    %26 = vector.broadcast %25 : vector<1x32xf32> to vector<8x32xf32>
    %27 = arith.addf %24, %26 : vector<8x32xf32>
    %28 = arith.truncf %27 : vector<8x32xf32> to vector<8x32xbf16>
    %c0_10 = arith.constant 0 : index
    %c0_11 = arith.constant 0 : index
    %29 = vector.load %arg4[%c0_10, %c0_11] : memref<32x96xbf16, #tpu.memory_space<vmem>>, vector<32x96xbf16>
    %cst_12 = arith.constant dense<0.000000e+00> : vector<8x96xf32>
    %30 = tpu.matmul %28, %29, %cst_12 {dimension_numbers = #tpu.dot_dimension_numbers<[1], [0], [0], [1], [0, 0, 1, 1], [], []>} : vector<8x32xbf16>, vector<32x96xbf16>, vector<8x96xf32> -> vector<8x96xf32>
    %c0_13 = arith.constant 0 : index
    %c0_14 = arith.constant 0 : index
    %31 = vector.load %arg5[%c0_13, %c0_14] : memref<1x96xf32, #tpu.memory_space<vmem>>, vector<1x96xf32>
    %32 = vector.shape_cast %31 : vector<1x96xf32> to vector<96xf32>
    %33 = vector.shape_cast %32 : vector<96xf32> to vector<1x96xf32>
    %34 = vector.broadcast %33 : vector<1x96xf32> to vector<8x96xf32>
    %35 = arith.addf %30, %34 : vector<8x96xf32>
    %36 = arith.truncf %35 : vector<8x96xf32> to vector<8x96xbf16>
    %37 = vector.extract_strided_slice %36 {offsets = [0, 0], sizes = [8, 32], strides = [1, 1]} : vector<8x96xbf16> to vector<8x32xbf16>
    %38 = vector.shape_cast %37 : vector<8x32xbf16> to vector<8x4x8xbf16>
    %39 = tpu.transpose %38, [1, 0, 2] : vector<8x4x8xbf16> -> vector<4x8x8xbf16>
    %40 = vector.extract_strided_slice %36 {offsets = [0, 32], sizes = [8, 32], strides = [1, 1]} : vector<8x96xbf16> to vector<8x32xbf16>
    %41 = vector.shape_cast %40 : vector<8x32xbf16> to vector<8x4x8xbf16>
    %42 = tpu.transpose %41, [1, 0, 2] : vector<8x4x8xbf16> -> vector<4x8x8xbf16>
    %43 = vector.extract_strided_slice %36 {offsets = [0, 64], sizes = [8, 32], strides = [1, 1]} : vector<8x96xbf16> to vector<8x32xbf16>
    %44 = vector.shape_cast %43 : vector<8x32xbf16> to vector<8x4x8xbf16>
    %45 = tpu.transpose %44, [1, 0, 2] : vector<8x4x8xbf16> -> vector<4x8x8xbf16>
    "tpu.trace_start"() <{level = 10 : i32, message = "htd,hsd->hts"}> : () -> ()
    %cst_15 = arith.constant dense<0.000000e+00> : vector<4x8x8xf32>
    %46 = tpu.matmul %39, %42, %cst_15 {dimension_numbers = #tpu.dot_dimension_numbers<[2], [2], [1], [1], [0, 0, 0, 1, 1, 1], [0], [0]>} : vector<4x8x8xbf16>, vector<4x8x8xbf16>, vector<4x8x8xf32> -> vector<4x8x8xf32>
    "tpu.trace_stop"() : () -> ()
    %cst_16 = arith.constant dense<0xFF800000> : vector<4x8xf32>
    %47 = vector.multi_reduction <maximumf>, %46, %cst_16 [2] : vector<4x8x8xf32> to vector<4x8xf32>
    %48 = vector.shape_cast %47 : vector<4x8xf32> to vector<4x8x1xf32>
    %49 = vector.broadcast %48 : vector<4x8x1xf32> to vector<4x8x8xf32>
    %50 = arith.subf %46, %49 : vector<4x8x8xf32>
    %51 = math.exp %50 : vector<4x8x8xf32>
    %cst_17 = arith.constant dense<0.000000e+00> : vector<4x8xf32>
    %52 = vector.multi_reduction <add>, %51, %cst_17 [2] : vector<4x8x8xf32> to vector<4x8xf32>
    %53 = vector.shape_cast %52 : vector<4x8xf32> to vector<4x8x1xf32>
    %54 = tpu.reciprocal %53 {approx = true} : vector<4x8x1xf32> -> vector<4x8x1xf32>
    %55 = vector.broadcast %54 : vector<4x8x1xf32> to vector<4x8x8xf32>
    %56 = arith.mulf %51, %55 : vector<4x8x8xf32>
    %c0_18 = arith.constant 0 : index
    %c0_19 = arith.constant 0 : index
    %c0_20 = arith.constant 0 : index
    %c0_21 = arith.constant 0 : index
    %57 = vector.load %arg15[%c0_18, %c0_19, %c0_20, %c0_21] : memref<1x4x8x8xf32, #tpu.memory_space<vmem>>, vector<1x4x8x8xf32>
    %58 = vector.shape_cast %57 : vector<1x4x8x8xf32> to vector<4x8x8xf32>
    %59 = vector.shape_cast %56 : vector<4x8x8xf32> to vector<1x4x8x8xf32>
    tpu.vector_store %arg15[%c0_18, %c0_19, %c0_20, %c0_21], %59 {strides = array<i32>} : memref<1x4x8x8xf32, #tpu.memory_space<vmem>>, vector<1x4x8x8xf32>,
    %60 = arith.truncf %56 : vector<4x8x8xf32> to vector<4x8x8xbf16>
    "tpu.trace_start"() <{level = 10 : i32, message = "hts,hsd->htd"}> : () -> ()
    %cst_22 = arith.constant dense<0.000000e+00> : vector<4x8x8xf32>
    %61 = tpu.matmul %60, %45, %cst_22 {dimension_numbers = #tpu.dot_dimension_numbers<[2], [1], [1], [2], [0, 0, 0, 1, 1, 2], [0], [0]>} : vector<4x8x8xbf16>, vector<4x8x8xbf16>, vector<4x8x8xf32> -> vector<4x8x8xf32>
    "tpu.trace_stop"() : () -> ()
    %62 = tpu.transpose %61, [1, 0, 2] : vector<4x8x8xf32> -> vector<8x4x8xf32>
    %63 = vector.shape_cast %62 : vector<8x4x8xf32> to vector<8x32xf32>
    %64 = arith.truncf %63 : vector<8x32xf32> to vector<8x32xbf16>
    %c0_23 = arith.constant 0 : index
    %c0_24 = arith.constant 0 : index
    %65 = vector.load %arg6[%c0_23, %c0_24] : memref<32x32xbf16, #tpu.memory_space<vmem>>, vector<32x32xbf16>
    %cst_25 = arith.constant dense<0.000000e+00> : vector<8x32xf32>
    %66 = tpu.matmul %64, %65, %cst_25 {dimension_numbers = #tpu.dot_dimension_numbers<[1], [0], [0], [1], [0, 0, 1, 1], [], []>} : vector<8x32xbf16>, vector<32x32xbf16>, vector<8x32xf32> -> vector<8x32xf32>
    %c0_26 = arith.constant 0 : index
    %c0_27 = arith.constant 0 : index
    %67 = vector.load %arg7[%c0_26, %c0_27] : memref<1x32xf32, #tpu.memory_space<vmem>>, vector<1x32xf32>
    %68 = vector.shape_cast %67 : vector<1x32xf32> to vector<32xf32>
    %69 = vector.shape_cast %68 : vector<32xf32> to vector<1x32xf32>
    %70 = vector.broadcast %69 : vector<1x32xf32> to vector<8x32xf32>
    %71 = arith.addf %66, %70 : vector<8x32xf32>
    %72 = arith.addf %1, %71 : vector<8x32xf32>
    %c0_28 = arith.constant 0 : index
    %c0_29 = arith.constant 0 : index
    %73 = vector.load %arg8[%c0_28, %c0_29] : memref<1x32xf32, #tpu.memory_space<vmem>>, vector<1x32xf32>
    %74 = vector.shape_cast %73 : vector<1x32xf32> to vector<32xf32>
    %c0_30 = arith.constant 0 : index
    %c0_31 = arith.constant 0 : index
    %75 = vector.load %arg9[%c0_30, %c0_31] : memref<1x32xf32, #tpu.memory_space<vmem>>, vector<1x32xf32>
    %76 = vector.shape_cast %75 : vector<1x32xf32> to vector<32xf32>
    %cst_32 = arith.constant dense<0.000000e+00> : vector<8xf32>
    %77 = vector.multi_reduction <add>, %72, %cst_32 [1] : vector<8x32xf32> to vector<8xf32>
    %78 = vector.shape_cast %77 : vector<8xf32> to vector<8x1xf32>
    %cst_33 = arith.constant 3.200000e+01 : f32
    %79 = vector.broadcast %cst_33 : f32 to vector<8x1xf32>
    %80 = arith.divf %78, %79 : vector<8x1xf32>
    %81 = vector.broadcast %80 : vector<8x1xf32> to vector<8x32xf32>
    %82 = arith.subf %72, %81 : vector<8x32xf32>
    %83 = arith.mulf %82, %82 : vector<8x32xf32>
    %cst_34 = arith.constant dense<0.000000e+00> : vector<8xf32>
    %84 = vector.multi_reduction <add>, %83, %cst_34 [1] : vector<8x32xf32> to vector<8xf32>
    %85 = vector.shape_cast %84 : vector<8xf32> to vector<8x1xf32>
    %cst_35 = arith.constant 3.200000e+01 : f32
    %86 = vector.broadcast %cst_35 : f32 to vector<8x1xf32>
    %87 = arith.divf %85, %86 : vector<8x1xf32>
    %cst_36 = arith.constant 9.99999974E-6 : f32
    %88 = vector.broadcast %cst_36 : f32 to vector<8x1xf32>
    %89 = arith.addf %87, %88 : vector<8x1xf32>
    %90 = math.rsqrt %89 : vector<8x1xf32>
    %91 = vector.broadcast %90 : vector<8x1xf32> to vector<8x32xf32>
    %92 = arith.mulf %82, %91 : vector<8x32xf32>
    %93 = vector.shape_cast %74 : vector<32xf32> to vector<1x32xf32>
    %94 = vector.broadcast %93 : vector<1x32xf32> to vector<8x32xf32>
    %95 = arith.mulf %92, %94 : vector<8x32xf32>
    %96 = vector.shape_cast %76 : vector<32xf32> to vector<1x32xf32>
    %97 = vector.broadcast %96 : vector<1x32xf32> to vector<8x32xf32>
    %98 = arith.addf %95, %97 : vector<8x32xf32>
    %99 = arith.truncf %98 : vector<8x32xf32> to vector<8x32xbf16>
    %c0_37 = arith.constant 0 : index
    %c0_38 = arith.constant 0 : index
    %100 = vector.load %arg10[%c0_37, %c0_38] : memref<32x128xbf16, #tpu.memory_space<vmem>>, vector<32x128xbf16>
    %cst_39 = arith.constant dense<0.000000e+00> : vector<8x128xf32>
    %101 = tpu.matmul %99, %100, %cst_39 {dimension_numbers = #tpu.dot_dimension_numbers<[1], [0], [0], [1], [0, 0, 1, 1], [], []>} : vector<8x32xbf16>, vector<32x128xbf16>, vector<8x128xf32> -> vector<8x128xf32>
    %c0_40 = arith.constant 0 : index
    %c0_41 = arith.constant 0 : index
    %102 = vector.load %arg11[%c0_40, %c0_41] : memref<1x128xf32, #tpu.memory_space<vmem>>, vector<1x128xf32>
    %103 = vector.shape_cast %102 : vector<1x128xf32> to vector<128xf32>
    %104 = vector.shape_cast %103 : vector<128xf32> to vector<1x128xf32>
    %105 = vector.broadcast %104 : vector<1x128xf32> to vector<8x128xf32>
    %106 = arith.addf %101, %105 : vector<8x128xf32>
    %cst_42 = arith.constant 5.000000e-01 : f32
    %107 = vector.broadcast %cst_42 : f32 to vector<8x128xf32>
    %108 = arith.mulf %107, %106 : vector<8x128xf32>
    %cst_43 = arith.constant 4.471500e-02 : f32
    %109 = vector.broadcast %cst_43 : f32 to vector<8x128xf32>
    %110 = arith.mulf %109, %106 : vector<8x128xf32>
    %111 = arith.mulf %110, %106 : vector<8x128xf32>
    %112 = arith.mulf %111, %106 : vector<8x128xf32>
    %113 = arith.addf %106, %112 : vector<8x128xf32>
    %cst_44 = arith.constant 0.797884583 : f32
    %114 = vector.broadcast %cst_44 : f32 to vector<8x128xf32>
    %115 = arith.mulf %114, %113 : vector<8x128xf32>
    %116 = math.tanh %115 : vector<8x128xf32>
    %cst_45 = arith.constant 1.000000e+00 : f32
    %117 = vector.broadcast %cst_45 : f32 to vector<8x128xf32>
    %118 = arith.addf %117, %116 : vector<8x128xf32>
    %119 = arith.mulf %108, %118 : vector<8x128xf32>
    %120 = arith.truncf %119 : vector<8x128xf32> to vector<8x128xbf16>
    %c0_46 = arith.constant 0 : index
    %c0_47 = arith.constant 0 : index
    %121 = vector.load %arg12[%c0_46, %c0_47] : memref<128x32xbf16, #tpu.memory_space<vmem>>, vector<128x32xbf16>
    %cst_48 = arith.constant dense<0.000000e+00> : vector<8x32xf32>
    %122 = tpu.matmul %120, %121, %cst_48 {dimension_numbers = #tpu.dot_dimension_numbers<[1], [0], [0], [1], [0, 0, 1, 1], [], []>} : vector<8x128xbf16>, vector<128x32xbf16>, vector<8x32xf32> -> vector<8x32xf32>
    %c0_49 = arith.constant 0 : index
    %c0_50 = arith.constant 0 : index
    %123 = vector.load %arg13[%c0_49, %c0_50] : memref<1x32xf32, #tpu.memory_space<vmem>>, vector<1x32xf32>
    %124 = vector.shape_cast %123 : vector<1x32xf32> to vector<32xf32>
    %125 = vector.shape_cast %124 : vector<32xf32> to vector<1x32xf32>
    %126 = vector.broadcast %125 : vector<1x32xf32> to vector<8x32xf32>
    %127 = arith.addf %122, %126 : vector<8x32xf32>
    %128 = arith.addf %72, %127 : vector<8x32xf32>
    %129 = vector.shape_cast %128 : vector<8x32xf32> to vector<1x8x32xf32>
    %c0_51 = arith.constant 0 : index
    %c0_52 = arith.constant 0 : index
    %c0_53 = arith.constant 0 : index
    %130 = vector.load %arg14[%c0_51, %c0_52, %c0_53] : memref<1x8x32xf32, #tpu.memory_space<vmem>>, vector<1x8x32xf32>
    tpu.vector_store %arg14[%c0_51, %c0_52, %c0_53], %129 {strides = array<i32>} : memref<1x8x32xf32, #tpu.memory_space<vmem>>, vector<1x8x32xf32>,
    return
  }
  func.func @transform_0(%arg0: i32) -> (i32, i32, i32) {
    %c0_i32 = arith.constant 0 : i32
    %c0_i32_0 = arith.constant 0 : i32
    %c0_i32_1 = arith.constant 0 : i32
    return %arg0, %c0_i32, %c0_i32_0 : i32, i32, i32
  }
  func.func @transform_1(%arg0: i32) -> (i32, i32) {
    %c0_i32 = arith.constant 0 : i32
    %c0_i32_0 = arith.constant 0 : i32
    %c0_i32_1 = arith.constant 0 : i32
    return %c0_i32, %c0_i32_0 : i32, i32
  }
  func.func @transform_2(%arg0: i32) -> (i32, i32) {
    %c0_i32 = arith.constant 0 : i32
    %c0_i32_0 = arith.constant 0 : i32
    %c0_i32_1 = arith.constant 0 : i32
    return %c0_i32, %c0_i32_0 : i32, i32
  }
  func.func @transform_3(%arg0: i32) -> (i32, i32) {
    %c0_i32 = arith.constant 0 : i32
    %c0_i32_0 = arith.constant 0 : i32
    %c0_i32_1 = arith.constant 0 : i32
    return %c0_i32, %c0_i32_0 : i32, i32
  }
  func.func @transform_4(%arg0: i32) -> (i32, i32) {
    %c0_i32 = arith.constant 0 : i32
    %c0_i32_0 = arith.constant 0 : i32
    %c0_i32_1 = arith.constant 0 : i32
    return %c0_i32, %c0_i32_0 : i32, i32
  }
  func.func @transform_5(%arg0: i32) -> (i32, i32) {
    %c0_i32 = arith.constant 0 : i32
    %c0_i32_0 = arith.constant 0 : i32
    %c0_i32_1 = arith.constant 0 : i32
    return %c0_i32, %c0_i32_0 : i32, i32
  }
  func.func @transform_6(%arg0: i32) -> (i32, i32) {
    %c0_i32 = arith.constant 0 : i32
    %c0_i32_0 = arith.constant 0 : i32
    %c0_i32_1 = arith.constant 0 : i32
    return %c0_i32, %c0_i32_0 : i32, i32
  }
  func.func @transform_7(%arg0: i32) -> (i32, i32) {
    %c0_i32 = arith.constant 0 : i32
    %c0_i32_0 = arith.constant 0 : i32
    %c0_i32_1 = arith.constant 0 : i32
    return %c0_i32, %c0_i32_0 : i32, i32
  }
  func.func @transform_8(%arg0: i32) -> (i32, i32) {
    %c0_i32 = arith.constant 0 : i32
    %c0_i32_0 = arith.constant 0 : i32
    %c0_i32_1 = arith.constant 0 : i32
    return %c0_i32, %c0_i32_0 : i32, i32
  }
  func.func @transform_9(%arg0: i32) -> (i32, i32) {
    %c0_i32 = arith.constant 0 : i32
    %c0_i32_0 = arith.constant 0 : i32
    %c0_i32_1 = arith.constant 0 : i32
    return %c0_i32, %c0_i32_0 : i32, i32
  }
  func.func @transform_10(%arg0: i32) -> (i32, i32) {
    %c0_i32 = arith.constant 0 : i32
    %c0_i32_0 = arith.constant 0 : i32
    %c0_i32_1 = arith.constant 0 : i32
    return %c0_i32, %c0_i32_0 : i32, i32
  }
  func.func @transform_11(%arg0: i32) -> (i32, i32) {
    %c0_i32 = arith.constant 0 : i32
    %c0_i32_0 = arith.constant 0 : i32
    %c0_i32_1 = arith.constant 0 : i32
    return %c0_i32, %c0_i32_0 : i32, i32
  }
  func.func @transform_12(%arg0: i32) -> (i32, i32) {
    %c0_i32 = arith.constant 0 : i32
    %c0_i32_0 = arith.constant 0 : i32
    %c0_i32_1 = arith.constant 0 : i32
    return %c0_i32, %c0_i32_0 : i32, i32
  }
  func.func @transform_13(%arg0: i32) -> (i32, i32, i32) {
    %c0_i32 = arith.constant 0 : i32
    %c0_i32_0 = arith.constant 0 : i32
    %c0_i32_1 = arith.constant 0 : i32
    return %arg0, %c0_i32, %c0_i32_0 : i32, i32, i32
  }
  func.func @transform_14(%arg0: i32) -> (i32, i32, i32, i32) {
    %c0_i32 = arith.constant 0 : i32
    %c0_i32_0 = arith.constant 0 : i32
    %c0_i32_1 = arith.constant 0 : i32
    %c0_i32_2 = arith.constant 0 : i32
    return %arg0, %c0_i32, %c0_i32_0, %c0_i32_1 : i32, i32, i32, i32
  }
}

module attributes {stable_mosaic.version = 11 : i64} {
  func.func @kernel(%arg0: i32, %arg1: memref<1x8x32xf32, #tpu.memory_space<vmem>>, %arg2: memref<1x32xf32, #tpu.memory_space<vmem>>, %arg3: memref<1x32xf32, #tpu.memory_space<vmem>>, %arg4: memref<32x96xbf16, #tpu.memory_space<vmem>>, %arg5: memref<1x96xf32, #tpu.memory_space<vmem>>, %arg6: memref<32x32xbf16, #tpu.memory_space<vmem>>, %arg7: memref<1x32xf32, #tpu.memory_space<vmem>>, %arg8: memref<1x32xf32, #tpu.memory_space<vmem>>, %arg9: memref<1x32xf32, #tpu.memory_space<vmem>>, %arg10: memref<32x128xbf16, #tpu.memory_space<vmem>>, %arg11: memref<1x128xf32, #tpu.memory_space<vmem>>, %arg12: memref<128x32xbf16, #tpu.memory_space<vmem>>, %arg13: memref<1x32xf32, #tpu.memory_space<vmem>>, %arg14: memref<1x8x32xf32, #tpu.memory_space<vmem>>, %arg15: memref<1x4x8x8xf32, #tpu.memory_space<vmem>>) attributes {dimension_semantics = [#tpu.dimension_semantics<parallel>], iteration_bounds = array<i64: 2>, scalar_prefetch = 0 : i64, scratch_operands = 0 : i64, tpu.core_type = #tpu.core_type<tc>, window_params = [{transform_indices = @transform_0, window_bounds = array<i64: 1, 8, 32>}, {pipeline_mode = #tpu.pipeline_mode<synchronous>, transform_indices = @transform_1, window_bounds = array<i64: 1, 32>}, {pipeline_mode = #tpu.pipeline_mode<synchronous>, transform_indices = @transform_2, window_bounds = array<i64: 1, 32>}, {pipeline_mode = #tpu.pipeline_mode<synchronous>, transform_indices = @transform_3, window_bounds = array<i64: 32, 96>}, {pipeline_mode = #tpu.pipeline_mode<synchronous>, transform_indices = @transform_4, window_bounds = array<i64: 1, 96>}, {pipeline_mode = #tpu.pipeline_mode<synchronous>, transform_indices = @transform_5, window_bounds = array<i64: 32, 32>}, {pipeline_mode = #tpu.pipeline_mode<synchronous>, transform_indices = @transform_6, window_bounds = array<i64: 1, 32>}, {pipeline_mode = #tpu.pipeline_mode<synchronous>, transform_indices = @transform_7, window_bounds = array<i64: 1, 32>}, {pipeline_mode = #tpu.pipeline_mode<synchronous>, transform_indices = @transform_8, window_bounds = array<i64: 1, 32>}, {pipeline_mode = #tpu.pipeline_mode<synchronous>, transform_indices = @transform_9, window_bounds = array<i64: 32, 128>}, {pipeline_mode = #tpu.pipeline_mode<synchronous>, transform_indices = @transform_10, window_bounds = array<i64: 1, 128>}, {pipeline_mode = #tpu.pipeline_mode<synchronous>, transform_indices = @transform_11, window_bounds = array<i64: 128, 32>}, {pipeline_mode = #tpu.pipeline_mode<synchronous>, transform_indices = @transform_12, window_bounds = array<i64: 1, 32>}, {transform_indices = @transform_13, window_bounds = array<i64: 1, 8, 32>}, {transform_indices = @transform_14, window_bounds = array<i64: 1, 4, 8, 8>}]} {
    %c0 = arith.constant 0 : index
    %c0_0 = arith.constant 0 : index
    %c0_1 = arith.constant 0 : index
    %0 = vector.load %arg1[%c0, %c0_0, %c0_1] : memref<1x8x32xf32, #tpu.memory_space<vmem>>, vector<1x8x32xf32>
    %1 = vector.shape_cast %0 : vector<1x8x32xf32> to vector<8x32xf32>
    %c0_2 = arith.constant 0 : index
    %c0_3 = arith.constant 0 : index
    %2 = vector.load %arg2[%c0_2, %c0_3] : memref<1x32xf32, #tpu.memory_space<vmem>>, vector<1x32xf32>
    %3 = vector.shape_cast %2 : vector<1x32xf32> to vector<32xf32>
    %c0_4 = arith.constant 0 : index
    %c0_5 = arith.constant 0 : index
    %4 = vector.load %arg3[%c0_4, %c0_5] : memref<1x32xf32, #tpu.memory_space<vmem>>, vector<1x32xf32>
    %5 = vector.shape_cast %4 : vector<1x32xf32> to vector<32xf32>
    %cst = arith.constant dense<0.000000e+00> : vector<8xf32>
    %6 = vector.multi_reduction <add>, %1, %cst [1] : vector<8x32xf32> to vector<8xf32>
    %7 = vector.shape_cast %6 : vector<8xf32> to vector<8x1xf32>
    %cst_6 = arith.constant 3.200000e+01 : f32
    %8 = vector.broadcast %cst_6 : f32 to vector<8x1xf32>
    %9 = arith.divf %7, %8 : vector<8x1xf32>
    %10 = vector.broadcast %9 : vector<8x1xf32> to vector<8x32xf32>
    %11 = arith.subf %1, %10 : vector<8x32xf32>
    %12 = arith.mulf %11, %11 : vector<8x32xf32>
    %cst_7 = arith.constant dense<0.000000e+00> : vector<8xf32>
    %13 = vector.multi_reduction <add>, %12, %cst_7 [1] : vector<8x32xf32> to vector<8xf32>
    %14 = vector.shape_cast %13 : vector<8xf32> to vector<8x1xf32>
    %cst_8 = arith.constant 3.200000e+01 : f32
    %15 = vector.broadcast %cst_8 : f32 to vector<8x1xf32>
    %16 = arith.divf %14, %15 : vector<8x1xf32>
    %cst_9 = arith.constant 9.99999974E-6 : f32
    %17 = vector.broadcast %cst_9 : f32 to vector<8x1xf32>
    %18 = arith.addf %16, %17 : vector<8x1xf32>
    %19 = math.rsqrt %18 : vector<8x1xf32>
    %20 = vector.broadcast %19 : vector<8x1xf32> to vector<8x32xf32>
    %21 = arith.mulf %11, %20 : vector<8x32xf32>
    %22 = vector.shape_cast %3 : vector<32xf32> to vector<1x32xf32>
    %23 = vector.broadcast %22 : vector<1x32xf32> to vector<8x32xf32>
    %24 = arith.mulf %21, %23 : vector<8x32xf32>
    %25 = vector.shape_cast %5 : vector<32xf32> to vector<1x32xf32>
    %26 = vector.broadcast %25 : vector<1x32xf32> to vector<8x32xf32>
    %27 = arith.addf %24, %26 : vector<8x32xf32>
    %28 = arith.truncf %27 : vector<8x32xf32> to vector<8x32xbf16>
    %c0_10 = arith.constant 0 : index
    %c0_11 = arith.constant 0 : index
    %29 = vector.load %arg4[%c0_10, %c0_11] : memref<32x96xbf16, #tpu.memory_space<vmem>>, vector<32x96xbf16>
    %cst_12 = arith.constant dense<0.000000e+00> : vector<8x96xf32>
    %30 = tpu.matmul %28, %29, %cst_12 {dimension_numbers = #tpu.dot_dimension_numbers<[1], [0], [0], [1], [0, 0, 1, 1], [], []>} : vector<8x32xbf16>, vector<32x96xbf16>, vector<8x96xf32> -> vector<8x96xf32>
    %c0_13 = arith.constant 0 : index
    %c0_14 = arith.constant 0 : index
    %31 = vector.load %arg5[%c0_13, %c0_14] : memref<1x96xf32, #tpu.memory_space<vmem>>, vector<1x96xf32>
    %32 = vector.shape_cast %31 : vector<1x96xf32> to vector<96xf32>
    %33 = vector.shape_cast %32 : vector<96xf32> to vector<1x96xf32>
    %34 = vector.broadcast %33 : vector<1x96xf32> to vector<8x96xf32>
    %35 = arith.addf %30, %34 : vector<8x96xf32>
    %36 = arith.truncf %35 : vector<8x96xf32> to vector<8x96xbf16>
    %37 = vector.extract_strided_slice %36 {offsets = [0, 0], sizes = [8, 8], strides = [1, 1]} : vector<8x96xbf16> to vector<8x8xbf16>
    %38 = vector.extract_strided_slice %36 {offsets = [0, 32], sizes = [8, 8], strides = [1, 1]} : vector<8x96xbf16> to vector<8x8xbf16>
    %39 = vector.extract_strided_slice %36 {offsets = [0, 64], sizes = [8, 8], strides = [1, 1]} : vector<8x96xbf16> to vector<8x8xbf16>
    %cst_15 = arith.constant dense<0.000000e+00> : vector<8x8xf32>
    %40 = tpu.matmul %37, %38, %cst_15 {dimension_numbers = #tpu.dot_dimension_numbers<[1], [1], [0], [0], [0, 0, 1, 0], [], []>} : vector<8x8xbf16>, vector<8x8xbf16>, vector<8x8xf32> -> vector<8x8xf32>
    %cst_16 = arith.constant dense<0xFF800000> : vector<8xf32>
    %41 = vector.multi_reduction <maximumf>, %40, %cst_16 [1] : vector<8x8xf32> to vector<8xf32>
    %42 = vector.shape_cast %41 : vector<8xf32> to vector<8x1xf32>
    %43 = vector.broadcast %42 : vector<8x1xf32> to vector<8x8xf32>
    %44 = arith.subf %40, %43 : vector<8x8xf32>
    %45 = math.exp %44 : vector<8x8xf32>
    %cst_17 = arith.constant dense<0.000000e+00> : vector<8xf32>
    %46 = vector.multi_reduction <add>, %45, %cst_17 [1] : vector<8x8xf32> to vector<8xf32>
    %47 = vector.shape_cast %46 : vector<8xf32> to vector<8x1xf32>
    %48 = tpu.reciprocal %47 {approx = true} : vector<8x1xf32> -> vector<8x1xf32>
    %49 = vector.broadcast %48 : vector<8x1xf32> to vector<8x8xf32>
    %50 = arith.mulf %45, %49 : vector<8x8xf32>
    %c0_18 = arith.constant 0 : index
    %c0_19 = arith.constant 0 : index
    %c0_20 = arith.constant 0 : index
    %c0_21 = arith.constant 0 : index
    %51 = vector.load %arg15[%c0_18, %c0_19, %c0_20, %c0_21] : memref<1x4x8x8xf32, #tpu.memory_space<vmem>>, vector<1x1x8x8xf32>
    %52 = vector.shape_cast %51 : vector<1x1x8x8xf32> to vector<8x8xf32>
    %53 = vector.shape_cast %50 : vector<8x8xf32> to vector<1x1x8x8xf32>
    tpu.vector_store %arg15[%c0_18, %c0_19, %c0_20, %c0_21], %53 {strides = array<i32>} : memref<1x4x8x8xf32, #tpu.memory_space<vmem>>, vector<1x1x8x8xf32>,
    %54 = arith.truncf %50 : vector<8x8xf32> to vector<8x8xbf16>
    %cst_22 = arith.constant dense<0.000000e+00> : vector<8x8xf32>
    %55 = tpu.matmul %54, %39, %cst_22 {dimension_numbers = #tpu.dot_dimension_numbers<[1], [0], [0], [1], [0, 0, 1, 1], [], []>} : vector<8x8xbf16>, vector<8x8xbf16>, vector<8x8xf32> -> vector<8x8xf32>
    %56 = vector.extract_strided_slice %36 {offsets = [0, 8], sizes = [8, 8], strides = [1, 1]} : vector<8x96xbf16> to vector<8x8xbf16>
    %57 = vector.extract_strided_slice %36 {offsets = [0, 40], sizes = [8, 8], strides = [1, 1]} : vector<8x96xbf16> to vector<8x8xbf16>
    %58 = vector.extract_strided_slice %36 {offsets = [0, 72], sizes = [8, 8], strides = [1, 1]} : vector<8x96xbf16> to vector<8x8xbf16>
    %cst_23 = arith.constant dense<0.000000e+00> : vector<8x8xf32>
    %59 = tpu.matmul %56, %57, %cst_23 {dimension_numbers = #tpu.dot_dimension_numbers<[1], [1], [0], [0], [0, 0, 1, 0], [], []>} : vector<8x8xbf16>, vector<8x8xbf16>, vector<8x8xf32> -> vector<8x8xf32>
    %cst_24 = arith.constant dense<0xFF800000> : vector<8xf32>
    %60 = vector.multi_reduction <maximumf>, %59, %cst_24 [1] : vector<8x8xf32> to vector<8xf32>
    %61 = vector.shape_cast %60 : vector<8xf32> to vector<8x1xf32>
    %62 = vector.broadcast %61 : vector<8x1xf32> to vector<8x8xf32>
    %63 = arith.subf %59, %62 : vector<8x8xf32>
    %64 = math.exp %63 : vector<8x8xf32>
    %cst_25 = arith.constant dense<0.000000e+00> : vector<8xf32>
    %65 = vector.multi_reduction <add>, %64, %cst_25 [1] : vector<8x8xf32> to vector<8xf32>
    %66 = vector.shape_cast %65 : vector<8xf32> to vector<8x1xf32>
    %67 = tpu.reciprocal %66 {approx = true} : vector<8x1xf32> -> vector<8x1xf32>
    %68 = vector.broadcast %67 : vector<8x1xf32> to vector<8x8xf32>
    %69 = arith.mulf %64, %68 : vector<8x8xf32>
    %c0_26 = arith.constant 0 : index
    %c1 = arith.constant 1 : index
    %c0_27 = arith.constant 0 : index
    %c0_28 = arith.constant 0 : index
    %70 = vector.load %arg15[%c0_26, %c1, %c0_27, %c0_28] : memref<1x4x8x8xf32, #tpu.memory_space<vmem>>, vector<1x1x8x8xf32>
    %71 = vector.shape_cast %70 : vector<1x1x8x8xf32> to vector<8x8xf32>
    %72 = vector.shape_cast %69 : vector<8x8xf32> to vector<1x1x8x8xf32>
    tpu.vector_store %arg15[%c0_26, %c1, %c0_27, %c0_28], %72 {strides = array<i32>} : memref<1x4x8x8xf32, #tpu.memory_space<vmem>>, vector<1x1x8x8xf32>,
    %73 = arith.truncf %69 : vector<8x8xf32> to vector<8x8xbf16>
    %cst_29 = arith.constant dense<0.000000e+00> : vector<8x8xf32>
    %74 = tpu.matmul %73, %58, %cst_29 {dimension_numbers = #tpu.dot_dimension_numbers<[1], [0], [0], [1], [0, 0, 1, 1], [], []>} : vector<8x8xbf16>, vector<8x8xbf16>, vector<8x8xf32> -> vector<8x8xf32>
    %75 = vector.extract_strided_slice %36 {offsets = [0, 16], sizes = [8, 8], strides = [1, 1]} : vector<8x96xbf16> to vector<8x8xbf16>
    %76 = vector.extract_strided_slice %36 {offsets = [0, 48], sizes = [8, 8], strides = [1, 1]} : vector<8x96xbf16> to vector<8x8xbf16>
    %77 = vector.extract_strided_slice %36 {offsets = [0, 80], sizes = [8, 8], strides = [1, 1]} : vector<8x96xbf16> to vector<8x8xbf16>
    %cst_30 = arith.constant dense<0.000000e+00> : vector<8x8xf32>
    %78 = tpu.matmul %75, %76, %cst_30 {dimension_numbers = #tpu.dot_dimension_numbers<[1], [1], [0], [0], [0, 0, 1, 0], [], []>} : vector<8x8xbf16>, vector<8x8xbf16>, vector<8x8xf32> -> vector<8x8xf32>
    %cst_31 = arith.constant dense<0xFF800000> : vector<8xf32>
    %79 = vector.multi_reduction <maximumf>, %78, %cst_31 [1] : vector<8x8xf32> to vector<8xf32>
    %80 = vector.shape_cast %79 : vector<8xf32> to vector<8x1xf32>
    %81 = vector.broadcast %80 : vector<8x1xf32> to vector<8x8xf32>
    %82 = arith.subf %78, %81 : vector<8x8xf32>
    %83 = math.exp %82 : vector<8x8xf32>
    %cst_32 = arith.constant dense<0.000000e+00> : vector<8xf32>
    %84 = vector.multi_reduction <add>, %83, %cst_32 [1] : vector<8x8xf32> to vector<8xf32>
    %85 = vector.shape_cast %84 : vector<8xf32> to vector<8x1xf32>
    %86 = tpu.reciprocal %85 {approx = true} : vector<8x1xf32> -> vector<8x1xf32>
    %87 = vector.broadcast %86 : vector<8x1xf32> to vector<8x8xf32>
    %88 = arith.mulf %83, %87 : vector<8x8xf32>
    %c0_33 = arith.constant 0 : index
    %c2 = arith.constant 2 : index
    %c0_34 = arith.constant 0 : index
    %c0_35 = arith.constant 0 : index
    %89 = vector.load %arg15[%c0_33, %c2, %c0_34, %c0_35] : memref<1x4x8x8xf32, #tpu.memory_space<vmem>>, vector<1x1x8x8xf32>
    %90 = vector.shape_cast %89 : vector<1x1x8x8xf32> to vector<8x8xf32>
    %91 = vector.shape_cast %88 : vector<8x8xf32> to vector<1x1x8x8xf32>
    tpu.vector_store %arg15[%c0_33, %c2, %c0_34, %c0_35], %91 {strides = array<i32>} : memref<1x4x8x8xf32, #tpu.memory_space<vmem>>, vector<1x1x8x8xf32>,
    %92 = arith.truncf %88 : vector<8x8xf32> to vector<8x8xbf16>
    %cst_36 = arith.constant dense<0.000000e+00> : vector<8x8xf32>
    %93 = tpu.matmul %92, %77, %cst_36 {dimension_numbers = #tpu.dot_dimension_numbers<[1], [0], [0], [1], [0, 0, 1, 1], [], []>} : vector<8x8xbf16>, vector<8x8xbf16>, vector<8x8xf32> -> vector<8x8xf32>
    %94 = vector.extract_strided_slice %36 {offsets = [0, 24], sizes = [8, 8], strides = [1, 1]} : vector<8x96xbf16> to vector<8x8xbf16>
    %95 = vector.extract_strided_slice %36 {offsets = [0, 56], sizes = [8, 8], strides = [1, 1]} : vector<8x96xbf16> to vector<8x8xbf16>
    %96 = vector.extract_strided_slice %36 {offsets = [0, 88], sizes = [8, 8], strides = [1, 1]} : vector<8x96xbf16> to vector<8x8xbf16>
    %cst_37 = arith.constant dense<0.000000e+00> : vector<8x8xf32>
    %97 = tpu.matmul %94, %95, %cst_37 {dimension_numbers = #tpu.dot_dimension_numbers<[1], [1], [0], [0], [0, 0, 1, 0], [], []>} : vector<8x8xbf16>, vector<8x8xbf16>, vector<8x8xf32> -> vector<8x8xf32>
    %cst_38 = arith.constant dense<0xFF800000> : vector<8xf32>
    %98 = vector.multi_reduction <maximumf>, %97, %cst_38 [1] : vector<8x8xf32> to vector<8xf32>
    %99 = vector.shape_cast %98 : vector<8xf32> to vector<8x1xf32>
    %100 = vector.broadcast %99 : vector<8x1xf32> to vector<8x8xf32>
    %101 = arith.subf %97, %100 : vector<8x8xf32>
    %102 = math.exp %101 : vector<8x8xf32>
    %cst_39 = arith.constant dense<0.000000e+00> : vector<8xf32>
    %103 = vector.multi_reduction <add>, %102, %cst_39 [1] : vector<8x8xf32> to vector<8xf32>
    %104 = vector.shape_cast %103 : vector<8xf32> to vector<8x1xf32>
    %105 = tpu.reciprocal %104 {approx = true} : vector<8x1xf32> -> vector<8x1xf32>
    %106 = vector.broadcast %105 : vector<8x1xf32> to vector<8x8xf32>
    %107 = arith.mulf %102, %106 : vector<8x8xf32>
    %c0_40 = arith.constant 0 : index
    %c3 = arith.constant 3 : index
    %c0_41 = arith.constant 0 : index
    %c0_42 = arith.constant 0 : index
    %108 = vector.load %arg15[%c0_40, %c3, %c0_41, %c0_42] : memref<1x4x8x8xf32, #tpu.memory_space<vmem>>, vector<1x1x8x8xf32>
    %109 = vector.shape_cast %108 : vector<1x1x8x8xf32> to vector<8x8xf32>
    %110 = vector.shape_cast %107 : vector<8x8xf32> to vector<1x1x8x8xf32>
    tpu.vector_store %arg15[%c0_40, %c3, %c0_41, %c0_42], %110 {strides = array<i32>} : memref<1x4x8x8xf32, #tpu.memory_space<vmem>>, vector<1x1x8x8xf32>,
    %111 = arith.truncf %107 : vector<8x8xf32> to vector<8x8xbf16>
    %cst_43 = arith.constant dense<0.000000e+00> : vector<8x8xf32>
    %112 = tpu.matmul %111, %96, %cst_43 {dimension_numbers = #tpu.dot_dimension_numbers<[1], [0], [0], [1], [0, 0, 1, 1], [], []>} : vector<8x8xbf16>, vector<8x8xbf16>, vector<8x8xf32> -> vector<8x8xf32>
    %113 = tpu.concatenate %55, %74, %93, %112 in 1 : vector<8x8xf32>, vector<8x8xf32>, vector<8x8xf32>, vector<8x8xf32> -> vector<8x32xf32>
    %114 = arith.truncf %113 : vector<8x32xf32> to vector<8x32xbf16>
    %c0_44 = arith.constant 0 : index
    %c0_45 = arith.constant 0 : index
    %115 = vector.load %arg6[%c0_44, %c0_45] : memref<32x32xbf16, #tpu.memory_space<vmem>>, vector<32x32xbf16>
    %cst_46 = arith.constant dense<0.000000e+00> : vector<8x32xf32>
    %116 = tpu.matmul %114, %115, %cst_46 {dimension_numbers = #tpu.dot_dimension_numbers<[1], [0], [0], [1], [0, 0, 1, 1], [], []>} : vector<8x32xbf16>, vector<32x32xbf16>, vector<8x32xf32> -> vector<8x32xf32>
    %c0_47 = arith.constant 0 : index
    %c0_48 = arith.constant 0 : index
    %117 = vector.load %arg7[%c0_47, %c0_48] : memref<1x32xf32, #tpu.memory_space<vmem>>, vector<1x32xf32>
    %118 = vector.shape_cast %117 : vector<1x32xf32> to vector<32xf32>
    %119 = vector.shape_cast %118 : vector<32xf32> to vector<1x32xf32>
    %120 = vector.broadcast %119 : vector<1x32xf32> to vector<8x32xf32>
    %121 = arith.addf %116, %120 : vector<8x32xf32>
    %122 = arith.addf %1, %121 : vector<8x32xf32>
    %c0_49 = arith.constant 0 : index
    %c0_50 = arith.constant 0 : index
    %123 = vector.load %arg8[%c0_49, %c0_50] : memref<1x32xf32, #tpu.memory_space<vmem>>, vector<1x32xf32>
    %124 = vector.shape_cast %123 : vector<1x32xf32> to vector<32xf32>
    %c0_51 = arith.constant 0 : index
    %c0_52 = arith.constant 0 : index
    %125 = vector.load %arg9[%c0_51, %c0_52] : memref<1x32xf32, #tpu.memory_space<vmem>>, vector<1x32xf32>
    %126 = vector.shape_cast %125 : vector<1x32xf32> to vector<32xf32>
    %cst_53 = arith.constant dense<0.000000e+00> : vector<8xf32>
    %127 = vector.multi_reduction <add>, %122, %cst_53 [1] : vector<8x32xf32> to vector<8xf32>
    %128 = vector.shape_cast %127 : vector<8xf32> to vector<8x1xf32>
    %cst_54 = arith.constant 3.200000e+01 : f32
    %129 = vector.broadcast %cst_54 : f32 to vector<8x1xf32>
    %130 = arith.divf %128, %129 : vector<8x1xf32>
    %131 = vector.broadcast %130 : vector<8x1xf32> to vector<8x32xf32>
    %132 = arith.subf %122, %131 : vector<8x32xf32>
    %133 = arith.mulf %132, %132 : vector<8x32xf32>
    %cst_55 = arith.constant dense<0.000000e+00> : vector<8xf32>
    %134 = vector.multi_reduction <add>, %133, %cst_55 [1] : vector<8x32xf32> to vector<8xf32>
    %135 = vector.shape_cast %134 : vector<8xf32> to vector<8x1xf32>
    %cst_56 = arith.constant 3.200000e+01 : f32
    %136 = vector.broadcast %cst_56 : f32 to vector<8x1xf32>
    %137 = arith.divf %135, %136 : vector<8x1xf32>
    %cst_57 = arith.constant 9.99999974E-6 : f32
    %138 = vector.broadcast %cst_57 : f32 to vector<8x1xf32>
    %139 = arith.addf %137, %138 : vector<8x1xf32>
    %140 = math.rsqrt %139 : vector<8x1xf32>
    %141 = vector.broadcast %140 : vector<8x1xf32> to vector<8x32xf32>
    %142 = arith.mulf %132, %141 : vector<8x32xf32>
    %143 = vector.shape_cast %124 : vector<32xf32> to vector<1x32xf32>
    %144 = vector.broadcast %143 : vector<1x32xf32> to vector<8x32xf32>
    %145 = arith.mulf %142, %144 : vector<8x32xf32>
    %146 = vector.shape_cast %126 : vector<32xf32> to vector<1x32xf32>
    %147 = vector.broadcast %146 : vector<1x32xf32> to vector<8x32xf32>
    %148 = arith.addf %145, %147 : vector<8x32xf32>
    %149 = arith.truncf %148 : vector<8x32xf32> to vector<8x32xbf16>
    %c0_58 = arith.constant 0 : index
    %c0_59 = arith.constant 0 : index
    %150 = vector.load %arg10[%c0_58, %c0_59] : memref<32x128xbf16, #tpu.memory_space<vmem>>, vector<32x128xbf16>
    %cst_60 = arith.constant dense<0.000000e+00> : vector<8x128xf32>
    %151 = tpu.matmul %149, %150, %cst_60 {dimension_numbers = #tpu.dot_dimension_numbers<[1], [0], [0], [1], [0, 0, 1, 1], [], []>} : vector<8x32xbf16>, vector<32x128xbf16>, vector<8x128xf32> -> vector<8x128xf32>
    %c0_61 = arith.constant 0 : index
    %c0_62 = arith.constant 0 : index
    %152 = vector.load %arg11[%c0_61, %c0_62] : memref<1x128xf32, #tpu.memory_space<vmem>>, vector<1x128xf32>
    %153 = vector.shape_cast %152 : vector<1x128xf32> to vector<128xf32>
    %154 = vector.shape_cast %153 : vector<128xf32> to vector<1x128xf32>
    %155 = vector.broadcast %154 : vector<1x128xf32> to vector<8x128xf32>
    %156 = arith.addf %151, %155 : vector<8x128xf32>
    %cst_63 = arith.constant 5.000000e-01 : f32
    %157 = vector.broadcast %cst_63 : f32 to vector<8x128xf32>
    %158 = arith.mulf %157, %156 : vector<8x128xf32>
    %cst_64 = arith.constant 4.471500e-02 : f32
    %159 = vector.broadcast %cst_64 : f32 to vector<8x128xf32>
    %160 = arith.mulf %159, %156 : vector<8x128xf32>
    %161 = arith.mulf %160, %156 : vector<8x128xf32>
    %162 = arith.mulf %161, %156 : vector<8x128xf32>
    %163 = arith.addf %156, %162 : vector<8x128xf32>
    %cst_65 = arith.constant 0.797884583 : f32
    %164 = vector.broadcast %cst_65 : f32 to vector<8x128xf32>
    %165 = arith.mulf %164, %163 : vector<8x128xf32>
    %166 = math.tanh %165 : vector<8x128xf32>
    %cst_66 = arith.constant 1.000000e+00 : f32
    %167 = vector.broadcast %cst_66 : f32 to vector<8x128xf32>
    %168 = arith.addf %167, %166 : vector<8x128xf32>
    %169 = arith.mulf %158, %168 : vector<8x128xf32>
    %170 = arith.truncf %169 : vector<8x128xf32> to vector<8x128xbf16>
    %c0_67 = arith.constant 0 : index
    %c0_68 = arith.constant 0 : index
    %171 = vector.load %arg12[%c0_67, %c0_68] : memref<128x32xbf16, #tpu.memory_space<vmem>>, vector<128x32xbf16>
    %cst_69 = arith.constant dense<0.000000e+00> : vector<8x32xf32>
    %172 = tpu.matmul %170, %171, %cst_69 {dimension_numbers = #tpu.dot_dimension_numbers<[1], [0], [0], [1], [0, 0, 1, 1], [], []>} : vector<8x128xbf16>, vector<128x32xbf16>, vector<8x32xf32> -> vector<8x32xf32>
    %c0_70 = arith.constant 0 : index
    %c0_71 = arith.constant 0 : index
    %173 = vector.load %arg13[%c0_70, %c0_71] : memref<1x32xf32, #tpu.memory_space<vmem>>, vector<1x32xf32>
    %174 = vector.shape_cast %173 : vector<1x32xf32> to vector<32xf32>
    %175 = vector.shape_cast %174 : vector<32xf32> to vector<1x32xf32>
    %176 = vector.broadcast %175 : vector<1x32xf32> to vector<8x32xf32>
    %177 = arith.addf %172, %176 : vector<8x32xf32>
    %178 = arith.addf %122, %177 : vector<8x32xf32>
    %179 = vector.shape_cast %178 : vector<8x32xf32> to vector<1x8x32xf32>
    %c0_72 = arith.constant 0 : index
    %c0_73 = arith.constant 0 : index
    %c0_74 = arith.constant 0 : index
    %180 = vector.load %arg14[%c0_72, %c0_73, %c0_74] : memref<1x8x32xf32, #tpu.memory_space<vmem>>, vector<1x8x32xf32>
    tpu.vector_store %arg14[%c0_72, %c0_73, %c0_74], %179 {strides = array<i32>} : memref<1x8x32xf32, #tpu.memory_space<vmem>>, vector<1x8x32xf32>,
    return
  }
  func.func @transform_0(%arg0: i32) -> (i32, i32, i32) {
    %c0_i32 = arith.constant 0 : i32
    %c0_i32_0 = arith.constant 0 : i32
    %c0_i32_1 = arith.constant 0 : i32
    return %arg0, %c0_i32, %c0_i32_0 : i32, i32, i32
  }
  func.func @transform_1(%arg0: i32) -> (i32, i32) {
    %c0_i32 = arith.constant 0 : i32
    %c0_i32_0 = arith.constant 0 : i32
    %c0_i32_1 = arith.constant 0 : i32
    return %c0_i32, %c0_i32_0 : i32, i32
  }
  func.func @transform_2(%arg0: i32) -> (i32, i32) {
    %c0_i32 = arith.constant 0 : i32
    %c0_i32_0 = arith.constant 0 : i32
    %c0_i32_1 = arith.constant 0 : i32
    return %c0_i32, %c0_i32_0 : i32, i32
  }
  func.func @transform_3(%arg0: i32) -> (i32, i32) {
    %c0_i32 = arith.constant 0 : i32
    %c0_i32_0 = arith.constant 0 : i32
    %c0_i32_1 = arith.constant 0 : i32
    return %c0_i32, %c0_i32_0 : i32, i32
  }
  func.func @transform_4(%arg0: i32) -> (i32, i32) {
    %c0_i32 = arith.constant 0 : i32
    %c0_i32_0 = arith.constant 0 : i32
    %c0_i32_1 = arith.constant 0 : i32
    return %c0_i32, %c0_i32_0 : i32, i32
  }
  func.func @transform_5(%arg0: i32) -> (i32, i32) {
    %c0_i32 = arith.constant 0 : i32
    %c0_i32_0 = arith.constant 0 : i32
    %c0_i32_1 = arith.constant 0 : i32
    return %c0_i32, %c0_i32_0 : i32, i32
  }
  func.func @transform_6(%arg0: i32) -> (i32, i32) {
    %c0_i32 = arith.constant 0 : i32
    %c0_i32_0 = arith.constant 0 : i32
    %c0_i32_1 = arith.constant 0 : i32
    return %c0_i32, %c0_i32_0 : i32, i32
  }
  func.func @transform_7(%arg0: i32) -> (i32, i32) {
    %c0_i32 = arith.constant 0 : i32
    %c0_i32_0 = arith.constant 0 : i32
    %c0_i32_1 = arith.constant 0 : i32
    return %c0_i32, %c0_i32_0 : i32, i32
  }
  func.func @transform_8(%arg0: i32) -> (i32, i32) {
    %c0_i32 = arith.constant 0 : i32
    %c0_i32_0 = arith.constant 0 : i32
    %c0_i32_1 = arith.constant 0 : i32
    return %c0_i32, %c0_i32_0 : i32, i32
  }
  func.func @transform_9(%arg0: i32) -> (i32, i32) {
    %c0_i32 = arith.constant 0 : i32
    %c0_i32_0 = arith.constant 0 : i32
    %c0_i32_1 = arith.constant 0 : i32
    return %c0_i32, %c0_i32_0 : i32, i32
  }
  func.func @transform_10(%arg0: i32) -> (i32, i32) {
    %c0_i32 = arith.constant 0 : i32
    %c0_i32_0 = arith.constant 0 : i32
    %c0_i32_1 = arith.constant 0 : i32
    return %c0_i32, %c0_i32_0 : i32, i32
  }
  func.func @transform_11(%arg0: i32) -> (i32, i32) {
    %c0_i32 = arith.constant 0 : i32
    %c0_i32_0 = arith.constant 0 : i32
    %c0_i32_1 = arith.constant 0 : i32
    return %c0_i32, %c0_i32_0 : i32, i32
  }
  func.func @transform_12(%arg0: i32) -> (i32, i32) {
    %c0_i32 = arith.constant 0 : i32
    %c0_i32_0 = arith.constant 0 : i32
    %c0_i32_1 = arith.constant 0 : i32
    return %c0_i32, %c0_i32_0 : i32, i32
  }
  func.func @transform_13(%arg0: i32) -> (i32, i32, i32) {
    %c0_i32 = arith.constant 0 : i32
    %c0_i32_0 = arith.constant 0 : i32
    %c0_i32_1 = arith.constant 0 : i32
    return %arg0, %c0_i32, %c0_i32_0 : i32, i32, i32
  }
  func.func @transform_14(%arg0: i32) -> (i32, i32, i32, i32) {
    %c0_i32 = arith.constant 0 : i32
    %c0_i32_0 = arith.constant 0 : i32
    %c0_i32_1 = arith.constant 0 : i32
    %c0_i32_2 = arith.constant 0 : i32
    return %arg0, %c0_i32, %c0_i32_0, %c0_i32_1 : i32, i32, i32, i32
  }
}

</mosaic_0001>

<bundles_post_ra>
// kernel: tpu_custom_call.1
= control target key start
LH: loop header
LB: loop body
LE: loop exit
PB: predicated region body
PF: predicated region fallthrough
CT: control target
= control target key end

     0   :  { %s2969_s0 = inlined_call_operand.vmem [shape: f32[2,8,32], index: 0, kind: input, shape index: {}]   ;;  %s2970_s1 = inlined_call_operand.vmem [shape: f32[1,32], index: 1, kind: input, shape index: {}]   ;;  %s2971_s2 = inlined_call_operand.vmem [shape: f32[1,32], index: 2, kind: input, shape index: {}]   ;;  %s2972_s3 = inlined_call_operand.vmem [shape: bf16[32,96], index: 3, kind: input, shape index: {}]   ;;  %s2973_s4 = inlined_call_operand.vmem [shape: f32[1,96], index: 4, kind: input, shape index: {}]   ;;  %s2974_s5 = inlined_call_operand.vmem [shape: bf16[32,32], index: 5, kind: input, shape index: {}]   ;;  %s2975_s6 = inlined_call_operand.vmem [shape: f32[1,32], index: 6, kind: input, shape index: {}]   ;;  %s2976_s7 = inlined_call_operand.vmem [shape: f32[1,32], index: 7, kind: input, shape index: {}]   ;;  %s2977_s8 = inlined_call_operand.vmem [shape: f32[1,32], index: 8, kind: input, shape index: {}]   ;;  %s2978_s9 = inlined_call_operand.vmem [shape: bf16[32,128], index: 9, kind: input, shape index: {}]   ;;  %s2979_s10 = inlined_call_operand.vmem [shape: f32[1,128], index: 10, kind: input, shape index: {}]   ;;  %s2980_s11 = inlined_call_operand.vmem [shape: bf16[128,32], index: 11, kind: input, shape index: {}]   ;;  %s2981_s12 = inlined_call_operand.vmem [shape: f32[1,32], index: 12, kind: input, shape index: {}]   ;;  %s2982_s13 = inlined_call_operand.hbm [shape: f32[2,8,32], index: 13, kind: output, shape index: {0}]   ;;  %s2983_s14 = inlined_call_operand.hbm [shape: f32[2,4,8,8], index: 14, kind: output, shape index: {1}]  }
   0x1   :  { %2985 = sst [smem:[#allocation8_spill]] %s2969_s0 }
   0x2   :  { %2986 = sst [smem:[#allocation9_spill]] %s2970_s1 }
   0x3   :  { %2987 = sst [smem:[#allocation10_spill]] %s2971_s2 }
   0x4   :  { %2988 = sst [smem:[#allocation11_spill]] %s2972_s3 }
   0x5   :  { %2989 = sst [smem:[#allocation12_spill]] %s2973_s4 }
   0x6   :  { %2990 = sst [smem:[#allocation13_spill]] %s2974_s5 }
   0x7   :  { %2991 = sst [smem:[#allocation14_spill]] %s2975_s6 }
   0x8   :  { %20 = vsyncpa [#allocation3], 0 }
   0x9   :  { %22 = vsyncpa [#allocation3 + $0x1], 0 }
   0xa   :  { %23 = vsyncpa [#allocation5], 0 }
   0xb   :  { %25 = vsyncpa [#allocation5 + $0x1], 0  ;;  %s2528_s29 = smov 0   ;;  %s2530_s30 = smov 0  }
   0xc   :  { %s2532_s15 = smov 0   ;;  %s2534_s16 = smov 0  }
   0xd LB: > { %s2549_s17 = sadd.s32 4294967295, %s2435_s16   ;;  %s2071_s18 = sadd.s32 4294967294, %s2435_s16   ;;  %s2435_s16 = sphi %s2534_s16, %s3006_s16   ;;  %s2431_s15 = sphi %s2532_s15, %s3005_s15   ;;  %s2427_s30 = sphi %s2530_s30, %s3004_s30   ;;  %s2423_s29 = sphi %s2528_s29, %s3003_s29  }
   0xe   : > { %s2553_s19 = sadd.s32 1, %s2435_s16   ;;  %s316_s20 = sadd.s32 1, %s2431_s15 }
   0xf   : > { %s313_s21 = ssub.s32 %s2435_s16, %s2553_s19  ;;  %p326_p0 = scmp.ne.s32.totalorder %s2431_s15, %s2427_s30 }
  0x10   : > { %p314_p1 = scmp.eq.s32.totalorder %s313_s21, 0  ;;  %p327_p2 = scmp.eq.s32.totalorder %s2549_s17, 1 }
  0x11   : > { %p332_p3 = scmp.ne.s32.totalorder %s2427_s30, %s2423_s29  ;;  %p333_p4 = scmp.eq.s32.totalorder %s2071_s18, 1 }
  0x12   : > { %s2564_s22 = scalar_select %p314_p1, %s2431_s15, %s316_s20  }
  0x13   : > { %p2566_p5 = por %p327_p2, %p326_p0  ;;  %p2570_p6 = por %p333_p4, %p332_p3 }
  0x14   : > { %p2074_p7 = scmp.ge.s32.totalorder %s2435_s16, 1  ;;  %p420_p8 = scmp.lt.s32.totalorder %s2435_s16, 3 }
  0x16   : > { %p421_p9 = pnand %p2074_p7, %p420_p8 }
  0x17   : > { %p470_p10 = scmp.lt.s32.totalorder (!%p421_p9), %s2549_s17, 1  ;;  %vm478_vm0 = vcmask (!%p421_p9), 261120   ;;  %s2994_s0 = sld [smem:[#allocation8_spill]] (!%p421_p9)  ;;  %v2437_v8 = vmov (!%p421_p9), 0.0   ;;  %vm2438_vm1 = vmmov (!%p421_p9), 0   ;;  %v585_v32 = vlaneseq (!%p421_p9) }
  0x18   : > { %424 = sbr.rel (%p421_p9) target bundleno = 2779 (0xadb), region = 72  ;;  %s2995_s3 = sld [smem:[#allocation11_spill]] (!%p421_p9)  ;;  %2155 = vmatprep.subr.bf16.mxu0 (!%p421_p9), %v2437_v8  ;;  %2159 = vmatprep.mubr.msk.bf16.mxu0 (!%p421_p9), %vm2438_vm1, %v2437_v8  ;;  %v2443_v30 = vmov (!%p421_p9), 1983009808   ;;  %v2444_v35 = vmov (!%p421_p9), 1934713408  }
  0x19   : > { %2175 = vmatprep.subr.bf16.mxu1 (!%p421_p9), %v2437_v8  ;;  %2177 = vmatprep.mubr.msk.bf16.mxu1 (!%p421_p9), %vm2438_vm1, %v2437_v8  ;;  %s2996_s1 = sld [smem:[#allocation9_spill]] (!%p421_p9)  ;;  %s2997_s2 = sld [smem:[#allocation10_spill]] (!%p421_p9)  ;;  %v583_v31 = vunpack.c.l.s4 (!%p421_p9), %v2443_v30  ;;  %v586_v34 = vshrl.u32 (!%p421_p9), %v585_v32, 7  ;;  %v600_v36 = vunpack.c.l.s4 (!%p421_p9), %v2444_v35  ;;  %v2445_v57 = vmov (!%p421_p9), 0  }
  0x1a   : > { %s2998_s4 = sld [smem:[#allocation12_spill]] (!%p421_p9)  ;;  %s2440_s27 = smov (!%p421_p9), 120   ;;  %vm1083_vm2 = vcmask (!%p421_p9), 64512   ;;  %vm1323_vm3 = vcmask (!%p421_p9), 1043456   ;;  %vm1654_vm4 = vcmask (!%p421_p9), 130048   ;;  %vm1656_vm5 = vcmask (!%p421_p9), 195584  }
  0x1b   : > { %s2441_s28 = smov (!%p421_p9), 112   ;;  %v584_v33 = vunpack.c.0.s8 (!%p421_p9), %v583_v31  ;;  %v601_v40 = vunpack.c.0.s8 (!%p421_p9), %v600_v36  ;;  %s2446_s20 = smov (!%p421_p9), 64  }
  0x1c   : > { %s2736_s21 = sand.u32 (!%p421_p9), 1, %s2427_s30   ;;  %s2999_s5 = sld [smem:[#allocation13_spill]] (!%p421_p9) }
  0x1d   : > { %v2628_v37 = vsub.s32 (!%p421_p9), %v584_v33, %v586_v34  ;;  %v2638_v46 = vsub.s32 (!%p421_p9), %v601_v40, %v586_v34  ;;  %s3000_s6 = sld [smem:[#allocation14_spill]] (!%p421_p9) }
  0x1e   : > { %v2305_v7 = vld [vmem:[%s2995_s3] sm:$0xff] (!%p421_p9)   ;;  %v2306_v9 = vld [vmem:[%s2995_s3 + $0x8] sm:$0xff] (!%p421_p9)  }
  0x1f   : > { %s471_s25 = scalar_select %p470_p10, %s2549_s17, 1  ;;  %2156 = vmatpush3.bf16.msra.mxu0 %v2305_v7  ;;  %v2078_v14 = vld [vmem:[%s2996_s1] ss:$0 sm:$0xff] }
  0x20   : > { %2157 = vmatprep.subr.bf16.mxu0 %v2437_v8  ;;  %v2079_v16 = vld [vmem:[%s2997_s2] ss:$0 sm:$0xff] }
  0x21   : > { %s2077_s26 = sshll.u32 %s471_s25, 3  ;;  %v2080_v20 = vld [vmem:[%s2998_s4] ss:$0 sm:$0xff]  ;;  %s2076_s25 = sshll.u32 %s2736_s21, 5 }
  0x22   : > { %s473_s18 = scalar_lea.vmem %s2994_s0, %s2077_s26  ;;  %s2439_s26 = smov 104  }
  0x23   : > { %v2581_v0 = vld [vmem:[%s473_s18] sm:$0xff]  ;;  %2158 = vmatpush3.bf16.msra.mxu0 %v2306_v9  ;;  %s2442_s18 = smov 96  }
  0x24   : > { %v479_v1 = vsel %vm478_vm0, %v2581_v0, 0.0  ;;  %2163 = vmatprep.subr.bf16.mxu0 %v2437_v8 }
  0x25   : > { %480 = vadd.xlane.f32.xlu0 %v479_v1 }
  0xb2   : > { %v481_v2 = vpop.xlane.xlu0 %480 }
  0xb3   : > { %v483_v3 = vmul.f32 0.03125, %v481_v2 }
  0xb5   : > { %v484_v4 = vsub.f32 %v2581_v0, %v483_v3 }
  0xb7   : > { %v485_v5 = vmul.f32 %v484_v4, %v484_v4 }
  0xb9   : > { %v486_v6 = vsel %vm478_vm0, %v485_v5, 0.0 }
  0xba   : > { %487 = vadd.xlane.f32.xlu0 %v486_v6 }
 0x147   : > { %v488_v10 = vpop.xlane.xlu0 %487 }
 0x148   : > { %v489_v11 = vmul.f32 0.03125, %v488_v10 }
 0x14a   : > { %v490_v12 = vadd.f32 1e-05, %v489_v11 }
 0x14c   : > { %2319 = vrsqrt.f32 %v490_v12 }
 0x156   : > { %v2320_v13 = vpop.eup %2319 }
 0x157   : > { %v492_v15 = vmul.f32 %v2320_v13, %v484_v4 }
 0x159   : > { %v499_v17 = vmul.f32 %v2078_v14, %v492_v15 }
 0x15b   : > { %v506_v18 = vadd.f32 %v2079_v16, %v499_v17 }
 0x15d   : > { %v507_v19 = vpack.c.bf16 %v506_v18, %v506_v18 }
 0x15f   : > { %2160 = vmatmul.mubr.msk.bf16.vlgmr.msra.gmra.mrb[0].mxu0 %vm478_vm0, %v507_v19 }
 0x160   : > { %2165 = vmatprep.mubr.msk.bf16.mxu0 %vm2438_vm1, %v2437_v8 }
 0x232   : > { %v568_v21 = vpop.f32.mrb[0].mxu0 }
 0x233   : > { %v569_v22 = vadd.f32 %v2080_v20, %v568_v21  ;;  %v2161_v23 = vpop.f32.mrb[1].mxu0 }
 0x234   : > { %v571_v24 = vpop.f32.mrb[2].mxu0 }
 0x235   : > { %v2613_v25 = vpack.c.bf16 %v569_v22, %v569_v22  ;;  %v2162_v26 = vpop.f32.mrb[3].mxu0 }
 0x237   : > { %580 = vrot.lane.b32.xlu0 %v2613_v25, %s2439_s26  ;;  %576 = vrot.lane.b32.xlu1 %v2613_v25, %s2440_s27  ;;  %v588_v43 = vrot.slane %v2613_v25, %v2628_v37  ;;  %s2746_s26 = scalar_lea.vmem [#allocation4], %s2076_s25  ;;  %s2447_s25 = smov 16  }
 0x238   : > { %s2984_s27 = smov 8   ;;  %s1977_s0 = sshll.u32 %s2746_s26, 4  ;;  %s2884_s0 = int_to_ptr.vmem [resolvable:$true] %s1977_s0 }
 0x23b   : > { %578 = vrot.lane.b32.xlu1 %v2613_v25, %s2441_s28  ;;  %s2449_s28 = smov 24  }
 0x23f   : > { %743 = vrot.lane.b32.xlu1 %v2613_v25, %s2442_s18 }
 0x2a9   : > { %v2619_v27 = vpop.permute.xlu1 %576  ;;  %v2625_v29 = vpop.permute.xlu0 %580 }
 0x2aa   : > { %745 = vrot.lane.b32.xlu1 %v2619_v27, %s2442_s18  ;;  %v630_v39 = vrot.slane %v2625_v29, %v2628_v37  ;;  %v622_v41 = vrot.slane %v2619_v27, %v2628_v37 }
 0x2ac   : > { %v631_v47 = vcombine.low %v622_v41, %v630_v39  ;;  %v632_v49 = vcombine.high %v622_v41, %v630_v39 }
 0x2ad   : > { %v2622_v28 = vpop.permute.xlu1 %578 }
 0x2ae   : > { %747 = vrot.lane.b32.xlu1 %v2622_v28, %s2442_s18  ;;  %v596_v38 = vrot.slane %v2622_v28, %v2628_v37  ;;  %v2647_v52 = vrot.slane %v631_v47, %v2638_v46  ;;  %v2650_v54 = vrot.slane %v632_v49, %v2638_v46 }
 0x2b0   : > { %v597_v44 = vcombine.low %v588_v43, %v596_v38  ;;  %v598_v45 = vcombine.high %v588_v43, %v596_v38  ;;  %v647_v62 = vcombine.high %v2647_v52, %v2445_v57  ;;  %v648_v1 = vcombine.high %v2650_v54, %v2445_v57 }
 0x2b1   : > { %v744_v42 = vpop.permute.xlu1 %743  ;;  %v654_v7 = vshrl.u32 %v2647_v52, 16  ;;  %v670_v13 = vshrl.u32 %v2650_v54, 16 }
 0x2b2   : > { %749 = vrot.lane.b32.xlu1 %v2625_v29, %s2442_s18  ;;  %v2641_v50 = vrot.slane %v597_v44, %v2638_v46  ;;  %v2644_v51 = vrot.slane %v598_v45, %v2638_v46  ;;  %v758_v55 = vrot.slane %v744_v42, %v2628_v37  ;;  %v662_v12 = vshrl.u32 %v647_v62, 16  ;;  %s2341_s18 = scalar_lea.vmem %s2884_s0, 512 }
 0x2b3   : > { %v678_v16 = vshrl.u32 %v648_v1, 16  ;;  %p2342_p11 = scmp.ne.s32.totalorder %s2884_s0, %s2341_s18 }
 0x2b4   : > { %v613_v58 = vcombine.high %v2641_v50, %v2445_v57  ;;  %v614_v59 = vcombine.high %v2644_v51, %v2445_v57  ;;  %v653_v2 = vshrl.u32 %v2641_v50, 16  ;;  %v669_v5 = vshrl.u32 %v2644_v51, 16 }
 0x2b5   : > { %p2343_p12 = pnand %p2342_p11, %p2566_p5 }
 0x2b6   : > { %v661_v9 = vshrl.u32 %v613_v58, 16  ;;  %v677_v10 = vshrl.u32 %v614_v59, 16  ;;  %v655_v17 = vpack.i.b16 %v654_v7, %v653_v2  ;;  %v659_v18 = vpack.i.b16 %v647_v62, %v613_v58 }
 0x2b7   : > { %v671_v20 = vpack.i.b16 %v670_v13, %v669_v5  ;;  %v675_v21 = vpack.i.b16 %v648_v1, %v614_v59  ;;  %v667_v58 = vpack.i.b16 %v2650_v54, %v2644_v51  ;;  %p2344_p13 = pneg %p2343_p12 }
 0x2b8   : > { %v663_v24 = vpack.i.b16 %v662_v12, %v661_v9  ;;  %v679_v26 = vpack.i.b16 %v678_v16, %v677_v10 }
 0x2b9   : > { %v689_v1 = vcombine.low %v659_v18, %v675_v21  ;;  %v706_v2 = vcombine.low %v655_v17, %v671_v20 }
 0x2ba   : > { %v714_v59 = vcombine.low %v663_v24, %v679_v26 }
 0x2bb   : > { %v696_v51 = vrot.slane %v689_v1, %v2628_v37  ;;  %v713_v54 = vrot.slane %v706_v2, %v2628_v37 }
 0x31c   : > { %v746_v48 = vpop.permute.xlu1 %745 }
 0x31d   : > { %v792_v6 = vrot.slane %v746_v48, %v2628_v37 }
 0x320   : > { %v748_v53 = vpop.permute.xlu1 %747 }
 0x321   : > { %v766_v56 = vrot.slane %v748_v53, %v2628_v37  ;;  %v651_v53 = vpack.i.b16 %v2647_v52, %v2641_v50 }
 0x323   : > { %v767_v60 = vcombine.low %v758_v55, %v766_v56  ;;  %v768_v61 = vcombine.high %v758_v55, %v766_v56  ;;  %v681_v5 = vcombine.low %v651_v53, %v667_v58 }
 0x324   : > { %v750_v63 = vpop.permute.xlu1 %749 }
 0x325   : > { %v775_v3 = vrot.slane %v767_v60, %v2638_v46  ;;  %v800_v4 = vrot.slane %v750_v63, %v2628_v37  ;;  %v782_v11 = vrot.slane %v768_v61, %v2638_v46  ;;  %v688_v10 = vrot.slane %v681_v5, %v2628_v37 }
 0x327   : > { %v801_v14 = vcombine.low %v792_v6, %v800_v4  ;;  %v802_v15 = vcombine.high %v792_v6, %v800_v4  ;;  %v783_v19 = vcombine.high %v775_v3, %v2445_v57  ;;  %v784_v30 = vcombine.high %v782_v11, %v2445_v57 }
 0x328   : > { %v823_v31 = vshrl.u32 %v775_v3, 16  ;;  %v839_v38 = vshrl.u32 %v782_v11, 16  ;;  %v721_v6 = vrot.slane %v714_v59, %v2628_v37  ;;  %v697_v13 = vcombine.low %v688_v10, %v696_v51 }
 0x329   : > { %v809_v22 = vrot.slane %v801_v14, %v2638_v46  ;;  %v816_v23 = vrot.slane %v802_v15, %v2638_v46  ;;  %v831_v36 = vshrl.u32 %v783_v19, 16  ;;  %v847_v45 = vshrl.u32 %v784_v30, 16 }
 0x32a   : > { %v722_v12 = vcombine.low %v713_v54, %v721_v6 }
 0x32b   : > { %v817_v32 = vcombine.high %v809_v22, %v2445_v57  ;;  %v818_v33 = vcombine.high %v816_v23, %v2445_v57  ;;  %v821_v34 = vpack.i.b16 %v809_v22, %v775_v3  ;;  %v824_v35 = vshrl.u32 %v809_v22, 16 }
 0x32c   : > { %v837_v39 = vpack.i.b16 %v816_v23, %v782_v11  ;;  %v840_v40 = vshrl.u32 %v816_v23, 16  ;;  %v704_v22 = vrot.slane %v697_v13, %v2638_v46 }
 0x32d   : > { %v825_v41 = vpack.i.b16 %v824_v35, %v823_v31  ;;  %v829_v42 = vpack.i.b16 %v817_v32, %v783_v19  ;;  %v832_v43 = vshrl.u32 %v817_v32, 16  ;;  %v845_v44 = vpack.i.b16 %v818_v33, %v784_v30 }
 0x32e   : > { %v841_v47 = vpack.i.b16 %v840_v40, %v839_v38  ;;  %v848_v48 = vshrl.u32 %v818_v33, 16  ;;  %v851_v49 = vcombine.low %v821_v34, %v837_v39  ;;  %v729_v19 = vrot.slane %v722_v12, %v2638_v46 }
 0x32f   : > { %v833_v55 = vpack.i.b16 %v832_v43, %v831_v36  ;;  %v859_v56 = vcombine.low %v829_v42, %v845_v44  ;;  %v705_v31 = vcombine.high %v704_v22, %v2445_v57  ;;  %v734_v38 = vshrl.u32 %v704_v22, 16 }
 0x330   : > { %v849_v60 = vpack.i.b16 %v848_v48, %v847_v45  ;;  %v876_v61 = vcombine.low %v825_v41, %v841_v47  ;;  %v858_v62 = vrot.slane %v851_v49, %v2628_v37  ;;  %v730_v26 = vcombine.high %v729_v19, %v2445_v57 }
 0x331   : > { %v866_v63 = vrot.slane %v859_v56, %v2628_v37  ;;  %v733_v30 = vpack.i.b16 %v729_v19, %v704_v22  ;;  %v735_v36 = vshrl.u32 %v729_v19, 16  ;;  %v740_v43 = vshrl.u32 %v705_v31, 16 }
 0x332   : > { %v884_v3 = vcombine.low %v833_v55, %v849_v60  ;;  %v883_v50 = vrot.slane %v876_v61, %v2628_v37  ;;  %v739_v34 = vpack.i.b16 %v730_v26, %v705_v31  ;;  %v741_v42 = vshrl.u32 %v730_v26, 16 }
 0x333   : > { %v867_v4 = vcombine.low %v858_v62, %v866_v63  ;;  %v736_v40 = vpack.i.b16 %v735_v36, %v734_v38 }
 0x334   : > { %v891_v52 = vrot.slane %v884_v3, %v2628_v37  ;;  %v742_v44 = vpack.i.b16 %v741_v42, %v740_v43 }
 0x335   : > { %v874_v7 = vrot.slane %v867_v4, %v2638_v46 }
 0x336   : > { %v892_v9 = vcombine.low %v883_v50, %v891_v52 }
 0x337   : > { %v875_v15 = vcombine.high %v874_v7, %v2445_v57  ;;  %v904_v23 = vshrl.u32 %v874_v7, 16 }
 0x338   : > { %v899_v11 = vrot.slane %v892_v9, %v2638_v46 }
 0x339   : > { %v910_v35 = vshrl.u32 %v875_v15, 16 }
 0x33a   : > { %v903_v14 = vpack.i.b16 %v899_v11, %v874_v7  ;;  %v900_v16 = vcombine.high %v899_v11, %v2445_v57  ;;  %v905_v20 = vshrl.u32 %v899_v11, 16 }
 0x33c   : > { %v1088_v17 = vsel %vm1083_vm2, %v903_v14, 0  ;;  %v909_v18 = vpack.i.b16 %v900_v16, %v875_v15  ;;  %v906_v24 = vpack.i.b16 %v905_v20, %v904_v23  ;;  %v911_v32 = vshrl.u32 %v900_v16, 16 }
 0x33d   : > { %2164 = vmatpush3.bf16.xpose.msra.mxu0 %v1088_v17 }
 0x33e   : > { %v1180_v21 = vsel %vm1083_vm2, %v909_v18, 0  ;;  %2169 = vmatprep.subr.bf16.mxu0 %v2437_v8  ;;  %v1134_v33 = vsel %vm1083_vm2, %v906_v24, 0  ;;  %v912_v39 = vpack.i.b16 %v911_v32, %v910_v35 }
 0x33f   : > { %2176 = vmatpush3.bf16.xpose.msra.mxu1 %v1180_v21 }
 0x340   : > { %2187 = vmatprep.subr.bf16.mxu1 %v2437_v8  ;;  %v1226_v41 = vsel %vm1083_vm2, %v912_v39, 0 }
 0x344   : > { %2166 = vmatmul.mubr.msk.bf16.vlgmr.msra.gmra.mrb[4].mxu0 %vm1083_vm2, %v733_v30 }
 0x345   : > { %2170 = vmatpush3.bf16.xpose.msra.mxu0 %v1134_v33  ;;  %2171 = vmatprep.mubr.msk.bf16.mxu0 %vm2438_vm1, %v2437_v8 }
 0x346   : > { %2178 = vmatmul.mubr.msk.bf16.vlgmr.msra.gmra.mrb[0].mxu1 %vm1083_vm2, %v739_v34  ;;  %2181 = vmatprep.subr.bf16.mxu0 %v2437_v8 }
 0x347   : > { %2189 = vmatprep.mubr.msk.bf16.mxu1 %vm2438_vm1, %v2437_v8 }
 0x34c   : > { %2172 = vmatmul.mubr.msk.bf16.vlgmr.msra.gmra.mrb[8].mxu0 %vm1083_vm2, %v736_v40 }
 0x34d   : > { %2182 = vmatpush3.bf16.xpose.msra.mxu0 %v1226_v41  ;;  %2183 = vmatprep.mubr.msk.bf16.mxu0 %vm2438_vm1, %v2437_v8 }
 0x34e   : > { %2193 = vmatprep.subr.bf16.mxu0 %v2437_v8 }
 0x354   : > { %2184 = vmatmul.mubr.msk.bf16.vlgmr.msra.gmra.mrb[12].mxu0 %vm1083_vm2, %v742_v44 }
 0x355   : > { %2195 = vmatprep.mubr.msk.bf16.mxu0 %vm2438_vm1, %v2437_v8 }
 0x417   : > { %v1124_v45 = vpop.f32.mrb[4].mxu0 }
 0x418   : > { %v2167_v47 = vpop.f32.mrb[5].mxu0  ;;  %v1268_v48 = vsel %vm1083_vm2, %v1124_v45, -inf }
 0x419   : > { %v1216_v49 = vpop.f32.mrb[0].mxu1  ;;  %1269 = vmax.xlane.f32.xlu1 %v1268_v48  ;;  %v1127_v53 = vpop.f32.mrb[6].mxu0 }
 0x41a   : > { %v2168_v55 = vpop.f32.mrb[7].mxu0  ;;  %v2179_v56 = vpop.f32.mrb[1].mxu1  ;;  %v1274_v60 = vsel %vm1083_vm2, %v1216_v49, -inf }
 0x41b   : > { %v1219_v58 = vpop.f32.mrb[2].mxu1 }
 0x41c   : > { %v2180_v59 = vpop.f32.mrb[3].mxu1 }
 0x41d   : > { %1275 = vmax.xlane.f32.xlu1 %v1274_v60 }
 0x41f   : > { %v1170_v61 = vpop.f32.mrb[8].mxu0 }
 0x420   : > { %v2173_v62 = vpop.f32.mrb[9].mxu0  ;;  %v1271_v63 = vsel %vm1083_vm2, %v1170_v61, -inf }
 0x421   : > { %1272 = vmax.xlane.f32.xlu0 %v1271_v63  ;;  %v1173_v1 = vpop.f32.mrb[10].mxu0 }
 0x422   : > { %v2174_v2 = vpop.f32.mrb[11].mxu0 }
 0x427   : > { %v1262_v3 = vpop.f32.mrb[12].mxu0 }
 0x428   : > { %v2185_v4 = vpop.f32.mrb[13].mxu0  ;;  %v1277_v5 = vsel %vm1083_vm2, %v1262_v3, -inf }
 0x429   : > { %1278 = vmax.xlane.f32.xlu0 %v1277_v5  ;;  %v1265_v6 = vpop.f32.mrb[14].mxu0 }
 0x42a   : > { %v2186_v50 = vpop.f32.mrb[15].mxu0 }
 0x42e   : > { %913 = vrot.lane.b32.xlu1 %v2613_v25, %s2446_s20 }
 0x4a6   : > { %v1270_v52 = vpop.xlane.xlu1 %1269 }
 0x4a7   : > { %v1280_v51 = vsub.f32 %v1124_v45, %v1270_v52 }
 0x4a9   : > { %v1284_v54 = vmul.f32 1.442695, %v1280_v51 }
 0x4aa   : > { %v1276_v16 = vpop.xlane.xlu1 %1275 }
 0x4ab   : > { %2321 = vpow2.f32 %v1284_v54  ;;  %v1282_v17 = vsub.f32 %v1216_v49, %v1276_v16 }
 0x4ad   : > { %v1288_v19 = vmul.f32 1.442695, %v1282_v17 }
 0x4ae   : > { %v1273_v7 = vpop.xlane.xlu0 %1272 }
 0x4af   : > { %v1281_v9 = vsub.f32 %v1170_v61, %v1273_v7 }
 0x4b1   : > { %v1286_v10 = vmul.f32 1.442695, %v1281_v9 }
 0x4b3   : > { %2323 = vpow2.f32 %v1286_v10 }
 0x4b5   : > { %v2322_v11 = vpop.eup %2321 }
 0x4b6   : > { %v1292_v12 = vsel %vm1083_vm2, %v2322_v11, 0.0  ;;  %v1279_v25 = vpop.xlane.xlu0 %1278 }
 0x4b7   : > { %1293 = vadd.xlane.f32.xlu1 %v1292_v12  ;;  %v1283_v15 = vsub.f32 %v1262_v3, %v1279_v25 }
 0x4b9   : > { %v1290_v18 = vmul.f32 1.442695, %v1283_v15 }
 0x4bb   : > { %2325 = vpow2.f32 %v1290_v18 }
 0x4bc   : > { %2327 = vpow2.f32 %v1288_v19 }
 0x4bd   : > { %v2324_v13 = vpop.eup %2323 }
 0x4be   : > { %v1295_v14 = vsel %vm1083_vm2, %v2324_v13, 0.0 }
 0x4bf   : > { %1296 = vadd.xlane.f32.xlu0 %v1295_v14 }
 0x4c5   : > { %v2726_v20 = vpop.eup %2325 }
 0x4c6   : > { %v1301_v21 = vsel %vm1083_vm2, %v2726_v20, 0.0  ;;  %v2730_v22 = vpop.eup %2327 }
 0x4c8   : > { %917 = vrot.lane.b32.xlu1 %v2622_v28, %s2446_s20  ;;  %v914_v28 = vpop.permute.xlu1 %913 }
 0x4c9   : > { %v928_v26 = vrot.slane %v914_v28, %v2628_v37 }
 0x4cc   : > { %919 = vrot.lane.b32.xlu1 %v2625_v29, %s2446_s20 }
 0x4d5   : > { %915 = vrot.lane.b32.xlu0 %v2619_v27, %s2446_s20  ;;  %v1298_v27 = vsel %vm1083_vm2, %v2730_v22, 0.0  ;;  %s2450_s20 = smov [#allocation4]  }
 0x4d6   : > { %s2345_s3 = sshll.u32 %s2450_s20, 4  ;;  %s2346_s3 = int_to_ptr.vmem [resolvable:$false] %s2345_s3 }
 0x4d7   : > { %p2348_p0 = scmp.lt.s32.totalorder %s2884_s0, %s2346_s3 }
 0x4f0   : > { %1302 = vadd.xlane.f32.xlu1 %v1301_v21 }
 0x4f4   : > { %1299 = vadd.xlane.f32.xlu0 %v1298_v27 }
 0x544   : > { %v1294_v29 = vpop.xlane.xlu1 %1293 }
 0x545   : > { %2329 = vrcp.f32 %v1294_v29 }
 0x548   : > { %v918_v23 = vpop.permute.xlu1 %917 }
 0x549   : > { %v936_v24 = vrot.slane %v918_v23, %v2628_v37 }
 0x54b   : > { %v937_v30 = vcombine.low %v928_v26, %v936_v24  ;;  %v938_v32 = vcombine.high %v928_v26, %v936_v24 }
 0x54c   : > { %v1297_v31 = vpop.xlane.xlu0 %1296  ;;  %v920_v33 = vpop.permute.xlu1 %919 }
 0x54d   : > { %2331 = vrcp.f32 %v1297_v31  ;;  %v945_v36 = vrot.slane %v937_v30, %v2638_v46  ;;  %v970_v39 = vrot.slane %v920_v33, %v2628_v37  ;;  %v952_v41 = vrot.slane %v938_v32, %v2638_v46 }
 0x54f   : > { %v2330_v34 = vpop.eup %2329  ;;  %v953_v44 = vcombine.high %v945_v36, %v2445_v57  ;;  %v954_v48 = vcombine.high %v952_v41, %v2445_v57  ;;  %v993_v49 = vshrl.u32 %v945_v36, 16  ;;  %v1009_v53 = vshrl.u32 %v952_v41, 16 }
 0x550   : > { %v2740_v35 = vmul.f32 %v2330_v34, %v2322_v11  ;;  %v916_v38 = vpop.permute.xlu0 %915 }
 0x551   : > { %v962_v40 = vrot.slane %v916_v38, %v2628_v37  ;;  %v1001_v61 = vshrl.u32 %v953_v44, 16  ;;  %v1017_v6 = vshrl.u32 %v954_v48, 16 }
 0x552   : > { %1312 = vst.msk [vmem:[%s2746_s26] sm:$0xff] %vm1083_vm2, %v2740_v35  ;;  %v1316_v33 = vpack.c.bf16 %v2740_v35, %v2740_v35 }
 0x553   : > { %v971_v42 = vcombine.low %v962_v40, %v970_v39  ;;  %v972_v43 = vcombine.high %v962_v40, %v970_v39 }
 0x555   : > { %v979_v45 = vrot.slane %v971_v42, %v2638_v46  ;;  %v986_v47 = vrot.slane %v972_v43, %v2638_v46 }
 0x557   : > { %v2332_v55 = vpop.eup %2331  ;;  %v987_v56 = vcombine.high %v979_v45, %v2445_v57  ;;  %v988_v58 = vcombine.high %v986_v47, %v2445_v57  ;;  %v991_v59 = vpack.i.b16 %v979_v45, %v945_v36  ;;  %v994_v60 = vshrl.u32 %v979_v45, 16 }
 0x558   : > { %v1309_v62 = vmul.f32 %v2332_v55, %v2324_v13  ;;  %v1007_v63 = vpack.i.b16 %v986_v47, %v952_v41  ;;  %v1010_v1 = vshrl.u32 %v986_v47, 16 }
 0x559   : > { %v995_v2 = vpack.i.b16 %v994_v60, %v993_v49  ;;  %v999_v3 = vpack.i.b16 %v987_v56, %v953_v44  ;;  %v1002_v4 = vshrl.u32 %v987_v56, 16  ;;  %v1015_v5 = vpack.i.b16 %v988_v58, %v954_v48 }
 0x55a   : > { %v1011_v50 = vpack.i.b16 %v1010_v1, %v1009_v53  ;;  %v1018_v52 = vshrl.u32 %v988_v58, 16  ;;  %v1021_v51 = vcombine.low %v991_v59, %v1007_v63  ;;  %1313 = vst.msk [vmem:[%s2746_s26 + $0x8] sm:$0xff] %vm1083_vm2, %v1309_v62  ;;  %v1317_v36 = vpack.c.bf16 %v1309_v62, %v1309_v62 }
 0x55b   : > { %v1003_v54 = vpack.i.b16 %v1002_v4, %v1001_v61  ;;  %v1029_v7 = vcombine.low %v999_v3, %v1015_v5 }
 0x55c   : > { %v1019_v9 = vpack.i.b16 %v1018_v52, %v1017_v6  ;;  %v1046_v10 = vcombine.low %v995_v2, %v1011_v50  ;;  %v1028_v11 = vrot.slane %v1021_v51, %v2628_v37 }
 0x55d   : > { %v1036_v12 = vrot.slane %v1029_v7, %v2628_v37 }
 0x55e   : > { %v1054_v13 = vcombine.low %v1003_v54, %v1019_v9  ;;  %v1053_v25 = vrot.slane %v1046_v10, %v2628_v37 }
 0x55f   : > { %v1037_v14 = vcombine.low %v1028_v11, %v1036_v12  ;;  %v2307_v12 = vld [vmem:[%s2999_s5] sm:$0xff]  }
 0x560   : > { %v1061_v15 = vrot.slane %v1054_v13, %v2628_v37 }
 0x561   : > { %v1044_v16 = vrot.slane %v1037_v14, %v2638_v46 }
 0x562   : > { %v1062_v17 = vcombine.low %v1053_v25, %v1061_v15 }
 0x563   : > { %v1045_v18 = vcombine.high %v1044_v16, %v2445_v57  ;;  %v1074_v27 = vshrl.u32 %v1044_v16, 16 }
 0x564   : > { %v1069_v19 = vrot.slane %v1062_v17, %v2638_v46 }
 0x565   : > { %v1080_v23 = vshrl.u32 %v1045_v18, 16 }
 0x566   : > { %v1073_v21 = vpack.i.b16 %v1069_v19, %v1044_v16  ;;  %v1075_v28 = vshrl.u32 %v1069_v19, 16  ;;  %v1070_v29 = vcombine.high %v1069_v19, %v2445_v57 }
 0x568   : > { %v1325_v24 = vsel %vm1323_vm3, %v1073_v21, 0  ;;  %v1076_v26 = vpack.i.b16 %v1075_v28, %v1074_v27  ;;  %v1079_v30 = vpack.i.b16 %v1070_v29, %v1045_v18  ;;  %v1081_v31 = vshrl.u32 %v1070_v29, 16  ;;  %v2308_v21 = vld [vmem:[%s2999_s5 + $0x8] sm:$0xff]  }
 0x569   : > { %2188 = vmatpush3.bf16.msra.mxu1 %v1325_v24 }
 0x56a   : > { %v1371_v32 = vsel %vm1323_vm3, %v1076_v26, 0  ;;  %2199 = vmatprep.subr.bf16.mxu1 %v2437_v8  ;;  %v1082_v34 = vpack.i.b16 %v1081_v31, %v1080_v23  ;;  %v1417_v57 = vsel %vm1323_vm3, %v1079_v30, 0 }
 0x56b   : > { %2194 = vmatpush3.bf16.msra.mxu0 %v1371_v32 }
 0x56c   : > { %2190 = vmatmul.mubr.msk.bf16.vlgmr.msra.gmra.mrb[4].mxu1 %vm1083_vm2, %v1316_v33  ;;  %2205 = vmatprep.subr.bf16.mxu0 %v2437_v8  ;;  %v1463_v35 = vsel %vm1323_vm3, %v1082_v34, 0 }
 0x56d   : > { %2200 = vmatpush3.bf16.msra.mxu1 %v1417_v57  ;;  %2201 = vmatprep.mubr.msk.bf16.mxu1 %vm2438_vm1, %v2437_v8 }
 0x56e   : > { %2196 = vmatmul.mubr.msk.bf16.vlgmr.msra.gmra.mrb[16].mxu0 %vm1083_vm2, %v1317_v36  ;;  %2211 = vmatprep.subr.bf16.mxu1 %v2437_v8 }
 0x56f   : > { %2206 = vmatpush3.bf16.msra.mxu0 %v1463_v35  ;;  %2207 = vmatprep.mubr.msk.bf16.mxu0 %vm2438_vm1, %v2437_v8 }
 0x570   : > { %2219 = vmatprep.subr.bf16.mxu0 %v2437_v8 }
 0x57d   : > { %v1303_v38 = vpop.xlane.xlu1 %1302 }
 0x57e   : > { %2333 = vrcp.f32 %v1303_v38 }
 0x581   : > { %v1300_v39 = vpop.xlane.xlu0 %1299 }
 0x582   : > { %2335 = vrcp.f32 %v1300_v39 }
 0x588   : > { %v2334_v40 = vpop.eup %2333 }
 0x589   : > { %v1311_v41 = vmul.f32 %v2334_v40, %v2726_v20 }
 0x58b   : > { %v1319_v42 = vpack.c.bf16 %v1311_v41, %v1311_v41  ;;  %1315 = vst.msk [vmem:[%s2746_s26 + $0x18] sm:$0xff] %vm1083_vm2, %v1311_v41 }
 0x58c   : > { %v2336_v43 = vpop.eup %2335 }
 0x58d   : > { %v1310_v44 = vmul.f32 %v2336_v43, %v2730_v22  ;;  %2208 = vmatmul.mubr.msk.bf16.vlgmr.msra.gmra.mrb[20].mxu0 %vm1083_vm2, %v1319_v42 }
 0x58e   : > { %2223 = vmatprep.mubr.msk.bf16.mxu0 %vm2438_vm1, %v2437_v8 }
 0x58f   : > { %v1318_v45 = vpack.c.bf16 %v1310_v44, %v1310_v44  ;;  %1314 = vst.msk [vmem:[%s2746_s26 + $0x10] sm:$0xff] %vm1083_vm2, %v1310_v44  ;;  %s2347_s26 = scalar_lea.vmem %s2346_s3, 1024 }
 0x590   : > { %p2349_p1 = scmp.lt.s32.totalorder %s2347_s26, %s2341_s18 }
 0x591   : > { %2202 = vmatmul.mubr.msk.bf16.vlgmr.msra.gmra.mrb[8].mxu1 %vm1083_vm2, %v1318_v45  ;;  %v2094_v45 = vld [vmem:[%s3000_s6] ss:$0 sm:$0xff] }
 0x592   : > { %2215 = vmatprep.mubr.msk.bf16.mxu1 %vm2438_vm1, %v2437_v8  ;;  %2212 = vmatpush3.bf16.msra.mxu1 %v2307_v12  ;;  %v2316_v12 = vld [vmem:[%s2980_s11 + $0x28] sm:$0xff]   ;;  %p2350_p2 = por %p2349_p1, %p2348_p0 }
 0x593   : > { %2213 = vmatprep.subr.bf16.mxu1 %v2437_v8 }
 0x594   : > { %p2351_p3 = pnand %p2350_p2, %p2344_p13 }
 0x596   : > { %2214 = vmatpush3.bf16.msra.mxu1 %v2308_v21 }
 0x597   : > { %2227 = vmatprep.subr.bf16.mxu1 %v2437_v8 }
 0x63f   : > { %v1361_v20 = vpop.f32.mrb[4].mxu1 }
 0x640   : > { %v2191_v47 = vpop.f32.mrb[5].mxu1 }
 0x641   : > { %v1364_v48 = vpop.f32.mrb[6].mxu1  ;;  %v1407_v49 = vpop.f32.mrb[16].mxu0 }
 0x642   : > { %v2192_v53 = vpop.f32.mrb[7].mxu1  ;;  %v2197_v55 = vpop.f32.mrb[17].mxu0 }
 0x643   : > { %v1410_v22 = vpop.f32.mrb[18].mxu0 }
 0x644   : > { %v2198_v56 = vpop.f32.mrb[19].mxu0 }
 0x660   : > { %v1499_v58 = vpop.f32.mrb[20].mxu0 }
 0x661   : > { %v1521_v59 = vcombine.low %v1407_v49, %v1499_v58  ;;  %v1522_v60 = vcombine.high %v1407_v49, %v1499_v58  ;;  %v2209_v61 = vpop.f32.mrb[21].mxu0 }
 0x662   : > { %v1502_v62 = vpop.f32.mrb[22].mxu0 }
 0x663   : > { %v2210_v63 = vpop.f32.mrb[23].mxu0  ;;  %v1529_v6 = vrot.slane %v1521_v59, %v2628_v37  ;;  %v1536_v50 = vrot.slane %v1522_v60, %v2628_v37  ;;  %v2309_v62 = vld [vmem:[%s2978_s9] sm:$0xff]  }
 0x664   : > { %v1453_v1 = vpop.f32.mrb[8].mxu1  ;;  %2220 = vmatpush3.bf16.msra.mxu0 %v2309_v62  ;;  %v2311_v63 = vld [vmem:[%s2980_s11] sm:$0xff]  }
 0x665   : > { %v1505_v2 = vcombine.low %v1361_v20, %v1453_v1  ;;  %v1506_v3 = vcombine.high %v1361_v20, %v1453_v1  ;;  %v2203_v4 = vpop.f32.mrb[9].mxu1  ;;  %2221 = vmatprep.subr.bf16.mxu0 %v2437_v8 }
 0x666   : > { %v1456_v5 = vpop.f32.mrb[10].mxu1 }
 0x667   : > { %v1513_v52 = vrot.slane %v1505_v2, %v2628_v37  ;;  %v1520_v51 = vrot.slane %v1506_v3, %v2628_v37  ;;  %v2204_v54 = vpop.f32.mrb[11].mxu1  ;;  %v2098_v5 = vld [vmem:[%s2976_s7] ss:$0 sm:$0xff] }
 0x669   : > { %v1537_v7 = vcombine.low %v1513_v52, %v1529_v6  ;;  %v1538_v9 = vcombine.high %v1513_v52, %v1529_v6  ;;  %v1553_v10 = vcombine.low %v1520_v51, %v1536_v50  ;;  %v1554_v11 = vcombine.high %v1520_v51, %v1536_v50  ;;  %v2099_v50 = vld [vmem:[%s2977_s8] ss:$0 sm:$0xff] }
 0x66b   : > { %v1545_v13 = vrot.slane %v1537_v7, %v2638_v46  ;;  %v1552_v14 = vrot.slane %v1538_v9, %v2638_v46  ;;  %v1561_v25 = vrot.slane %v1553_v10, %v2638_v46  ;;  %v1568_v15 = vrot.slane %v1554_v11, %v2638_v46  ;;  %v2312_v7 = vld [vmem:[%s2980_s11 + $0x8] sm:$0xff]   ;;  %v2313_v9 = vld [vmem:[%s2980_s11 + $0x10] sm:$0xff]   ;;  %v2314_v10 = vld [vmem:[%s2980_s11 + $0x18] sm:$0xff]  }
 0x66c   : > { %v2315_v11 = vld [vmem:[%s2980_s11 + $0x20] sm:$0xff]  }
 0x66d   : > { %v1573_v16 = vcombine.low %v1545_v13, %v1552_v14  ;;  %v2092_v17 = vcombine.high %v1545_v13, %v1552_v14  ;;  %v1589_v18 = vcombine.low %v1561_v25, %v1568_v15  ;;  %v2093_v19 = vcombine.high %v1561_v25, %v1568_v15  ;;  %v2317_v13 = vld [vmem:[%s2980_s11 + $0x30] sm:$0xff]   ;;  %v2318_v14 = vld [vmem:[%s2980_s11 + $0x38] sm:$0xff]   ;;  %v2100_v25 = vld [vmem:[%s2979_s10] ss:$0 sm:$0xff] }
 0x66f   : > { %v1580_v27 = vrot.slane %v1573_v16, %v2628_v37  ;;  %v1588_v28 = vrot.slane %v2092_v17, %v2628_v37  ;;  %v1596_v29 = vrot.slane %v1589_v18, %v2628_v37  ;;  %v1604_v23 = vrot.slane %v2093_v19, %v2628_v37 }
 0x671   : > { %v1606_v24 = vcombine.high %v1580_v27, %v1588_v28  ;;  %v1622_v26 = vcombine.high %v1596_v29, %v1604_v23  ;;  %v1605_v30 = vcombine.low %v1580_v27, %v1588_v28  ;;  %v1621_v31 = vcombine.low %v1596_v29, %v1604_v23 }
 0x673   : > { %v1620_v32 = vrot.slane %v1606_v24, %v2638_v46  ;;  %v1636_v33 = vrot.slane %v1622_v26, %v2638_v46  ;;  %v1613_v34 = vrot.slane %v1605_v30, %v2638_v46  ;;  %v1629_v57 = vrot.slane %v1621_v31, %v2638_v46 }
 0x675   : > { %v1639_v36 = vcombine.low %v1620_v32, %v1636_v33  ;;  %v1638_v35 = vcombine.high %v1613_v34, %v1629_v57  ;;  %v1640_v38 = vcombine.high %v1620_v32, %v1636_v33  ;;  %v1637_v39 = vcombine.low %v1613_v34, %v1629_v57 }
 0x677   : > { %1646 = vrot.lane.b32.xlu1 %v1639_v36, %s2447_s25  ;;  %1642 = vrot.lane.b32.xlu0 %v1638_v35, %s2984_s27  ;;  %s2120_s27 = sshll.u32 %s2549_s17, 9 }
 0x67b   : > { %1650 = vrot.lane.b32.xlu0 %v1640_v38, %s2449_s28  ;;  %s2889_s28 = scalar_lea.hbm %s2983_s14, %s2120_s27 }
 0x6e9   : > { %v1643_v37 = vpop.permute.xlu0 %1642  ;;  %v1647_v40 = vpop.permute.xlu1 %1646 }
 0x6ea   : > { %v1653_v41 = vsel %vm1083_vm2, %v1637_v39, %v1643_v37 }
 0x6eb   : > { %v1655_v43 = vsel %vm1654_vm4, %v1653_v41, %v1647_v40 }
 0x6ed   : > { %v1651_v42 = vpop.permute.xlu0 %1650 }
 0x6ee   : > { %v1657_v46 = vsel %vm1656_vm5, %v1655_v43, %v1651_v42 }
 0x6ef   : > { %v1658_v44 = vpack.c.bf16 %v1657_v46, %v1657_v46 }
 0x6f1   : > { %2216 = vmatmul.mubr.msk.bf16.vlgmr.msra.gmra.mrb[12].mxu1 %vm478_vm0, %v1658_v44 }
 0x6f2   : > { %2243 = vmatprep.mubr.msk.bf16.mxu1 %vm2438_vm1, %v2437_v8  ;;  %2228 = vmatpush3.bf16.msra.mxu1 %v2311_v63 }
 0x6f3   : > { %2229 = vmatprep.subr.bf16.mxu1 %v2437_v8 }
 0x6f6   : > { %2230 = vmatpush3.bf16.msra.mxu1 %v2312_v7 }
 0x6f7   : > { %2231 = vmatprep.subr.bf16.mxu1 %v2437_v8 }
 0x6fa   : > { %2232 = vmatpush3.bf16.msra.mxu1 %v2313_v9 }
 0x6fb   : > { %2233 = vmatprep.subr.bf16.mxu1 %v2437_v8 }
 0x6fe   : > { %2234 = vmatpush3.bf16.msra.mxu1 %v2314_v10 }
 0x6ff   : > { %2235 = vmatprep.subr.bf16.mxu1 %v2437_v8 }
 0x702   : > { %2236 = vmatpush3.bf16.msra.mxu1 %v2315_v11 }
 0x703   : > { %2237 = vmatprep.subr.bf16.mxu1 %v2437_v8 }
 0x706   : > { %2238 = vmatpush3.bf16.msra.mxu1 %v2316_v12 }
 0x707   : > { %2239 = vmatprep.subr.bf16.mxu1 %v2437_v8 }
 0x70a   : > { %2240 = vmatpush3.bf16.msra.mxu1 %v2317_v13 }
 0x70b   : > { %2241 = vmatprep.subr.bf16.mxu1 %v2437_v8 }
 0x70e   : > { %2242 = vmatpush3.bf16.msra.mxu1 %v2318_v14 }
 0x7c4   : > { %v1719_v20 = vpop.f32.mrb[12].mxu1 }
 0x7c5   : > { %v1720_v47 = vadd.f32 %v2094_v45, %v1719_v20  ;;  %v2217_v48 = vpop.f32.mrb[13].mxu1 }
 0x7c6   : > { %v1722_v49 = vpop.f32.mrb[14].mxu1 }
 0x7c7   : > { %v2828_v53 = vadd.f32 %v1720_v47, %v2581_v0  ;;  %v2218_v55 = vpop.f32.mrb[15].mxu1  ;;  %v2310_v0 = vld [vmem:[%s2978_s9 + $0x8] sm:$0xff]  }
 0x7c8   : > { %2222 = vmatpush3.bf16.msra.mxu0 %v2310_v0 }
 0x7c9   : > { %v1728_v22 = vsel %vm478_vm0, %v2828_v53, 0.0 }
 0x7ca   : > { %1729 = vadd.xlane.f32.xlu1 %v1728_v22 }
 0x857   : > { %v1730_v56 = vpop.xlane.xlu1 %1729 }
 0x858   : > { %v1731_v58 = vmul.f32 0.03125, %v1730_v56 }
 0x85a   : > { %v1732_v59 = vsub.f32 %v2828_v53, %v1731_v58 }
 0x85c   : > { %v1733_v60 = vmul.f32 %v1732_v59, %v1732_v59 }
 0x85e   : > { %v1734_v61 = vsel %vm478_vm0, %v1733_v60, 0.0 }
 0x85f   : > { %1735 = vadd.xlane.f32.xlu0 %v1734_v61 }
 0x8ec   : > { %v1736_v1 = vpop.xlane.xlu0 %1735 }
 0x8ed   : > { %v1737_v2 = vmul.f32 0.03125, %v1736_v1 }
 0x8ef   : > { %v1738_v3 = vadd.f32 1e-05, %v1737_v2 }
 0x8f1   : > { %2337 = vrsqrt.f32 %v1738_v3 }
 0x8fb   : > { %v2338_v4 = vpop.eup %2337 }
 0x8fc   : > { %v1740_v6 = vmul.f32 %v2338_v4, %v1732_v59 }
 0x8fe   : > { %v1747_v52 = vmul.f32 %v2098_v5, %v1740_v6 }
 0x900   : > { %v1754_v51 = vadd.f32 %v2099_v50, %v1747_v52 }
 0x902   : > { %v1755_v54 = vpack.c.bf16 %v1754_v51, %v1754_v51 }
 0x904   : > { %2224 = vmatmul.mubr.msk.bf16.vlgmr.msra.gmra.mrb[24].mxu0 %vm478_vm0, %v1755_v54 }
 0x9d7   : > { %v1816_v15 = vpop.f32.mrb[24].mxu0 }
 0x9d8   : > { %v1817_v16 = vadd.f32 %v2100_v25, %v1816_v15  ;;  %v2225_v17 = vpop.f32.mrb[25].mxu0 }
 0x9d9   : > { %v1819_v18 = vpop.f32.mrb[26].mxu0 }
 0x9da   : > { %v1823_v19 = vmul.f32 0.044715, %v1817_v16  ;;  %v2226_v21 = vpop.f32.mrb[27].mxu0  ;;  %v1822_v24 = vmul.f32 0.5, %v1817_v16 }
 0x9dc   : > { %v1824_v27 = vmul.f32 %v1823_v19, %v1817_v16 }
 0x9de   : > { %v1825_v28 = vmul.f32 %v1824_v27, %v1817_v16 }
 0x9e0   : > { %v1826_v29 = vadd.f32 %v1825_v28, %v1817_v16 }
 0x9e2   : > { %v1827_v23 = vmul.f32 0.7978846, %v1826_v29 }
 0x9e4   : > { %2339 = vtanh.f32 %v1827_v23 }
 0x9ee   : > { %v2340_v8 = vpop.eup %2339 }
 0x9ef   : > { %v1829_v26 = vadd.f32 1.0, %v2340_v8 }
 0x9f1   : > { %v1830_v30 = vmul.f32 %v1829_v26, %v1822_v24 }
 0x9f3   : > { %v1831_v31 = vpack.c.bf16 %v1830_v30, %v1830_v30 }
 0x9f5   : > { %2244 = vmatmul.mubr.bf16.vlgmr.msra.gmra.mrb[16].mxu1 %v1831_v31 }
 0x9f6   : > { %2354 = shalt.err (!%p2351_p3)
}
 0x9f7   : > { %s2355_s27 = scalar_lea.hbm %s2889_s28, 512  ;;  %s2359_s20 = scalar_lea.hbm %s2983_s14, 1024 }
 0x9f8   : > { %p2356_p4 = scmp.ne.s32.totalorder %s2889_s28, %s2355_s27  ;;  %p2360_p9 = scmp.lt.u32.totalorder %s2889_s28, %s2983_s14 }
 0x9f9   : > { %p2361_p10 = scmp.lt.u32.totalorder %s2359_s20, %s2355_s27  ;;  %p2363_p12 = scmp.lt.u32.totalorder %s2355_s27, %s2889_s28 }
 0x9fa   : > { %p2357_p7 = pnand %p2356_p4, %p2566_p5 }
 0x9fb   : > { %p2362_p11 = por %p2361_p10, %p2360_p9 }
 0x9fc   : > { %p2358_p8 = pneg %p2357_p7 }
 0x9fd   : > { %p2364_p13 = por %p2363_p12, %p2362_p11 }
 0x9ff   : > { %p2365_p0 = pnand %p2364_p13, %p2358_p8 }
 0xa01   : > { %2368 = shalt.err (!%p2365_p0)
}
 0xa02   : > { %s2451_s18 = smov 128   ;;  %s3001_s26 = smov 8   ;;  %v2104_v32 = vld [vmem:[%s2981_s12] ss:$0 sm:$0xff] }
 0xa03   : > { %s3002_s4 = scalar_lea.sflag [#allocation5], %s2736_s21  ;;  %s2075_s2 = sshll.u32 %s2736_s21, 3 }
 0xa04   : > { %2248 = dma.vmem_to_hbm [thread:$0]  (%p2566_p5), %s2884_s0, 512, %s2889_s28, %s3002_s4, %s2451_s18, %s2451_s18, %s3001_s26  }
 0xa05   : > { %s2115_s27 = sshll.u32 %s2549_s17, 7  ;;  %s462_s20 = scalar_lea.vmem [#allocation2], %s2075_s2 }
 0xa06   : > { %s1964_s3 = sshll.u32 %s462_s20, 4  ;;  %s2925_s4 = scalar_lea.hbm %s2982_s13, %s2115_s27  ;;  %s2927_s3 = int_to_ptr.vmem [resolvable:$true] %s1964_s3 }
 0xa07   : > { %s1946_s17 = scalar_lea.sflag [#allocation3], %s2736_s21  ;;  %s2369_s0 = scalar_lea.vmem %s2927_s3, 128 }
 0xa08   : > { %p2370_p1 = scmp.ne.s32.totalorder %s2927_s3, %s2369_s0  ;;  %s2452_s28 = smov [#allocation2]  }
 0xa09   : > { %s2373_s18 = sshll.u32 %s2452_s28, 4  ;;  %s2374_s18 = int_to_ptr.vmem [resolvable:$false] %s2373_s18 }
 0xa0a   : > { %p2371_p2 = pnand %p2370_p1, %p2566_p5  ;;  %s2375_s26 = scalar_lea.vmem %s2374_s18, 256 }
 0xa0b   : > { %p2376_p4 = scmp.lt.s32.totalorder %s2927_s3, %s2374_s18  ;;  %p2377_p7 = scmp.lt.s32.totalorder %s2375_s26, %s2369_s0 }
 0xa0c   : > { %p2372_p3 = pneg %p2371_p2 }
 0xa0d   : > { %p2378_p8 = por %p2377_p7, %p2376_p4 }
 0xa0f   : > { %p2379_p9 = pnand %p2378_p8, %p2372_p3 }
 0xac8   : > { %v1937_v33 = vpop.f32.mrb[16].mxu1 }
 0xac9   : > { %v1938_v34 = vadd.f32 %v2104_v32, %v1937_v33  ;;  %v2245_v57 = vpop.f32.mrb[17].mxu1 }
 0xaca   : > { %v1940_v36 = vpop.f32.mrb[18].mxu1 }
 0xacb   : > { %v1943_v35 = vadd.f32 %v1938_v34, %v2828_v53  ;;  %v2246_v38 = vpop.f32.mrb[19].mxu1 }
 0xacd   : > { %1944 = vst.msk [vmem:[%s462_s20] sm:$0xff] %vm478_vm0, %v1943_v35 }
 0xace   : > { %2382 = shalt.err (!%p2379_p9)
}
 0xacf   : > { %s2383_s5 = scalar_lea.hbm %s2925_s4, 128  ;;  %s2387_s2 = scalar_lea.hbm %s2982_s13, 256 }
 0xad0   : > { %p2384_p10 = scmp.ne.s32.totalorder %s2925_s4, %s2383_s5  ;;  %p2388_p13 = scmp.lt.u32.totalorder %s2925_s4, %s2982_s13 }
 0xad1   : > { %p2389_p0 = scmp.lt.u32.totalorder %s2387_s2, %s2383_s5  ;;  %p2391_p2 = scmp.lt.u32.totalorder %s2383_s5, %s2925_s4 }
 0xad2   : > { %p2385_p11 = pnand %p2384_p10, %p2566_p5 }
 0xad3   : > { %p2390_p1 = por %p2389_p0, %p2388_p13 }
 0xad4   : > { %p2386_p12 = pneg %p2385_p11 }
 0xad5   : > { %p2392_p3 = por %p2391_p2, %p2390_p1 }
 0xad7   : > { %p2393_p4 = pnand %p2392_p3, %p2386_p12 }
 0xad9   : > { %2396 = shalt.err (!%p2393_p4)
}
 0xada   : > { %2247 = dma.vmem_to_hbm [thread:$0]  (%p2566_p5), %s2927_s3, 128, %s2925_s4, %s1946_s17  }
 0xadb PF: > { %p2258_p7 = scmp.ge.s32.totalorder %s2435_s16, 2  ;;  %s1992_s27 = sand.u32 1, %s2423_s29  }
 0xadc   : > { %s1993_s20 = scalar_lea.sflag [#allocation3], %s1992_s27 }
 0xadd   : > { %p2252_p8 = pnand %p2258_p7, %p2570_p6 }
 0xadf   : > { %2414 = dma.done.wait (!%p2252_p8), %s1993_s20, 128  }
 0xae0   : > { %2416 = vsyncadd (!%p2252_p8), %s1993_s20, 4294967168  ;;  %s2002_s0 = scalar_lea.sflag [#allocation5], %s1992_s27 }
 0xae1   : > { %2418 = dma.done.wait (!%p2252_p8), %s2002_s0, 512  }
 0xae2   : > { %2420 = vsyncadd (!%p2252_p8), %s2002_s0, 4294966784  ;;  %p28_p5 = scmp.ge.s32.totalorder %s2553_s19, 4   ;;  %s3003_s29 = smov %s2427_s30 }
 0xae3   : > { %s3004_s30 = smov %s2431_s15  ;;  %s3005_s15 = smov %s2564_s22 }
 0xae4   : > { %s3006_s16 = smov %s2553_s19  ;;  %30 = sbr.rel (!%p28_p5) target bundleno = 13 (0xd), region = 124 }
 0xaeb   :  { %2007 = vsyncpa [#allocation3], 1 }
 0xaec   :  { %2009 = vsyncpa [#allocation3 + $0x1], 1 }
 0xaed   :  { %2010 = vsyncpa [#allocation5], 1 }
 0xaee   :  { %2012 = vsyncpa [#allocation5 + $0x1], 1 }

// kernel: tpu_custom_call.1
= control target key start
LH: loop header
LB: loop body
LE: loop exit
PB: predicated region body
PF: predicated region fallthrough
CT: control target
= control target key end

     0   :  { %s2969_s0 = inlined_call_operand.vmem [shape: f32[2,8,32], index: 0, kind: input, shape index: {}]   ;;  %s2970_s1 = inlined_call_operand.vmem [shape: f32[1,32], index: 1, kind: input, shape index: {}]   ;;  %s2971_s2 = inlined_call_operand.vmem [shape: f32[1,32], index: 2, kind: input, shape index: {}]   ;;  %s2972_s3 = inlined_call_operand.vmem [shape: bf16[32,96], index: 3, kind: input, shape index: {}]   ;;  %s2973_s4 = inlined_call_operand.vmem [shape: f32[1,96], index: 4, kind: input, shape index: {}]   ;;  %s2974_s5 = inlined_call_operand.vmem [shape: bf16[32,32], index: 5, kind: input, shape index: {}]   ;;  %s2975_s6 = inlined_call_operand.vmem [shape: f32[1,32], index: 6, kind: input, shape index: {}]   ;;  %s2976_s7 = inlined_call_operand.vmem [shape: f32[1,32], index: 7, kind: input, shape index: {}]   ;;  %s2977_s8 = inlined_call_operand.vmem [shape: f32[1,32], index: 8, kind: input, shape index: {}]   ;;  %s2978_s9 = inlined_call_operand.vmem [shape: bf16[32,128], index: 9, kind: input, shape index: {}]   ;;  %s2979_s10 = inlined_call_operand.vmem [shape: f32[1,128], index: 10, kind: input, shape index: {}]   ;;  %s2980_s11 = inlined_call_operand.vmem [shape: bf16[128,32], index: 11, kind: input, shape index: {}]   ;;  %s2981_s12 = inlined_call_operand.vmem [shape: f32[1,32], index: 12, kind: input, shape index: {}]   ;;  %s2982_s13 = inlined_call_operand.hbm [shape: f32[2,8,32], index: 13, kind: output, shape index: {0}]   ;;  %s2983_s14 = inlined_call_operand.hbm [shape: f32[2,4,8,8], index: 14, kind: output, shape index: {1}]  }
   0x1   :  { %2985 = sst [smem:[#allocation8_spill]] %s2969_s0 }
   0x2   :  { %2986 = sst [smem:[#allocation9_spill]] %s2970_s1 }
   0x3   :  { %2987 = sst [smem:[#allocation10_spill]] %s2971_s2 }
   0x4   :  { %2988 = sst [smem:[#allocation11_spill]] %s2972_s3 }
   0x5   :  { %2989 = sst [smem:[#allocation12_spill]] %s2973_s4 }
   0x6   :  { %2990 = sst [smem:[#allocation13_spill]] %s2974_s5 }
   0x7   :  { %2991 = sst [smem:[#allocation14_spill]] %s2975_s6 }
   0x8   :  { %20 = vsyncpa [#allocation3], 0 }
   0x9   :  { %22 = vsyncpa [#allocation3 + $0x1], 0 }
   0xa   :  { %23 = vsyncpa [#allocation5], 0 }
   0xb   :  { %25 = vsyncpa [#allocation5 + $0x1], 0  ;;  %s2528_s29 = smov 0   ;;  %s2530_s30 = smov 0  }
   0xc   :  { %s2532_s15 = smov 0   ;;  %s2534_s16 = smov 0  }
   0xd LB: > { %s2549_s17 = sadd.s32 4294967295, %s2435_s16   ;;  %s2071_s18 = sadd.s32 4294967294, %s2435_s16   ;;  %s2435_s16 = sphi %s2534_s16, %s3006_s16   ;;  %s2431_s15 = sphi %s2532_s15, %s3005_s15   ;;  %s2427_s30 = sphi %s2530_s30, %s3004_s30   ;;  %s2423_s29 = sphi %s2528_s29, %s3003_s29  }
   0xe   : > { %s2553_s19 = sadd.s32 1, %s2435_s16   ;;  %s316_s20 = sadd.s32 1, %s2431_s15 }
   0xf   : > { %s313_s21 = ssub.s32 %s2435_s16, %s2553_s19  ;;  %p326_p0 = scmp.ne.s32.totalorder %s2431_s15, %s2427_s30 }
  0x10   : > { %p314_p1 = scmp.eq.s32.totalorder %s313_s21, 0  ;;  %p327_p2 = scmp.eq.s32.totalorder %s2549_s17, 1 }
  0x11   : > { %p332_p3 = scmp.ne.s32.totalorder %s2427_s30, %s2423_s29  ;;  %p333_p4 = scmp.eq.s32.totalorder %s2071_s18, 1 }
  0x12   : > { %s2564_s22 = scalar_select %p314_p1, %s2431_s15, %s316_s20  }
  0x13   : > { %p2566_p5 = por %p327_p2, %p326_p0  ;;  %p2570_p6 = por %p333_p4, %p332_p3 }
  0x14   : > { %p2074_p7 = scmp.ge.s32.totalorder %s2435_s16, 1  ;;  %p420_p8 = scmp.lt.s32.totalorder %s2435_s16, 3 }
  0x16   : > { %p421_p9 = pnand %p2074_p7, %p420_p8 }
  0x17   : > { %p470_p10 = scmp.lt.s32.totalorder (!%p421_p9), %s2549_s17, 1  ;;  %vm478_vm0 = vcmask (!%p421_p9), 261120   ;;  %s2994_s0 = sld [smem:[#allocation8_spill]] (!%p421_p9)  ;;  %v2437_v8 = vmov (!%p421_p9), 0.0   ;;  %vm2438_vm1 = vmmov (!%p421_p9), 0   ;;  %v585_v32 = vlaneseq (!%p421_p9) }
  0x18   : > { %424 = sbr.rel (%p421_p9) target bundleno = 2779 (0xadb), region = 72  ;;  %s2995_s3 = sld [smem:[#allocation11_spill]] (!%p421_p9)  ;;  %2155 = vmatprep.subr.bf16.mxu0 (!%p421_p9), %v2437_v8  ;;  %2159 = vmatprep.mubr.msk.bf16.mxu0 (!%p421_p9), %vm2438_vm1, %v2437_v8  ;;  %v2443_v30 = vmov (!%p421_p9), 1983009808   ;;  %v2444_v35 = vmov (!%p421_p9), 1934713408  }
  0x19   : > { %2175 = vmatprep.subr.bf16.mxu1 (!%p421_p9), %v2437_v8  ;;  %2177 = vmatprep.mubr.msk.bf16.mxu1 (!%p421_p9), %vm2438_vm1, %v2437_v8  ;;  %s2996_s1 = sld [smem:[#allocation9_spill]] (!%p421_p9)  ;;  %s2997_s2 = sld [smem:[#allocation10_spill]] (!%p421_p9)  ;;  %v583_v31 = vunpack.c.l.s4 (!%p421_p9), %v2443_v30  ;;  %v586_v34 = vshrl.u32 (!%p421_p9), %v585_v32, 7  ;;  %v600_v36 = vunpack.c.l.s4 (!%p421_p9), %v2444_v35  ;;  %v2445_v57 = vmov (!%p421_p9), 0  }
  0x1a   : > { %s2998_s4 = sld [smem:[#allocation12_spill]] (!%p421_p9)  ;;  %s2440_s27 = smov (!%p421_p9), 120   ;;  %vm1083_vm2 = vcmask (!%p421_p9), 64512   ;;  %vm1323_vm3 = vcmask (!%p421_p9), 1043456   ;;  %vm1654_vm4 = vcmask (!%p421_p9), 130048   ;;  %vm1656_vm5 = vcmask (!%p421_p9), 195584  }
  0x1b   : > { %s2441_s28 = smov (!%p421_p9), 112   ;;  %v584_v33 = vunpack.c.0.s8 (!%p421_p9), %v583_v31  ;;  %v601_v40 = vunpack.c.0.s8 (!%p421_p9), %v600_v36  ;;  %s2446_s20 = smov (!%p421_p9), 64  }
  0x1c   : > { %s2736_s21 = sand.u32 (!%p421_p9), 1, %s2427_s30   ;;  %s2999_s5 = sld [smem:[#allocation13_spill]] (!%p421_p9) }
  0x1d   : > { %v2628_v37 = vsub.s32 (!%p421_p9), %v584_v33, %v586_v34  ;;  %v2638_v46 = vsub.s32 (!%p421_p9), %v601_v40, %v586_v34  ;;  %s3000_s6 = sld [smem:[#allocation14_spill]] (!%p421_p9) }
  0x1e   : > { %v2305_v7 = vld [vmem:[%s2995_s3] sm:$0xff] (!%p421_p9)   ;;  %v2306_v9 = vld [vmem:[%s2995_s3 + $0x8] sm:$0xff] (!%p421_p9)  }
  0x1f   : > { %s471_s25 = scalar_select %p470_p10, %s2549_s17, 1  ;;  %2156 = vmatpush3.bf16.msra.mxu0 %v2305_v7  ;;  %v2078_v14 = vld [vmem:[%s2996_s1] ss:$0 sm:$0xff] }
  0x20   : > { %2157 = vmatprep.subr.bf16.mxu0 %v2437_v8  ;;  %v2079_v16 = vld [vmem:[%s2997_s2] ss:$0 sm:$0xff] }
  0x21   : > { %s2077_s26 = sshll.u32 %s471_s25, 3  ;;  %v2080_v20 = vld [vmem:[%s2998_s4] ss:$0 sm:$0xff]  ;;  %s2076_s25 = sshll.u32 %s2736_s21, 5 }
  0x22   : > { %s473_s18 = scalar_lea.vmem %s2994_s0, %s2077_s26  ;;  %s2439_s26 = smov 104  }
  0x23   : > { %v2581_v0 = vld [vmem:[%s473_s18] sm:$0xff]  ;;  %2158 = vmatpush3.bf16.msra.mxu0 %v2306_v9  ;;  %s2442_s18 = smov 96  }
  0x24   : > { %v479_v1 = vsel %vm478_vm0, %v2581_v0, 0.0  ;;  %2163 = vmatprep.subr.bf16.mxu0 %v2437_v8 }
  0x25   : > { %480 = vadd.xlane.f32.xlu0 %v479_v1 }
  0xb2   : > { %v481_v2 = vpop.xlane.xlu0 %480 }
  0xb3   : > { %v483_v3 = vmul.f32 0.03125, %v481_v2 }
  0xb5   : > { %v484_v4 = vsub.f32 %v2581_v0, %v483_v3 }
  0xb7   : > { %v485_v5 = vmul.f32 %v484_v4, %v484_v4 }
  0xb9   : > { %v486_v6 = vsel %vm478_vm0, %v485_v5, 0.0 }
  0xba   : > { %487 = vadd.xlane.f32.xlu0 %v486_v6 }
 0x147   : > { %v488_v10 = vpop.xlane.xlu0 %487 }
 0x148   : > { %v489_v11 = vmul.f32 0.03125, %v488_v10 }
 0x14a   : > { %v490_v12 = vadd.f32 1e-05, %v489_v11 }
 0x14c   : > { %2319 = vrsqrt.f32 %v490_v12 }
 0x156   : > { %v2320_v13 = vpop.eup %2319 }
 0x157   : > { %v492_v15 = vmul.f32 %v2320_v13, %v484_v4 }
 0x159   : > { %v499_v17 = vmul.f32 %v2078_v14, %v492_v15 }
 0x15b   : > { %v506_v18 = vadd.f32 %v2079_v16, %v499_v17 }
 0x15d   : > { %v507_v19 = vpack.c.bf16 %v506_v18, %v506_v18 }
 0x15f   : > { %2160 = vmatmul.mubr.msk.bf16.vlgmr.msra.gmra.mrb[0].mxu0 %vm478_vm0, %v507_v19 }
 0x160   : > { %2165 = vmatprep.mubr.msk.bf16.mxu0 %vm2438_vm1, %v2437_v8 }
 0x232   : > { %v568_v21 = vpop.f32.mrb[0].mxu0 }
 0x233   : > { %v569_v22 = vadd.f32 %v2080_v20, %v568_v21  ;;  %v2161_v23 = vpop.f32.mrb[1].mxu0 }
 0x234   : > { %v571_v24 = vpop.f32.mrb[2].mxu0 }
 0x235   : > { %v2613_v25 = vpack.c.bf16 %v569_v22, %v569_v22  ;;  %v2162_v26 = vpop.f32.mrb[3].mxu0 }
 0x237   : > { %580 = vrot.lane.b32.xlu0 %v2613_v25, %s2439_s26  ;;  %576 = vrot.lane.b32.xlu1 %v2613_v25, %s2440_s27  ;;  %v588_v43 = vrot.slane %v2613_v25, %v2628_v37  ;;  %s2746_s26 = scalar_lea.vmem [#allocation4], %s2076_s25  ;;  %s2447_s25 = smov 16  }
 0x238   : > { %s2984_s27 = smov 8   ;;  %s1977_s0 = sshll.u32 %s2746_s26, 4  ;;  %s2884_s0 = int_to_ptr.vmem [resolvable:$true] %s1977_s0 }
 0x23b   : > { %578 = vrot.lane.b32.xlu1 %v2613_v25, %s2441_s28  ;;  %s2449_s28 = smov 24  }
 0x23f   : > { %743 = vrot.lane.b32.xlu1 %v2613_v25, %s2442_s18 }
 0x2a9   : > { %v2619_v27 = vpop.permute.xlu1 %576  ;;  %v2625_v29 = vpop.permute.xlu0 %580 }
 0x2aa   : > { %745 = vrot.lane.b32.xlu1 %v2619_v27, %s2442_s18  ;;  %v630_v39 = vrot.slane %v2625_v29, %v2628_v37  ;;  %v622_v41 = vrot.slane %v2619_v27, %v2628_v37 }
 0x2ac   : > { %v631_v47 = vcombine.low %v622_v41, %v630_v39  ;;  %v632_v49 = vcombine.high %v622_v41, %v630_v39 }
 0x2ad   : > { %v2622_v28 = vpop.permute.xlu1 %578 }
 0x2ae   : > { %747 = vrot.lane.b32.xlu1 %v2622_v28, %s2442_s18  ;;  %v596_v38 = vrot.slane %v2622_v28, %v2628_v37  ;;  %v2647_v52 = vrot.slane %v631_v47, %v2638_v46  ;;  %v2650_v54 = vrot.slane %v632_v49, %v2638_v46 }
 0x2b0   : > { %v597_v44 = vcombine.low %v588_v43, %v596_v38  ;;  %v598_v45 = vcombine.high %v588_v43, %v596_v38  ;;  %v647_v62 = vcombine.high %v2647_v52, %v2445_v57  ;;  %v648_v1 = vcombine.high %v2650_v54, %v2445_v57 }
 0x2b1   : > { %v744_v42 = vpop.permute.xlu1 %743  ;;  %v654_v7 = vshrl.u32 %v2647_v52, 16  ;;  %v670_v13 = vshrl.u32 %v2650_v54, 16 }
 0x2b2   : > { %749 = vrot.lane.b32.xlu1 %v2625_v29, %s2442_s18  ;;  %v2641_v50 = vrot.slane %v597_v44, %v2638_v46  ;;  %v2644_v51 = vrot.slane %v598_v45, %v2638_v46  ;;  %v758_v55 = vrot.slane %v744_v42, %v2628_v37  ;;  %v662_v12 = vshrl.u32 %v647_v62, 16  ;;  %s2341_s18 = scalar_lea.vmem %s2884_s0, 512 }
 0x2b3   : > { %v678_v16 = vshrl.u32 %v648_v1, 16  ;;  %p2342_p11 = scmp.ne.s32.totalorder %s2884_s0, %s2341_s18 }
 0x2b4   : > { %v613_v58 = vcombine.high %v2641_v50, %v2445_v57  ;;  %v614_v59 = vcombine.high %v2644_v51, %v2445_v57  ;;  %v653_v2 = vshrl.u32 %v2641_v50, 16  ;;  %v669_v5 = vshrl.u32 %v2644_v51, 16 }
 0x2b5   : > { %p2343_p12 = pnand %p2342_p11, %p2566_p5 }
 0x2b6   : > { %v661_v9 = vshrl.u32 %v613_v58, 16  ;;  %v677_v10 = vshrl.u32 %v614_v59, 16  ;;  %v655_v17 = vpack.i.b16 %v654_v7, %v653_v2  ;;  %v659_v18 = vpack.i.b16 %v647_v62, %v613_v58 }
 0x2b7   : > { %v671_v20 = vpack.i.b16 %v670_v13, %v669_v5  ;;  %v675_v21 = vpack.i.b16 %v648_v1, %v614_v59  ;;  %v667_v58 = vpack.i.b16 %v2650_v54, %v2644_v51  ;;  %p2344_p13 = pneg %p2343_p12 }
 0x2b8   : > { %v663_v24 = vpack.i.b16 %v662_v12, %v661_v9  ;;  %v679_v26 = vpack.i.b16 %v678_v16, %v677_v10 }
 0x2b9   : > { %v689_v1 = vcombine.low %v659_v18, %v675_v21  ;;  %v706_v2 = vcombine.low %v655_v17, %v671_v20 }
 0x2ba   : > { %v714_v59 = vcombine.low %v663_v24, %v679_v26 }
 0x2bb   : > { %v696_v51 = vrot.slane %v689_v1, %v2628_v37  ;;  %v713_v54 = vrot.slane %v706_v2, %v2628_v37 }
 0x31c   : > { %v746_v48 = vpop.permute.xlu1 %745 }
 0x31d   : > { %v792_v6 = vrot.slane %v746_v48, %v2628_v37 }
 0x320   : > { %v748_v53 = vpop.permute.xlu1 %747 }
 0x321   : > { %v766_v56 = vrot.slane %v748_v53, %v2628_v37  ;;  %v651_v53 = vpack.i.b16 %v2647_v52, %v2641_v50 }
 0x323   : > { %v767_v60 = vcombine.low %v758_v55, %v766_v56  ;;  %v768_v61 = vcombine.high %v758_v55, %v766_v56  ;;  %v681_v5 = vcombine.low %v651_v53, %v667_v58 }
 0x324   : > { %v750_v63 = vpop.permute.xlu1 %749 }
 0x325   : > { %v775_v3 = vrot.slane %v767_v60, %v2638_v46  ;;  %v800_v4 = vrot.slane %v750_v63, %v2628_v37  ;;  %v782_v11 = vrot.slane %v768_v61, %v2638_v46  ;;  %v688_v10 = vrot.slane %v681_v5, %v2628_v37 }
 0x327   : > { %v801_v14 = vcombine.low %v792_v6, %v800_v4  ;;  %v802_v15 = vcombine.high %v792_v6, %v800_v4  ;;  %v783_v19 = vcombine.high %v775_v3, %v2445_v57  ;;  %v784_v30 = vcombine.high %v782_v11, %v2445_v57 }
 0x328   : > { %v823_v31 = vshrl.u32 %v775_v3, 16  ;;  %v839_v38 = vshrl.u32 %v782_v11, 16  ;;  %v721_v6 = vrot.slane %v714_v59, %v2628_v37  ;;  %v697_v13 = vcombine.low %v688_v10, %v696_v51 }
 0x329   : > { %v809_v22 = vrot.slane %v801_v14, %v2638_v46  ;;  %v816_v23 = vrot.slane %v802_v15, %v2638_v46  ;;  %v831_v36 = vshrl.u32 %v783_v19, 16  ;;  %v847_v45 = vshrl.u32 %v784_v30, 16 }
 0x32a   : > { %v722_v12 = vcombine.low %v713_v54, %v721_v6 }
 0x32b   : > { %v817_v32 = vcombine.high %v809_v22, %v2445_v57  ;;  %v818_v33 = vcombine.high %v816_v23, %v2445_v57  ;;  %v821_v34 = vpack.i.b16 %v809_v22, %v775_v3  ;;  %v824_v35 = vshrl.u32 %v809_v22, 16 }
 0x32c   : > { %v837_v39 = vpack.i.b16 %v816_v23, %v782_v11  ;;  %v840_v40 = vshrl.u32 %v816_v23, 16  ;;  %v704_v22 = vrot.slane %v697_v13, %v2638_v46 }
 0x32d   : > { %v825_v41 = vpack.i.b16 %v824_v35, %v823_v31  ;;  %v829_v42 = vpack.i.b16 %v817_v32, %v783_v19  ;;  %v832_v43 = vshrl.u32 %v817_v32, 16  ;;  %v845_v44 = vpack.i.b16 %v818_v33, %v784_v30 }
 0x32e   : > { %v841_v47 = vpack.i.b16 %v840_v40, %v839_v38  ;;  %v848_v48 = vshrl.u32 %v818_v33, 16  ;;  %v851_v49 = vcombine.low %v821_v34, %v837_v39  ;;  %v729_v19 = vrot.slane %v722_v12, %v2638_v46 }
 0x32f   : > { %v833_v55 = vpack.i.b16 %v832_v43, %v831_v36  ;;  %v859_v56 = vcombine.low %v829_v42, %v845_v44  ;;  %v705_v31 = vcombine.high %v704_v22, %v2445_v57  ;;  %v734_v38 = vshrl.u32 %v704_v22, 16 }
 0x330   : > { %v849_v60 = vpack.i.b16 %v848_v48, %v847_v45  ;;  %v876_v61 = vcombine.low %v825_v41, %v841_v47  ;;  %v858_v62 = vrot.slane %v851_v49, %v2628_v37  ;;  %v730_v26 = vcombine.high %v729_v19, %v2445_v57 }
 0x331   : > { %v866_v63 = vrot.slane %v859_v56, %v2628_v37  ;;  %v733_v30 = vpack.i.b16 %v729_v19, %v704_v22  ;;  %v735_v36 = vshrl.u32 %v729_v19, 16  ;;  %v740_v43 = vshrl.u32 %v705_v31, 16 }
 0x332   : > { %v884_v3 = vcombine.low %v833_v55, %v849_v60  ;;  %v883_v50 = vrot.slane %v876_v61, %v2628_v37  ;;  %v739_v34 = vpack.i.b16 %v730_v26, %v705_v31  ;;  %v741_v42 = vshrl.u32 %v730_v26, 16 }
 0x333   : > { %v867_v4 = vcombine.low %v858_v62, %v866_v63  ;;  %v736_v40 = vpack.i.b16 %v735_v36, %v734_v38 }
 0x334   : > { %v891_v52 = vrot.slane %v884_v3, %v2628_v37  ;;  %v742_v44 = vpack.i.b16 %v741_v42, %v740_v43 }
 0x335   : > { %v874_v7 = vrot.slane %v867_v4, %v2638_v46 }
 0x336   : > { %v892_v9 = vcombine.low %v883_v50, %v891_v52 }
 0x337   : > { %v875_v15 = vcombine.high %v874_v7, %v2445_v57  ;;  %v904_v23 = vshrl.u32 %v874_v7, 16 }
 0x338   : > { %v899_v11 = vrot.slane %v892_v9, %v2638_v46 }
 0x339   : > { %v910_v35 = vshrl.u32 %v875_v15, 16 }
 0x33a   : > { %v903_v14 = vpack.i.b16 %v899_v11, %v874_v7  ;;  %v900_v16 = vcombine.high %v899_v11, %v2445_v57  ;;  %v905_v20 = vshrl.u32 %v899_v11, 16 }
 0x33c   : > { %v1088_v17 = vsel %vm1083_vm2, %v903_v14, 0  ;;  %v909_v18 = vpack.i.b16 %v900_v16, %v875_v15  ;;  %v906_v24 = vpack.i.b16 %v905_v20, %v904_v23  ;;  %v911_v32 = vshrl.u32 %v900_v16, 16 }
 0x33d   : > { %2164 = vmatpush3.bf16.xpose.msra.mxu0 %v1088_v17 }
 0x33e   : > { %v1180_v21 = vsel %vm1083_vm2, %v909_v18, 0  ;;  %2169 = vmatprep.subr.bf16.mxu0 %v2437_v8  ;;  %v1134_v33 = vsel %vm1083_vm2, %v906_v24, 0  ;;  %v912_v39 = vpack.i.b16 %v911_v32, %v910_v35 }
 0x33f   : > { %2176 = vmatpush3.bf16.xpose.msra.mxu1 %v1180_v21 }
 0x340   : > { %2187 = vmatprep.subr.bf16.mxu1 %v2437_v8  ;;  %v1226_v41 = vsel %vm1083_vm2, %v912_v39, 0 }
 0x344   : > { %2166 = vmatmul.mubr.msk.bf16.vlgmr.msra.gmra.mrb[4].mxu0 %vm1083_vm2, %v733_v30 }
 0x345   : > { %2170 = vmatpush3.bf16.xpose.msra.mxu0 %v1134_v33  ;;  %2171 = vmatprep.mubr.msk.bf16.mxu0 %vm2438_vm1, %v2437_v8 }
 0x346   : > { %2178 = vmatmul.mubr.msk.bf16.vlgmr.msra.gmra.mrb[0].mxu1 %vm1083_vm2, %v739_v34  ;;  %2181 = vmatprep.subr.bf16.mxu0 %v2437_v8 }
 0x347   : > { %2189 = vmatprep.mubr.msk.bf16.mxu1 %vm2438_vm1, %v2437_v8 }
 0x34c   : > { %2172 = vmatmul.mubr.msk.bf16.vlgmr.msra.gmra.mrb[8].mxu0 %vm1083_vm2, %v736_v40 }
 0x34d   : > { %2182 = vmatpush3.bf16.xpose.msra.mxu0 %v1226_v41  ;;  %2183 = vmatprep.mubr.msk.bf16.mxu0 %vm2438_vm1, %v2437_v8 }
 0x34e   : > { %2193 = vmatprep.subr.bf16.mxu0 %v2437_v8 }
 0x354   : > { %2184 = vmatmul.mubr.msk.bf16.vlgmr.msra.gmra.mrb[12].mxu0 %vm1083_vm2, %v742_v44 }
 0x355   : > { %2195 = vmatprep.mubr.msk.bf16.mxu0 %vm2438_vm1, %v2437_v8 }
 0x417   : > { %v1124_v45 = vpop.f32.mrb[4].mxu0 }
 0x418   : > { %v2167_v47 = vpop.f32.mrb[5].mxu0  ;;  %v1268_v48 = vsel %vm1083_vm2, %v1124_v45, -inf }
 0x419   : > { %v1216_v49 = vpop.f32.mrb[0].mxu1  ;;  %1269 = vmax.xlane.f32.xlu1 %v1268_v48  ;;  %v1127_v53 = vpop.f32.mrb[6].mxu0 }
 0x41a   : > { %v2168_v55 = vpop.f32.mrb[7].mxu0  ;;  %v2179_v56 = vpop.f32.mrb[1].mxu1  ;;  %v1274_v60 = vsel %vm1083_vm2, %v1216_v49, -inf }
 0x41b   : > { %v1219_v58 = vpop.f32.mrb[2].mxu1 }
 0x41c   : > { %v2180_v59 = vpop.f32.mrb[3].mxu1 }
 0x41d   : > { %1275 = vmax.xlane.f32.xlu1 %v1274_v60 }
 0x41f   : > { %v1170_v61 = vpop.f32.mrb[8].mxu0 }
 0x420   : > { %v2173_v62 = vpop.f32.mrb[9].mxu0  ;;  %v1271_v63 = vsel %vm1083_vm2, %v1170_v61, -inf }
 0x421   : > { %1272 = vmax.xlane.f32.xlu0 %v1271_v63  ;;  %v1173_v1 = vpop.f32.mrb[10].mxu0 }
 0x422   : > { %v2174_v2 = vpop.f32.mrb[11].mxu0 }
 0x427   : > { %v1262_v3 = vpop.f32.mrb[12].mxu0 }
 0x428   : > { %v2185_v4 = vpop.f32.mrb[13].mxu0  ;;  %v1277_v5 = vsel %vm1083_vm2, %v1262_v3, -inf }
 0x429   : > { %1278 = vmax.xlane.f32.xlu0 %v1277_v5  ;;  %v1265_v6 = vpop.f32.mrb[14].mxu0 }
 0x42a   : > { %v2186_v50 = vpop.f32.mrb[15].mxu0 }
 0x42e   : > { %913 = vrot.lane.b32.xlu1 %v2613_v25, %s2446_s20 }
 0x4a6   : > { %v1270_v52 = vpop.xlane.xlu1 %1269 }
 0x4a7   : > { %v1280_v51 = vsub.f32 %v1124_v45, %v1270_v52 }
 0x4a9   : > { %v1284_v54 = vmul.f32 1.442695, %v1280_v51 }
 0x4aa   : > { %v1276_v16 = vpop.xlane.xlu1 %1275 }
 0x4ab   : > { %2321 = vpow2.f32 %v1284_v54  ;;  %v1282_v17 = vsub.f32 %v1216_v49, %v1276_v16 }
 0x4ad   : > { %v1288_v19 = vmul.f32 1.442695, %v1282_v17 }
 0x4ae   : > { %v1273_v7 = vpop.xlane.xlu0 %1272 }
 0x4af   : > { %v1281_v9 = vsub.f32 %v1170_v61, %v1273_v7 }
 0x4b1   : > { %v1286_v10 = vmul.f32 1.442695, %v1281_v9 }
 0x4b3   : > { %2323 = vpow2.f32 %v1286_v10 }
 0x4b5   : > { %v2322_v11 = vpop.eup %2321 }
 0x4b6   : > { %v1292_v12 = vsel %vm1083_vm2, %v2322_v11, 0.0  ;;  %v1279_v25 = vpop.xlane.xlu0 %1278 }
 0x4b7   : > { %1293 = vadd.xlane.f32.xlu1 %v1292_v12  ;;  %v1283_v15 = vsub.f32 %v1262_v3, %v1279_v25 }
 0x4b9   : > { %v1290_v18 = vmul.f32 1.442695, %v1283_v15 }
 0x4bb   : > { %2325 = vpow2.f32 %v1290_v18 }
 0x4bc   : > { %2327 = vpow2.f32 %v1288_v19 }
 0x4bd   : > { %v2324_v13 = vpop.eup %2323 }
 0x4be   : > { %v1295_v14 = vsel %vm1083_vm2, %v2324_v13, 0.0 }
 0x4bf   : > { %1296 = vadd.xlane.f32.xlu0 %v1295_v14 }
 0x4c5   : > { %v2726_v20 = vpop.eup %2325 }
 0x4c6   : > { %v1301_v21 = vsel %vm1083_vm2, %v2726_v20, 0.0  ;;  %v2730_v22 = vpop.eup %2327 }
 0x4c8   : > { %917 = vrot.lane.b32.xlu1 %v2622_v28, %s2446_s20  ;;  %v914_v28 = vpop.permute.xlu1 %913 }
 0x4c9   : > { %v928_v26 = vrot.slane %v914_v28, %v2628_v37 }
 0x4cc   : > { %919 = vrot.lane.b32.xlu1 %v2625_v29, %s2446_s20 }
 0x4d5   : > { %915 = vrot.lane.b32.xlu0 %v2619_v27, %s2446_s20  ;;  %v1298_v27 = vsel %vm1083_vm2, %v2730_v22, 0.0  ;;  %s2450_s20 = smov [#allocation4]  }
 0x4d6   : > { %s2345_s3 = sshll.u32 %s2450_s20, 4  ;;  %s2346_s3 = int_to_ptr.vmem [resolvable:$false] %s2345_s3 }
 0x4d7   : > { %p2348_p0 = scmp.lt.s32.totalorder %s2884_s0, %s2346_s3 }
 0x4f0   : > { %1302 = vadd.xlane.f32.xlu1 %v1301_v21 }
 0x4f4   : > { %1299 = vadd.xlane.f32.xlu0 %v1298_v27 }
 0x544   : > { %v1294_v29 = vpop.xlane.xlu1 %1293 }
 0x545   : > { %2329 = vrcp.f32 %v1294_v29 }
 0x548   : > { %v918_v23 = vpop.permute.xlu1 %917 }
 0x549   : > { %v936_v24 = vrot.slane %v918_v23, %v2628_v37 }
 0x54b   : > { %v937_v30 = vcombine.low %v928_v26, %v936_v24  ;;  %v938_v32 = vcombine.high %v928_v26, %v936_v24 }
 0x54c   : > { %v1297_v31 = vpop.xlane.xlu0 %1296  ;;  %v920_v33 = vpop.permute.xlu1 %919 }
 0x54d   : > { %2331 = vrcp.f32 %v1297_v31  ;;  %v945_v36 = vrot.slane %v937_v30, %v2638_v46  ;;  %v970_v39 = vrot.slane %v920_v33, %v2628_v37  ;;  %v952_v41 = vrot.slane %v938_v32, %v2638_v46 }
 0x54f   : > { %v2330_v34 = vpop.eup %2329  ;;  %v953_v44 = vcombine.high %v945_v36, %v2445_v57  ;;  %v954_v48 = vcombine.high %v952_v41, %v2445_v57  ;;  %v993_v49 = vshrl.u32 %v945_v36, 16  ;;  %v1009_v53 = vshrl.u32 %v952_v41, 16 }
 0x550   : > { %v2740_v35 = vmul.f32 %v2330_v34, %v2322_v11  ;;  %v916_v38 = vpop.permute.xlu0 %915 }
 0x551   : > { %v962_v40 = vrot.slane %v916_v38, %v2628_v37  ;;  %v1001_v61 = vshrl.u32 %v953_v44, 16  ;;  %v1017_v6 = vshrl.u32 %v954_v48, 16 }
 0x552   : > { %1312 = vst.msk [vmem:[%s2746_s26] sm:$0xff] %vm1083_vm2, %v2740_v35  ;;  %v1316_v33 = vpack.c.bf16 %v2740_v35, %v2740_v35 }
 0x553   : > { %v971_v42 = vcombine.low %v962_v40, %v970_v39  ;;  %v972_v43 = vcombine.high %v962_v40, %v970_v39 }
 0x555   : > { %v979_v45 = vrot.slane %v971_v42, %v2638_v46  ;;  %v986_v47 = vrot.slane %v972_v43, %v2638_v46 }
 0x557   : > { %v2332_v55 = vpop.eup %2331  ;;  %v987_v56 = vcombine.high %v979_v45, %v2445_v57  ;;  %v988_v58 = vcombine.high %v986_v47, %v2445_v57  ;;  %v991_v59 = vpack.i.b16 %v979_v45, %v945_v36  ;;  %v994_v60 = vshrl.u32 %v979_v45, 16 }
 0x558   : > { %v1309_v62 = vmul.f32 %v2332_v55, %v2324_v13  ;;  %v1007_v63 = vpack.i.b16 %v986_v47, %v952_v41  ;;  %v1010_v1 = vshrl.u32 %v986_v47, 16 }
 0x559   : > { %v995_v2 = vpack.i.b16 %v994_v60, %v993_v49  ;;  %v999_v3 = vpack.i.b16 %v987_v56, %v953_v44  ;;  %v1002_v4 = vshrl.u32 %v987_v56, 16  ;;  %v1015_v5 = vpack.i.b16 %v988_v58, %v954_v48 }
 0x55a   : > { %v1011_v50 = vpack.i.b16 %v1010_v1, %v1009_v53  ;;  %v1018_v52 = vshrl.u32 %v988_v58, 16  ;;  %v1021_v51 = vcombine.low %v991_v59, %v1007_v63  ;;  %1313 = vst.msk [vmem:[%s2746_s26 + $0x8] sm:$0xff] %vm1083_vm2, %v1309_v62  ;;  %v1317_v36 = vpack.c.bf16 %v1309_v62, %v1309_v62 }
 0x55b   : > { %v1003_v54 = vpack.i.b16 %v1002_v4, %v1001_v61  ;;  %v1029_v7 = vcombine.low %v999_v3, %v1015_v5 }
 0x55c   : > { %v1019_v9 = vpack.i.b16 %v1018_v52, %v1017_v6  ;;  %v1046_v10 = vcombine.low %v995_v2, %v1011_v50  ;;  %v1028_v11 = vrot.slane %v1021_v51, %v2628_v37 }
 0x55d   : > { %v1036_v12 = vrot.slane %v1029_v7, %v2628_v37 }
 0x55e   : > { %v1054_v13 = vcombine.low %v1003_v54, %v1019_v9  ;;  %v1053_v25 = vrot.slane %v1046_v10, %v2628_v37 }
 0x55f   : > { %v1037_v14 = vcombine.low %v1028_v11, %v1036_v12  ;;  %v2307_v12 = vld [vmem:[%s2999_s5] sm:$0xff]  }
 0x560   : > { %v1061_v15 = vrot.slane %v1054_v13, %v2628_v37 }
 0x561   : > { %v1044_v16 = vrot.slane %v1037_v14, %v2638_v46 }
 0x562   : > { %v1062_v17 = vcombine.low %v1053_v25, %v1061_v15 }
 0x563   : > { %v1045_v18 = vcombine.high %v1044_v16, %v2445_v57  ;;  %v1074_v27 = vshrl.u32 %v1044_v16, 16 }
 0x564   : > { %v1069_v19 = vrot.slane %v1062_v17, %v2638_v46 }
 0x565   : > { %v1080_v23 = vshrl.u32 %v1045_v18, 16 }
 0x566   : > { %v1073_v21 = vpack.i.b16 %v1069_v19, %v1044_v16  ;;  %v1075_v28 = vshrl.u32 %v1069_v19, 16  ;;  %v1070_v29 = vcombine.high %v1069_v19, %v2445_v57 }
 0x568   : > { %v1325_v24 = vsel %vm1323_vm3, %v1073_v21, 0  ;;  %v1076_v26 = vpack.i.b16 %v1075_v28, %v1074_v27  ;;  %v1079_v30 = vpack.i.b16 %v1070_v29, %v1045_v18  ;;  %v1081_v31 = vshrl.u32 %v1070_v29, 16  ;;  %v2308_v21 = vld [vmem:[%s2999_s5 + $0x8] sm:$0xff]  }
 0x569   : > { %2188 = vmatpush3.bf16.msra.mxu1 %v1325_v24 }
 0x56a   : > { %v1371_v32 = vsel %vm1323_vm3, %v1076_v26, 0  ;;  %2199 = vmatprep.subr.bf16.mxu1 %v2437_v8  ;;  %v1082_v34 = vpack.i.b16 %v1081_v31, %v1080_v23  ;;  %v1417_v57 = vsel %vm1323_vm3, %v1079_v30, 0 }
 0x56b   : > { %2194 = vmatpush3.bf16.msra.mxu0 %v1371_v32 }
 0x56c   : > { %2190 = vmatmul.mubr.msk.bf16.vlgmr.msra.gmra.mrb[4].mxu1 %vm1083_vm2, %v1316_v33  ;;  %2205 = vmatprep.subr.bf16.mxu0 %v2437_v8  ;;  %v1463_v35 = vsel %vm1323_vm3, %v1082_v34, 0 }
 0x56d   : > { %2200 = vmatpush3.bf16.msra.mxu1 %v1417_v57  ;;  %2201 = vmatprep.mubr.msk.bf16.mxu1 %vm2438_vm1, %v2437_v8 }
 0x56e   : > { %2196 = vmatmul.mubr.msk.bf16.vlgmr.msra.gmra.mrb[16].mxu0 %vm1083_vm2, %v1317_v36  ;;  %2211 = vmatprep.subr.bf16.mxu1 %v2437_v8 }
 0x56f   : > { %2206 = vmatpush3.bf16.msra.mxu0 %v1463_v35  ;;  %2207 = vmatprep.mubr.msk.bf16.mxu0 %vm2438_vm1, %v2437_v8 }
 0x570   : > { %2219 = vmatprep.subr.bf16.mxu0 %v2437_v8 }
 0x57d   : > { %v1303_v38 = vpop.xlane.xlu1 %1302 }
 0x57e   : > { %2333 = vrcp.f32 %v1303_v38 }
 0x581   : > { %v1300_v39 = vpop.xlane.xlu0 %1299 }
 0x582   : > { %2335 = vrcp.f32 %v1300_v39 }
 0x588   : > { %v2334_v40 = vpop.eup %2333 }
 0x589   : > { %v1311_v41 = vmul.f32 %v2334_v40, %v2726_v20 }
 0x58b   : > { %v1319_v42 = vpack.c.bf16 %v1311_v41, %v1311_v41  ;;  %1315 = vst.msk [vmem:[%s2746_s26 + $0x18] sm:$0xff] %vm1083_vm2, %v1311_v41 }
 0x58c   : > { %v2336_v43 = vpop.eup %2335 }
 0x58d   : > { %v1310_v44 = vmul.f32 %v2336_v43, %v2730_v22  ;;  %2208 = vmatmul.mubr.msk.bf16.vlgmr.msra.gmra.mrb[20].mxu0 %vm1083_vm2, %v1319_v42 }
 0x58e   : > { %2223 = vmatprep.mubr.msk.bf16.mxu0 %vm2438_vm1, %v2437_v8 }
 0x58f   : > { %v1318_v45 = vpack.c.bf16 %v1310_v44, %v1310_v44  ;;  %1314 = vst.msk [vmem:[%s2746_s26 + $0x10] sm:$0xff] %vm1083_vm2, %v1310_v44  ;;  %s2347_s26 = scalar_lea.vmem %s2346_s3, 1024 }
 0x590   : > { %p2349_p1 = scmp.lt.s32.totalorder %s2347_s26, %s2341_s18 }
 0x591   : > { %2202 = vmatmul.mubr.msk.bf16.vlgmr.msra.gmra.mrb[8].mxu1 %vm1083_vm2, %v1318_v45  ;;  %v2094_v45 = vld [vmem:[%s3000_s6] ss:$0 sm:$0xff] }
 0x592   : > { %2215 = vmatprep.mubr.msk.bf16.mxu1 %vm2438_vm1, %v2437_v8  ;;  %2212 = vmatpush3.bf16.msra.mxu1 %v2307_v12  ;;  %v2316_v12 = vld [vmem:[%s2980_s11 + $0x28] sm:$0xff]   ;;  %p2350_p2 = por %p2349_p1, %p2348_p0 }
 0x593   : > { %2213 = vmatprep.subr.bf16.mxu1 %v2437_v8 }
 0x594   : > { %p2351_p3 = pnand %p2350_p2, %p2344_p13 }
 0x596   : > { %2214 = vmatpush3.bf16.msra.mxu1 %v2308_v21 }
 0x597   : > { %2227 = vmatprep.subr.bf16.mxu1 %v2437_v8 }
 0x63f   : > { %v1361_v20 = vpop.f32.mrb[4].mxu1 }
 0x640   : > { %v2191_v47 = vpop.f32.mrb[5].mxu1 }
 0x641   : > { %v1364_v48 = vpop.f32.mrb[6].mxu1  ;;  %v1407_v49 = vpop.f32.mrb[16].mxu0 }
 0x642   : > { %v2192_v53 = vpop.f32.mrb[7].mxu1  ;;  %v2197_v55 = vpop.f32.mrb[17].mxu0 }
 0x643   : > { %v1410_v22 = vpop.f32.mrb[18].mxu0 }
 0x644   : > { %v2198_v56 = vpop.f32.mrb[19].mxu0 }
 0x660   : > { %v1499_v58 = vpop.f32.mrb[20].mxu0 }
 0x661   : > { %v1521_v59 = vcombine.low %v1407_v49, %v1499_v58  ;;  %v1522_v60 = vcombine.high %v1407_v49, %v1499_v58  ;;  %v2209_v61 = vpop.f32.mrb[21].mxu0 }
 0x662   : > { %v1502_v62 = vpop.f32.mrb[22].mxu0 }
 0x663   : > { %v2210_v63 = vpop.f32.mrb[23].mxu0  ;;  %v1529_v6 = vrot.slane %v1521_v59, %v2628_v37  ;;  %v1536_v50 = vrot.slane %v1522_v60, %v2628_v37  ;;  %v2309_v62 = vld [vmem:[%s2978_s9] sm:$0xff]  }
 0x664   : > { %v1453_v1 = vpop.f32.mrb[8].mxu1  ;;  %2220 = vmatpush3.bf16.msra.mxu0 %v2309_v62  ;;  %v2311_v63 = vld [vmem:[%s2980_s11] sm:$0xff]  }
 0x665   : > { %v1505_v2 = vcombine.low %v1361_v20, %v1453_v1  ;;  %v1506_v3 = vcombine.high %v1361_v20, %v1453_v1  ;;  %v2203_v4 = vpop.f32.mrb[9].mxu1  ;;  %2221 = vmatprep.subr.bf16.mxu0 %v2437_v8 }
 0x666   : > { %v1456_v5 = vpop.f32.mrb[10].mxu1 }
 0x667   : > { %v1513_v52 = vrot.slane %v1505_v2, %v2628_v37  ;;  %v1520_v51 = vrot.slane %v1506_v3, %v2628_v37  ;;  %v2204_v54 = vpop.f32.mrb[11].mxu1  ;;  %v2098_v5 = vld [vmem:[%s2976_s7] ss:$0 sm:$0xff] }
 0x669   : > { %v1537_v7 = vcombine.low %v1513_v52, %v1529_v6  ;;  %v1538_v9 = vcombine.high %v1513_v52, %v1529_v6  ;;  %v1553_v10 = vcombine.low %v1520_v51, %v1536_v50  ;;  %v1554_v11 = vcombine.high %v1520_v51, %v1536_v50  ;;  %v2099_v50 = vld [vmem:[%s2977_s8] ss:$0 sm:$0xff] }
 0x66b   : > { %v1545_v13 = vrot.slane %v1537_v7, %v2638_v46  ;;  %v1552_v14 = vrot.slane %v1538_v9, %v2638_v46  ;;  %v1561_v25 = vrot.slane %v1553_v10, %v2638_v46  ;;  %v1568_v15 = vrot.slane %v1554_v11, %v2638_v46  ;;  %v2312_v7 = vld [vmem:[%s2980_s11 + $0x8] sm:$0xff]   ;;  %v2313_v9 = vld [vmem:[%s2980_s11 + $0x10] sm:$0xff]   ;;  %v2314_v10 = vld [vmem:[%s2980_s11 + $0x18] sm:$0xff]  }
 0x66c   : > { %v2315_v11 = vld [vmem:[%s2980_s11 + $0x20] sm:$0xff]  }
 0x66d   : > { %v1573_v16 = vcombine.low %v1545_v13, %v1552_v14  ;;  %v2092_v17 = vcombine.high %v1545_v13, %v1552_v14  ;;  %v1589_v18 = vcombine.low %v1561_v25, %v1568_v15  ;;  %v2093_v19 = vcombine.high %v1561_v25, %v1568_v15  ;;  %v2317_v13 = vld [vmem:[%s2980_s11 + $0x30] sm:$0xff]   ;;  %v2318_v14 = vld [vmem:[%s2980_s11 + $0x38] sm:$0xff]   ;;  %v2100_v25 = vld [vmem:[%s2979_s10] ss:$0 sm:$0xff] }
 0x66f   : > { %v1580_v27 = vrot.slane %v1573_v16, %v2628_v37  ;;  %v1588_v28 = vrot.slane %v2092_v17, %v2628_v37  ;;  %v1596_v29 = vrot.slane %v1589_v18, %v2628_v37  ;;  %v1604_v23 = vrot.slane %v2093_v19, %v2628_v37 }
 0x671   : > { %v1606_v24 = vcombine.high %v1580_v27, %v1588_v28  ;;  %v1622_v26 = vcombine.high %v1596_v29, %v1604_v23  ;;  %v1605_v30 = vcombine.low %v1580_v27, %v1588_v28  ;;  %v1621_v31 = vcombine.low %v1596_v29, %v1604_v23 }
 0x673   : > { %v1620_v32 = vrot.slane %v1606_v24, %v2638_v46  ;;  %v1636_v33 = vrot.slane %v1622_v26, %v2638_v46  ;;  %v1613_v34 = vrot.slane %v1605_v30, %v2638_v46  ;;  %v1629_v57 = vrot.slane %v1621_v31, %v2638_v46 }
 0x675   : > { %v1639_v36 = vcombine.low %v1620_v32, %v1636_v33  ;;  %v1638_v35 = vcombine.high %v1613_v34, %v1629_v57  ;;  %v1640_v38 = vcombine.high %v1620_v32, %v1636_v33  ;;  %v1637_v39 = vcombine.low %v1613_v34, %v1629_v57 }
 0x677   : > { %1646 = vrot.lane.b32.xlu1 %v1639_v36, %s2447_s25  ;;  %1642 = vrot.lane.b32.xlu0 %v1638_v35, %s2984_s27  ;;  %s2120_s27 = sshll.u32 %s2549_s17, 9 }
 0x67b   : > { %1650 = vrot.lane.b32.xlu0 %v1640_v38, %s2449_s28  ;;  %s2889_s28 = scalar_lea.hbm %s2983_s14, %s2120_s27 }
 0x6e9   : > { %v1643_v37 = vpop.permute.xlu0 %1642  ;;  %v1647_v40 = vpop.permute.xlu1 %1646 }
 0x6ea   : > { %v1653_v41 = vsel %vm1083_vm2, %v1637_v39, %v1643_v37 }
 0x6eb   : > { %v1655_v43 = vsel %vm1654_vm4, %v1653_v41, %v1647_v40 }
 0x6ed   : > { %v1651_v42 = vpop.permute.xlu0 %1650 }
 0x6ee   : > { %v1657_v46 = vsel %vm1656_vm5, %v1655_v43, %v1651_v42 }
 0x6ef   : > { %v1658_v44 = vpack.c.bf16 %v1657_v46, %v1657_v46 }
 0x6f1   : > { %2216 = vmatmul.mubr.msk.bf16.vlgmr.msra.gmra.mrb[12].mxu1 %vm478_vm0, %v1658_v44 }
 0x6f2   : > { %2243 = vmatprep.mubr.msk.bf16.mxu1 %vm2438_vm1, %v2437_v8  ;;  %2228 = vmatpush3.bf16.msra.mxu1 %v2311_v63 }
 0x6f3   : > { %2229 = vmatprep.subr.bf16.mxu1 %v2437_v8 }
 0x6f6   : > { %2230 = vmatpush3.bf16.msra.mxu1 %v2312_v7 }
 0x6f7   : > { %2231 = vmatprep.subr.bf16.mxu1 %v2437_v8 }
 0x6fa   : > { %2232 = vmatpush3.bf16.msra.mxu1 %v2313_v9 }
 0x6fb   : > { %2233 = vmatprep.subr.bf16.mxu1 %v2437_v8 }
 0x6fe   : > { %2234 = vmatpush3.bf16.msra.mxu1 %v2314_v10 }
 0x6ff   : > { %2235 = vmatprep.subr.bf16.mxu1 %v2437_v8 }
 0x702   : > { %2236 = vmatpush3.bf16.msra.mxu1 %v2315_v11 }
 0x703   : > { %2237 = vmatprep.subr.bf16.mxu1 %v2437_v8 }
 0x706   : > { %2238 = vmatpush3.bf16.msra.mxu1 %v2316_v12 }
 0x707   : > { %2239 = vmatprep.subr.bf16.mxu1 %v2437_v8 }
 0x70a   : > { %2240 = vmatpush3.bf16.msra.mxu1 %v2317_v13 }
 0x70b   : > { %2241 = vmatprep.subr.bf16.mxu1 %v2437_v8 }
 0x70e   : > { %2242 = vmatpush3.bf16.msra.mxu1 %v2318_v14 }
 0x7c4   : > { %v1719_v20 = vpop.f32.mrb[12].mxu1 }
 0x7c5   : > { %v1720_v47 = vadd.f32 %v2094_v45, %v1719_v20  ;;  %v2217_v48 = vpop.f32.mrb[13].mxu1 }
 0x7c6   : > { %v1722_v49 = vpop.f32.mrb[14].mxu1 }
 0x7c7   : > { %v2828_v53 = vadd.f32 %v1720_v47, %v2581_v0  ;;  %v2218_v55 = vpop.f32.mrb[15].mxu1  ;;  %v2310_v0 = vld [vmem:[%s2978_s9 + $0x8] sm:$0xff]  }
 0x7c8   : > { %2222 = vmatpush3.bf16.msra.mxu0 %v2310_v0 }
 0x7c9   : > { %v1728_v22 = vsel %vm478_vm0, %v2828_v53, 0.0 }
 0x7ca   : > { %1729 = vadd.xlane.f32.xlu1 %v1728_v22 }
 0x857   : > { %v1730_v56 = vpop.xlane.xlu1 %1729 }
 0x858   : > { %v1731_v58 = vmul.f32 0.03125, %v1730_v56 }
 0x85a   : > { %v1732_v59 = vsub.f32 %v2828_v53, %v1731_v58 }
 0x85c   : > { %v1733_v60 = vmul.f32 %v1732_v59, %v1732_v59 }
 0x85e   : > { %v1734_v61 = vsel %vm478_vm0, %v1733_v60, 0.0 }
 0x85f   : > { %1735 = vadd.xlane.f32.xlu0 %v1734_v61 }
 0x8ec   : > { %v1736_v1 = vpop.xlane.xlu0 %1735 }
 0x8ed   : > { %v1737_v2 = vmul.f32 0.03125, %v1736_v1 }
 0x8ef   : > { %v1738_v3 = vadd.f32 1e-05, %v1737_v2 }
 0x8f1   : > { %2337 = vrsqrt.f32 %v1738_v3 }
 0x8fb   : > { %v2338_v4 = vpop.eup %2337 }
 0x8fc   : > { %v1740_v6 = vmul.f32 %v2338_v4, %v1732_v59 }
 0x8fe   : > { %v1747_v52 = vmul.f32 %v2098_v5, %v1740_v6 }
 0x900   : > { %v1754_v51 = vadd.f32 %v2099_v50, %v1747_v52 }
 0x902   : > { %v1755_v54 = vpack.c.bf16 %v1754_v51, %v1754_v51 }
 0x904   : > { %2224 = vmatmul.mubr.msk.bf16.vlgmr.msra.gmra.mrb[24].mxu0 %vm478_vm0, %v1755_v54 }
 0x9d7   : > { %v1816_v15 = vpop.f32.mrb[24].mxu0 }
 0x9d8   : > { %v1817_v16 = vadd.f32 %v2100_v25, %v1816_v15  ;;  %v2225_v17 = vpop.f32.mrb[25].mxu0 }
 0x9d9   : > { %v1819_v18 = vpop.f32.mrb[26].mxu0 }
 0x9da   : > { %v1823_v19 = vmul.f32 0.044715, %v1817_v16  ;;  %v2226_v21 = vpop.f32.mrb[27].mxu0  ;;  %v1822_v24 = vmul.f32 0.5, %v1817_v16 }
 0x9dc   : > { %v1824_v27 = vmul.f32 %v1823_v19, %v1817_v16 }
 0x9de   : > { %v1825_v28 = vmul.f32 %v1824_v27, %v1817_v16 }
 0x9e0   : > { %v1826_v29 = vadd.f32 %v1825_v28, %v1817_v16 }
 0x9e2   : > { %v1827_v23 = vmul.f32 0.7978846, %v1826_v29 }
 0x9e4   : > { %2339 = vtanh.f32 %v1827_v23 }
 0x9ee   : > { %v2340_v8 = vpop.eup %2339 }
 0x9ef   : > { %v1829_v26 = vadd.f32 1.0, %v2340_v8 }
 0x9f1   : > { %v1830_v30 = vmul.f32 %v1829_v26, %v1822_v24 }
 0x9f3   : > { %v1831_v31 = vpack.c.bf16 %v1830_v30, %v1830_v30 }
 0x9f5   : > { %2244 = vmatmul.mubr.bf16.vlgmr.msra.gmra.mrb[16].mxu1 %v1831_v31 }
 0x9f6   : > { %2354 = shalt.err (!%p2351_p3)
}
 0x9f7   : > { %s2355_s27 = scalar_lea.hbm %s2889_s28, 512  ;;  %s2359_s20 = scalar_lea.hbm %s2983_s14, 1024 }
 0x9f8   : > { %p2356_p4 = scmp.ne.s32.totalorder %s2889_s28, %s2355_s27  ;;  %p2360_p9 = scmp.lt.u32.totalorder %s2889_s28, %s2983_s14 }
 0x9f9   : > { %p2361_p10 = scmp.lt.u32.totalorder %s2359_s20, %s2355_s27  ;;  %p2363_p12 = scmp.lt.u32.totalorder %s2355_s27, %s2889_s28 }
 0x9fa   : > { %p2357_p7 = pnand %p2356_p4, %p2566_p5 }
 0x9fb   : > { %p2362_p11 = por %p2361_p10, %p2360_p9 }
 0x9fc   : > { %p2358_p8 = pneg %p2357_p7 }
 0x9fd   : > { %p2364_p13 = por %p2363_p12, %p2362_p11 }
 0x9ff   : > { %p2365_p0 = pnand %p2364_p13, %p2358_p8 }
 0xa01   : > { %2368 = shalt.err (!%p2365_p0)
}
 0xa02   : > { %s2451_s18 = smov 128   ;;  %s3001_s26 = smov 8   ;;  %v2104_v32 = vld [vmem:[%s2981_s12] ss:$0 sm:$0xff] }
 0xa03   : > { %s3002_s4 = scalar_lea.sflag [#allocation5], %s2736_s21  ;;  %s2075_s2 = sshll.u32 %s2736_s21, 3 }
 0xa04   : > { %2248 = dma.vmem_to_hbm [thread:$0]  (%p2566_p5), %s2884_s0, 512, %s2889_s28, %s3002_s4, %s2451_s18, %s2451_s18, %s3001_s26  }
 0xa05   : > { %s2115_s27 = sshll.u32 %s2549_s17, 7  ;;  %s462_s20 = scalar_lea.vmem [#allocation2], %s2075_s2 }
 0xa06   : > { %s1964_s3 = sshll.u32 %s462_s20, 4  ;;  %s2925_s4 = scalar_lea.hbm %s2982_s13, %s2115_s27  ;;  %s2927_s3 = int_to_ptr.vmem [resolvable:$true] %s1964_s3 }
 0xa07   : > { %s1946_s17 = scalar_lea.sflag [#allocation3], %s2736_s21  ;;  %s2369_s0 = scalar_lea.vmem %s2927_s3, 128 }
 0xa08   : > { %p2370_p1 = scmp.ne.s32.totalorder %s2927_s3, %s2369_s0  ;;  %s2452_s28 = smov [#allocation2]  }
 0xa09   : > { %s2373_s18 = sshll.u32 %s2452_s28, 4  ;;  %s2374_s18 = int_to_ptr.vmem [resolvable:$false] %s2373_s18 }
 0xa0a   : > { %p2371_p2 = pnand %p2370_p1, %p2566_p5  ;;  %s2375_s26 = scalar_lea.vmem %s2374_s18, 256 }
 0xa0b   : > { %p2376_p4 = scmp.lt.s32.totalorder %s2927_s3, %s2374_s18  ;;  %p2377_p7 = scmp.lt.s32.totalorder %s2375_s26, %s2369_s0 }
 0xa0c   : > { %p2372_p3 = pneg %p2371_p2 }
 0xa0d   : > { %p2378_p8 = por %p2377_p7, %p2376_p4 }
 0xa0f   : > { %p2379_p9 = pnand %p2378_p8, %p2372_p3 }
 0xac8   : > { %v1937_v33 = vpop.f32.mrb[16].mxu1 }
 0xac9   : > { %v1938_v34 = vadd.f32 %v2104_v32, %v1937_v33  ;;  %v2245_v57 = vpop.f32.mrb[17].mxu1 }
 0xaca   : > { %v1940_v36 = vpop.f32.mrb[18].mxu1 }
 0xacb   : > { %v1943_v35 = vadd.f32 %v1938_v34, %v2828_v53  ;;  %v2246_v38 = vpop.f32.mrb[19].mxu1 }
 0xacd   : > { %1944 = vst.msk [vmem:[%s462_s20] sm:$0xff] %vm478_vm0, %v1943_v35 }
 0xace   : > { %2382 = shalt.err (!%p2379_p9)
}
 0xacf   : > { %s2383_s5 = scalar_lea.hbm %s2925_s4, 128  ;;  %s2387_s2 = scalar_lea.hbm %s2982_s13, 256 }
 0xad0   : > { %p2384_p10 = scmp.ne.s32.totalorder %s2925_s4, %s2383_s5  ;;  %p2388_p13 = scmp.lt.u32.totalorder %s2925_s4, %s2982_s13 }
 0xad1   : > { %p2389_p0 = scmp.lt.u32.totalorder %s2387_s2, %s2383_s5  ;;  %p2391_p2 = scmp.lt.u32.totalorder %s2383_s5, %s2925_s4 }
 0xad2   : > { %p2385_p11 = pnand %p2384_p10, %p2566_p5 }
 0xad3   : > { %p2390_p1 = por %p2389_p0, %p2388_p13 }
 0xad4   : > { %p2386_p12 = pneg %p2385_p11 }
 0xad5   : > { %p2392_p3 = por %p2391_p2, %p2390_p1 }
 0xad7   : > { %p2393_p4 = pnand %p2392_p3, %p2386_p12 }
 0xad9   : > { %2396 = shalt.err (!%p2393_p4)
}
 0xada   : > { %2247 = dma.vmem_to_hbm [thread:$0]  (%p2566_p5), %s2927_s3, 128, %s2925_s4, %s1946_s17  }
 0xadb PF: > { %p2258_p7 = scmp.ge.s32.totalorder %s2435_s16, 2  ;;  %s1992_s27 = sand.u32 1, %s2423_s29  }
 0xadc   : > { %s1993_s20 = scalar_lea.sflag [#allocation3], %s1992_s27 }
 0xadd   : > { %p2252_p8 = pnand %p2258_p7, %p2570_p6 }
 0xadf   : > { %2414 = dma.done.wait (!%p2252_p8), %s1993_s20, 128  }
 0xae0   : > { %2416 = vsyncadd (!%p2252_p8), %s1993_s20, 4294967168  ;;  %s2002_s0 = scalar_lea.sflag [#allocation5], %s1992_s27 }
 0xae1   : > { %2418 = dma.done.wait (!%p2252_p8), %s2002_s0, 512  }
 0xae2   : > { %2420 = vsyncadd (!%p2252_p8), %s2002_s0, 4294966784  ;;  %p28_p5 = scmp.ge.s32.totalorder %s2553_s19, 4   ;;  %s3003_s29 = smov %s2427_s30 }
 0xae3   : > { %s3004_s30 = smov %s2431_s15  ;;  %s3005_s15 = smov %s2564_s22 }
 0xae4   : > { %s3006_s16 = smov %s2553_s19  ;;  %30 = sbr.rel (!%p28_p5) target bundleno = 13 (0xd), region = 124 }
 0xaeb   :  { %2007 = vsyncpa [#allocation3], 1 }
 0xaec   :  { %2009 = vsyncpa [#allocation3 + $0x1], 1 }
 0xaed   :  { %2010 = vsyncpa [#allocation5], 1 }
 0xaee   :  { %2012 = vsyncpa [#allocation5 + $0x1], 1 }

// kernel: tpu_custom_call.1
= control target key start
LH: loop header
LB: loop body
LE: loop exit
PB: predicated region body
PF: predicated region fallthrough
CT: control target
= control target key end

     0   :  { %s2236_s0 = inlined_call_operand.vmem [shape: f32[2,8,32], index: 0, kind: input, shape index: {}]   ;;  %s2237_s1 = inlined_call_operand.vmem [shape: f32[1,32], index: 1, kind: input, shape index: {}]   ;;  %s2238_s2 = inlined_call_operand.vmem [shape: f32[1,32], index: 2, kind: input, shape index: {}]   ;;  %s2239_s3 = inlined_call_operand.vmem [shape: bf16[32,96], index: 3, kind: input, shape index: {}]   ;;  %s2240_s4 = inlined_call_operand.vmem [shape: f32[1,96], index: 4, kind: input, shape index: {}]   ;;  %s2241_s5 = inlined_call_operand.vmem [shape: bf16[32,32], index: 5, kind: input, shape index: {}]   ;;  %s2242_s6 = inlined_call_operand.vmem [shape: f32[1,32], index: 6, kind: input, shape index: {}]   ;;  %s2243_s7 = inlined_call_operand.vmem [shape: f32[1,32], index: 7, kind: input, shape index: {}]   ;;  %s2244_s8 = inlined_call_operand.vmem [shape: f32[1,32], index: 8, kind: input, shape index: {}]   ;;  %s2245_s9 = inlined_call_operand.vmem [shape: bf16[32,128], index: 9, kind: input, shape index: {}]   ;;  %s2246_s10 = inlined_call_operand.vmem [shape: f32[1,128], index: 10, kind: input, shape index: {}]   ;;  %s2247_s11 = inlined_call_operand.vmem [shape: bf16[128,32], index: 11, kind: input, shape index: {}]   ;;  %s2248_s12 = inlined_call_operand.vmem [shape: f32[1,32], index: 12, kind: input, shape index: {}]   ;;  %s2249_s13 = inlined_call_operand.hbm [shape: f32[2,8,32], index: 13, kind: output, shape index: {0}]   ;;  %s2250_s14 = inlined_call_operand.hbm [shape: f32[2,4,8,8], index: 14, kind: output, shape index: {1}]  }
   0x1   :  { %2252 = sst [smem:[#allocation8_spill]] %s2236_s0 }
   0x2   :  { %2253 = sst [smem:[#allocation9_spill]] %s2237_s1 }
   0x3   :  { %2254 = sst [smem:[#allocation10_spill]] %s2238_s2 }
   0x4   :  { %2255 = sst [smem:[#allocation11_spill]] %s2239_s3 }
   0x5   :  { %2256 = sst [smem:[#allocation12_spill]] %s2240_s4 }
   0x6   :  { %2257 = sst [smem:[#allocation13_spill]] %s2241_s5 }
   0x7   :  { %2258 = sst [smem:[#allocation14_spill]] %s2242_s6 }
   0x8   :  { %20 = vsyncpa [#allocation3], 0 }
   0x9   :  { %22 = vsyncpa [#allocation3 + $0x1], 0 }
   0xa   :  { %23 = vsyncpa [#allocation5], 0 }
   0xb   :  { %25 = vsyncpa [#allocation5 + $0x1], 0  ;;  %s1917_s29 = smov 0   ;;  %s1919_s30 = smov 0  }
   0xc   :  { %s1921_s15 = smov 0   ;;  %s1923_s16 = smov 0  }
   0xd LB: > { %s1938_s17 = sadd.s32 4294967295, %s1821_s16   ;;  %s1453_s18 = sadd.s32 4294967294, %s1821_s16   ;;  %s1821_s16 = sphi %s1923_s16, %s2273_s16   ;;  %s1817_s15 = sphi %s1921_s15, %s2272_s15   ;;  %s1813_s30 = sphi %s1919_s30, %s2271_s30   ;;  %s1809_s29 = sphi %s1917_s29, %s2270_s29  }
   0xe   : > { %s1942_s19 = sadd.s32 1, %s1821_s16   ;;  %s316_s20 = sadd.s32 1, %s1817_s15 }
   0xf   : > { %s313_s21 = ssub.s32 %s1821_s16, %s1942_s19  ;;  %p326_p0 = scmp.ne.s32.totalorder %s1817_s15, %s1813_s30 }
  0x10   : > { %p314_p1 = scmp.eq.s32.totalorder %s313_s21, 0  ;;  %p327_p2 = scmp.eq.s32.totalorder %s1938_s17, 1 }
  0x11   : > { %p332_p3 = scmp.ne.s32.totalorder %s1813_s30, %s1809_s29  ;;  %p333_p4 = scmp.eq.s32.totalorder %s1453_s18, 1 }
  0x12   : > { %s1953_s22 = scalar_select %p314_p1, %s1817_s15, %s316_s20  }
  0x13   : > { %p1955_p5 = por %p327_p2, %p326_p0  ;;  %p1959_p6 = por %p333_p4, %p332_p3 }
  0x14   : > { %p1456_p7 = scmp.ge.s32.totalorder %s1821_s16, 1  ;;  %p420_p8 = scmp.lt.s32.totalorder %s1821_s16, 3 }
  0x16   : > { %p421_p9 = pnand %p1456_p7, %p420_p8 }
  0x17   : > { %p470_p10 = scmp.lt.s32.totalorder (!%p421_p9), %s1938_s17, 1  ;;  %vm478_vm0 = vcmask (!%p421_p9), 261120   ;;  %s2261_s0 = sld [smem:[#allocation8_spill]] (!%p421_p9)  ;;  %v1823_v8 = vmov (!%p421_p9), 0.0   ;;  %vm1824_vm1 = vmmov (!%p421_p9), 0   ;;  %vm578_vm2 = vcmask (!%p421_p9), 64512  }
  0x18   : > { %424 = sbr.rel (%p421_p9) target bundleno = 2611 (0xa33), region = 72  ;;  %s2262_s3 = sld [smem:[#allocation11_spill]] (!%p421_p9)  ;;  %1538 = vmatprep.subr.bf16.mxu0 (!%p421_p9), %v1823_v8  ;;  %1542 = vmatprep.mubr.msk.bf16.mxu0 (!%p421_p9), %vm1824_vm1, %v1823_v8  ;;  %vm643_vm3 = vcmask (!%p421_p9), 1043456   ;;  %vm1036_vm4 = vcmask (!%p421_p9), 130048   ;;  %vm1038_vm5 = vcmask (!%p421_p9), 195584  }
  0x19   : > { %1558 = vmatprep.subr.bf16.mxu1 (!%p421_p9), %v1823_v8  ;;  %1560 = vmatprep.mubr.msk.bf16.mxu1 (!%p421_p9), %vm1824_vm1, %v1823_v8  ;;  %s2263_s1 = sld [smem:[#allocation9_spill]] (!%p421_p9)  ;;  %s2264_s2 = sld [smem:[#allocation10_spill]] (!%p421_p9) }
  0x1a   : > { %s2265_s4 = sld [smem:[#allocation12_spill]] (!%p421_p9)  ;;  %s1826_s27 = smov (!%p421_p9), 96  }
  0x1b   : > { %s1827_s28 = smov (!%p421_p9), 88   ;;  %s1829_s20 = smov (!%p421_p9), 112  }
  0x1c   : > { %s1830_s21 = smov (!%p421_p9), 72   ;;  %s2266_s5 = sld [smem:[#allocation13_spill]] (!%p421_p9) }
  0x1d   : > { %s2267_s6 = sld [smem:[#allocation14_spill]] (!%p421_p9) }
  0x1e   : > { %v1691_v7 = vld [vmem:[%s2262_s3] sm:$0xff] (!%p421_p9)   ;;  %v1692_v9 = vld [vmem:[%s2262_s3 + $0x8] sm:$0xff] (!%p421_p9)  }
  0x1f   : > { %s471_s25 = scalar_select %p470_p10, %s1938_s17, 1  ;;  %1539 = vmatpush3.bf16.msra.mxu0 %v1691_v7  ;;  %v1460_v14 = vld [vmem:[%s2263_s1] ss:$0 sm:$0xff] }
  0x20   : > { %1540 = vmatprep.subr.bf16.mxu0 %v1823_v8  ;;  %v1461_v16 = vld [vmem:[%s2264_s2] ss:$0 sm:$0xff] }
  0x21   : > { %s1459_s26 = sshll.u32 %s471_s25, 3  ;;  %v1462_v20 = vld [vmem:[%s2265_s4] ss:$0 sm:$0xff]  ;;  %s1831_s25 = smov 104  }
  0x22   : > { %s473_s18 = scalar_lea.vmem %s2261_s0, %s1459_s26  ;;  %s1825_s26 = smov 120  }
  0x23   : > { %v1970_v0 = vld [vmem:[%s473_s18] sm:$0xff]  ;;  %1541 = vmatpush3.bf16.msra.mxu0 %v1692_v9  ;;  %s1828_s18 = smov 80   ;;  %s1837_s0 = smov 16  }
  0x24   : > { %v479_v1 = vsel %vm478_vm0, %v1970_v0, 0.0  ;;  %1546 = vmatprep.subr.bf16.mxu0 %v1823_v8 }
  0x25   : > { %480 = vadd.xlane.f32.xlu0 %v479_v1 }
  0xb2   : > { %v481_v2 = vpop.xlane.xlu0 %480 }
  0xb3   : > { %v483_v3 = vmul.f32 0.03125, %v481_v2 }
  0xb5   : > { %v484_v4 = vsub.f32 %v1970_v0, %v483_v3 }
  0xb7   : > { %v485_v5 = vmul.f32 %v484_v4, %v484_v4 }
  0xb9   : > { %v486_v6 = vsel %vm478_vm0, %v485_v5, 0.0 }
  0xba   : > { %487 = vadd.xlane.f32.xlu0 %v486_v6 }
 0x147   : > { %v488_v10 = vpop.xlane.xlu0 %487 }
 0x148   : > { %v489_v11 = vmul.f32 0.03125, %v488_v10 }
 0x14a   : > { %v490_v12 = vadd.f32 1e-05, %v489_v11 }
 0x14c   : > { %1705 = vrsqrt.f32 %v490_v12 }
 0x156   : > { %v1706_v13 = vpop.eup %1705 }
 0x157   : > { %v492_v15 = vmul.f32 %v1706_v13, %v484_v4 }
 0x159   : > { %v499_v17 = vmul.f32 %v1460_v14, %v492_v15 }
 0x15b   : > { %v506_v18 = vadd.f32 %v1461_v16, %v499_v17 }
 0x15d   : > { %v507_v19 = vpack.c.bf16 %v506_v18, %v506_v18 }
 0x15f   : > { %1543 = vmatmul.mubr.msk.bf16.vlgmr.msra.gmra.mrb[0].mxu0 %vm478_vm0, %v507_v19 }
 0x160   : > { %1548 = vmatprep.mubr.msk.bf16.mxu0 %vm1824_vm1, %v1823_v8 }
 0x232   : > { %v568_v21 = vpop.f32.mrb[0].mxu0 }
 0x233   : > { %v569_v22 = vadd.f32 %v1462_v20, %v568_v21  ;;  %v1544_v23 = vpop.f32.mrb[1].mxu0 }
 0x234   : > { %v571_v24 = vpop.f32.mrb[2].mxu0 }
 0x235   : > { %v2002_v25 = vpack.c.bf16 %v569_v22, %v569_v22  ;;  %v1545_v26 = vpop.f32.mrb[3].mxu0 }
 0x237   : > { %687 = vrot.lane.b32.xlu0 %v2002_v25, %s1825_s26  ;;  %576 = vrot.lane.b32.xlu1 %v2002_v25, %s1826_s27  ;;  %s1832_s26 = smov 64   ;;  %s1833_s27 = smov 56  }
 0x23b   : > { %689 = vrot.lane.b32.xlu1 %v2002_v25, %s1827_s28  ;;  %s1834_s28 = smov 48  }
 0x23f   : > { %801 = vrot.lane.b32.xlu1 %v2002_v25, %s1828_s18  ;;  %s1835_s18 = smov 40  }
 0x243   : > { %799 = vrot.lane.b32.xlu1 %v2002_v25, %s1829_s20  ;;  %s2046_s20 = sand.u32 1, %s1813_s30  }
 0x247   : > { %913 = vrot.lane.b32.xlu1 %v2002_v25, %s1830_s21  ;;  %s1458_s21 = sshll.u32 %s2046_s20, 5 }
 0x24b   : > { %911 = vrot.lane.b32.xlu1 %v2002_v25, %s1831_s25  ;;  %s2050_s25 = scalar_lea.vmem [#allocation4], %s1458_s21  ;;  %s1839_s21 = smov [#allocation4]  }
 0x24c   : > { %s1731_s3 = sshll.u32 %s1839_s21, 4  ;;  %s1732_s3 = int_to_ptr.vmem [resolvable:$false] %s1731_s3 }
 0x2a9   : > { %v577_v27 = vpop.permute.xlu1 %576  ;;  %v688_v32 = vpop.permute.xlu0 %687 }
 0x2aa   : > { %v583_v28 = vsel %vm578_vm2, %v577_v27, 0 }
 0x2ab   : > { %1547 = vmatpush3.bf16.xpose.msra.mxu0 %v583_v28 }
 0x2ac   : > { %1552 = vmatprep.subr.bf16.mxu0 %v1823_v8 }
 0x2ad   : > { %v690_v29 = vpop.permute.xlu1 %689 }
 0x2ae   : > { %v695_v30 = vsel %vm578_vm2, %v690_v29, 0 }
 0x2af   : > { %1559 = vmatpush3.bf16.xpose.msra.mxu1 %v695_v30 }
 0x2b0   : > { %1570 = vmatprep.subr.bf16.mxu1 %v1823_v8 }
 0x2b1   : > { %v802_v31 = vpop.permute.xlu1 %801 }
 0x2b2   : > { %1549 = vmatmul.mubr.msk.bf16.vlgmr.msra.gmra.mrb[4].mxu0 %vm578_vm2, %v2002_v25  ;;  %v807_v34 = vsel %vm578_vm2, %v802_v31, 0 }
 0x2b3   : > { %1554 = vmatprep.mubr.msk.bf16.mxu0 %vm1824_vm1, %v1823_v8 }
 0x2b5   : > { %v800_v33 = vpop.permute.xlu1 %799 }
 0x2b6   : > { %1561 = vmatmul.mubr.msk.bf16.vlgmr.msra.gmra.mrb[0].mxu1 %vm578_vm2, %v688_v32 }
 0x2b7   : > { %1571 = vmatpush3.bf16.xpose.msra.mxu1 %v807_v34  ;;  %1572 = vmatprep.mubr.msk.bf16.mxu1 %vm1824_vm1, %v1823_v8 }
 0x2b8   : > { %1582 = vmatprep.subr.bf16.mxu1 %v1823_v8 }
 0x2b9   : > { %v914_v35 = vpop.permute.xlu1 %913 }
 0x2ba   : > { %v919_v36 = vsel %vm578_vm2, %v914_v35, 0 }
 0x2bd   : > { %v912_v37 = vpop.permute.xlu1 %911 }
 0x2be   : > { %1573 = vmatmul.mubr.msk.bf16.vlgmr.msra.gmra.mrb[4].mxu1 %vm578_vm2, %v800_v33 }
 0x2bf   : > { %1583 = vmatpush3.bf16.xpose.msra.mxu1 %v919_v36  ;;  %1584 = vmatprep.mubr.msk.bf16.mxu1 %vm1824_vm1, %v1823_v8 }
 0x2c0   : > { %1594 = vmatprep.subr.bf16.mxu1 %v1823_v8 }
 0x2c6   : > { %1585 = vmatmul.mubr.msk.bf16.vlgmr.msra.gmra.mrb[8].mxu1 %vm578_vm2, %v912_v37 }
 0x2c7   : > { %1598 = vmatprep.mubr.msk.bf16.mxu1 %vm1824_vm1, %v1823_v8 }
 0x385   : > { %v619_v38 = vpop.f32.mrb[4].mxu0 }
 0x386   : > { %v1550_v39 = vpop.f32.mrb[5].mxu0  ;;  %v625_v40 = vsel %vm578_vm2, %v619_v38, -inf }
 0x387   : > { %626 = vmax.xlane.f32.xlu1 %v625_v40  ;;  %v622_v41 = vpop.f32.mrb[6].mxu0 }
 0x388   : > { %v1551_v42 = vpop.f32.mrb[7].mxu0 }
 0x389   : > { %v731_v43 = vpop.f32.mrb[0].mxu1 }
 0x38a   : > { %v1562_v44 = vpop.f32.mrb[1].mxu1  ;;  %v737_v45 = vsel %vm578_vm2, %v731_v43, -inf }
 0x38b   : > { %738 = vmax.xlane.f32.xlu0 %v737_v45  ;;  %v734_v46 = vpop.f32.mrb[2].mxu1 }
 0x38c   : > { %v1563_v47 = vpop.f32.mrb[3].mxu1 }
 0x391   : > { %v843_v48 = vpop.f32.mrb[4].mxu1 }
 0x392   : > { %v1574_v49 = vpop.f32.mrb[5].mxu1  ;;  %v849_v50 = vsel %vm578_vm2, %v843_v48, -inf }
 0x393   : > { %v846_v51 = vpop.f32.mrb[6].mxu1  ;;  %850 = vmax.xlane.f32.xlu1 %v849_v50  ;;  %v1694_v49 = vld [vmem:[%s2266_s5 + $0x8] sm:$0xff]  }
 0x394   : > { %v1575_v52 = vpop.f32.mrb[7].mxu1 }
 0x399   : > { %v955_v53 = vpop.f32.mrb[8].mxu1 }
 0x39a   : > { %v1586_v54 = vpop.f32.mrb[9].mxu1  ;;  %v961_v55 = vsel %vm578_vm2, %v955_v53, -inf }
 0x39b   : > { %962 = vmax.xlane.f32.xlu0 %v961_v55  ;;  %v958_v56 = vpop.f32.mrb[10].mxu1 }
 0x39c   : > { %v1587_v57 = vpop.f32.mrb[11].mxu1 }
 0x414   : > { %v627_v58 = vpop.xlane.xlu1 %626 }
 0x415   : > { %v628_v59 = vsub.f32 %v619_v38, %v627_v58 }
 0x417   : > { %v629_v60 = vmul.f32 1.442695, %v628_v59 }
 0x418   : > { %v739_v61 = vpop.xlane.xlu0 %738 }
 0x419   : > { %1707 = vpow2.f32 %v629_v60  ;;  %v740_v62 = vsub.f32 %v731_v43, %v739_v61 }
 0x41b   : > { %v741_v63 = vmul.f32 1.442695, %v740_v62 }
 0x41d   : > { %1709 = vpow2.f32 %v741_v63 }
 0x420   : > { %v851_v11 = vpop.xlane.xlu1 %850 }
 0x421   : > { %v852_v12 = vsub.f32 %v843_v48, %v851_v11  ;;  %v1693_v48 = vld [vmem:[%s2266_s5] sm:$0xff]  }
 0x422   : > { %1595 = vmatpush3.bf16.msra.mxu1 %v1693_v48 }
 0x423   : > { %v1708_v1 = vpop.eup %1707  ;;  %v853_v13 = vmul.f32 1.442695, %v852_v12  ;;  %1596 = vmatprep.subr.bf16.mxu1 %v1823_v8 }
 0x424   : > { %v631_v2 = vsel %vm578_vm2, %v1708_v1, 0.0 }
 0x425   : > { %632 = vadd.xlane.f32.xlu1 %v631_v2  ;;  %v1477_v2 = vld [vmem:[%s2267_s6] ss:$0 sm:$0xff] }
 0x426   : > { %1597 = vmatpush3.bf16.msra.mxu1 %v1694_v49 }
 0x427   : > { %v1710_v3 = vpop.eup %1709  ;;  %1610 = vmatprep.subr.bf16.mxu1 %v1823_v8 }
 0x428   : > { %v963_v4 = vpop.xlane.xlu0 %962  ;;  %v743_v5 = vsel %vm578_vm2, %v1710_v3, 0.0 }
 0x429   : > { %v964_v6 = vsub.f32 %v955_v53, %v963_v4  ;;  %744 = vadd.xlane.f32.xlu0 %v743_v5 }
 0x42b   : > { %v965_v7 = vmul.f32 1.442695, %v964_v6 }
 0x42d   : > { %1711 = vpow2.f32 %v965_v7 }
 0x42e   : > { %1713 = vpow2.f32 %v853_v13 }
 0x436   : > { %638 = vrot.lane.b32.xlu1 %v2002_v25, %s1832_s26  ;;  %s2251_s26 = smov 8  }
 0x437   : > { %v1712_v9 = vpop.eup %1711 }
 0x438   : > { %v967_v10 = vsel %vm578_vm2, %v1712_v9, 0.0  ;;  %v1714_v14 = vpop.eup %1713 }
 0x439   : > { %968 = vadd.xlane.f32.xlu0 %v967_v10  ;;  %v855_v15 = vsel %vm578_vm2, %v1714_v14, 0.0 }
 0x44f   : > { %751 = vrot.lane.b32.xlu0 %v2002_v25, %s1833_s27 }
 0x45a   : > { %856 = vadd.xlane.f32.xlu1 %v855_v15 }
 0x46b   : > { %863 = vrot.lane.b32.xlu1 %v2002_v25, %s1834_s28 }
 0x46f   : > { %975 = vrot.lane.b32.xlu1 %v2002_v25, %s1835_s18 }
 0x4b2   : > { %v633_v16 = vpop.xlane.xlu1 %632 }
 0x4b3   : > { %1715 = vrcp.f32 %v633_v16  ;;  %v1695_v16 = vld [vmem:[%s2245_s9] sm:$0xff]  }
 0x4b6   : > { %v745_v17 = vpop.xlane.xlu0 %744  ;;  %v639_v18 = vpop.permute.xlu1 %638 }
 0x4b7   : > { %1717 = vrcp.f32 %v745_v17  ;;  %v645_v19 = vsel %vm643_vm3, %v639_v18, 0  ;;  %v1697_v17 = vld [vmem:[%s2247_s11] sm:$0xff]  }
 0x4b8   : > { %1553 = vmatpush3.bf16.msra.mxu0 %v645_v19 }
 0x4b9   : > { %1564 = vmatprep.subr.bf16.mxu0 %v1823_v8 }
 0x4bd   : > { %v1716_v20 = vpop.eup %1715 }
 0x4be   : > { %v635_v21 = vmul.f32 %v1716_v20, %v1708_v1 }
 0x4c0   : > { %v637_v22 = vpack.c.bf16 %v635_v21, %v635_v21  ;;  %636 = vst.msk [vmem:[%s2050_s25] sm:$0xff] %vm578_vm2, %v635_v21 }
 0x4c1   : > { %v1718_v23 = vpop.eup %1717 }
 0x4c2   : > { %v747_v24 = vmul.f32 %v1718_v23, %v1710_v3  ;;  %1555 = vmatmul.mubr.msk.bf16.vlgmr.msra.gmra.mrb[8].mxu0 %vm578_vm2, %v637_v22  ;;  %v1481_v22 = vld [vmem:[%s2243_s7] ss:$0 sm:$0xff] }
 0x4c3   : > { %1566 = vmatprep.mubr.msk.bf16.mxu0 %vm1824_vm1, %v1823_v8 }
 0x4c4   : > { %1469 = vst.msk [vmem:[%s2050_s25 + $0x8] sm:$0xff] %vm578_vm2, %v747_v24  ;;  %v750_v28 = vpack.c.bf16 %v747_v24, %v747_v24  ;;  %v1482_v24 = vld [vmem:[%s2244_s8] ss:$0 sm:$0xff] }
 0x4c6   : > { %v969_v25 = vpop.xlane.xlu0 %968 }
 0x4c7   : > { %1719 = vrcp.f32 %v969_v25 }
 0x4ca   : > { %v752_v26 = vpop.permute.xlu0 %751 }
 0x4cb   : > { %v757_v27 = vsel %vm643_vm3, %v752_v26, 0 }
 0x4cc   : > { %1565 = vmatpush3.bf16.msra.mxu0 %v757_v27 }
 0x4cd   : > { %1576 = vmatprep.subr.bf16.mxu0 %v1823_v8 }
 0x4cf   : > { %1567 = vmatmul.mubr.msk.bf16.vlgmr.msra.gmra.mrb[12].mxu0 %vm578_vm2, %v750_v28  ;;  %v1698_v28 = vld [vmem:[%s2247_s11 + $0x8] sm:$0xff]  }
 0x4d0   : > { %1578 = vmatprep.mubr.msk.bf16.mxu0 %vm1824_vm1, %v1823_v8 }
 0x4d1   : > { %v1720_v29 = vpop.eup %1719 }
 0x4d2   : > { %v971_v30 = vmul.f32 %v1720_v29, %v1712_v9  ;;  %v1699_v29 = vld [vmem:[%s2247_s11 + $0x10] sm:$0xff]  }
 0x4d4   : > { %1475 = vst.msk [vmem:[%s2050_s25 + $0x18] sm:$0xff] %vm578_vm2, %v971_v30  ;;  %v974_v39 = vpack.c.bf16 %v971_v30, %v971_v30  ;;  %v1700_v30 = vld [vmem:[%s2247_s11 + $0x18] sm:$0xff]  }
 0x4e7   : > { %v857_v31 = vpop.xlane.xlu1 %856 }
 0x4e8   : > { %1721 = vrcp.f32 %v857_v31  ;;  %v1701_v31 = vld [vmem:[%s2247_s11 + $0x20] sm:$0xff]  }
 0x4eb   : > { %v864_v32 = vpop.permute.xlu1 %863 }
 0x4ec   : > { %v869_v33 = vsel %vm643_vm3, %v864_v32, 0  ;;  %v1702_v32 = vld [vmem:[%s2247_s11 + $0x28] sm:$0xff]  }
 0x4ed   : > { %1577 = vmatpush3.bf16.msra.mxu0 %v869_v33  ;;  %v1703_v33 = vld [vmem:[%s2247_s11 + $0x30] sm:$0xff]  }
 0x4ee   : > { %1588 = vmatprep.subr.bf16.mxu0 %v1823_v8 }
 0x4ef   : > { %v976_v36 = vpop.permute.xlu1 %975 }
 0x4f0   : > { %v981_v38 = vsel %vm643_vm3, %v976_v36, 0 }
 0x4f2   : > { %v1722_v34 = vpop.eup %1721 }
 0x4f3   : > { %v859_v35 = vmul.f32 %v1722_v34, %v1714_v14  ;;  %v1704_v34 = vld [vmem:[%s2247_s11 + $0x38] sm:$0xff]  }
 0x4f5   : > { %v862_v37 = vpack.c.bf16 %v859_v35, %v859_v35  ;;  %1472 = vst.msk [vmem:[%s2050_s25 + $0x10] sm:$0xff] %vm578_vm2, %v859_v35  ;;  %v1483_v35 = vld [vmem:[%s2246_s10] ss:$0 sm:$0xff] }
 0x4f7   : > { %1579 = vmatmul.mubr.msk.bf16.vlgmr.msra.gmra.mrb[16].mxu0 %vm578_vm2, %v862_v37 }
 0x4f8   : > { %1589 = vmatpush3.bf16.msra.mxu0 %v981_v38  ;;  %1590 = vmatprep.mubr.msk.bf16.mxu0 %vm1824_vm1, %v1823_v8 }
 0x4f9   : > { %1602 = vmatprep.subr.bf16.mxu0 %v1823_v8 }
 0x4ff   : > { %1591 = vmatmul.mubr.msk.bf16.vlgmr.msra.gmra.mrb[20].mxu0 %vm578_vm2, %v974_v39 }
 0x500   : > { %1606 = vmatprep.mubr.msk.bf16.mxu0 %vm1824_vm1, %v1823_v8  ;;  %1603 = vmatpush3.bf16.msra.mxu0 %v1695_v16 }
 0x501   : > { %1604 = vmatprep.subr.bf16.mxu0 %v1823_v8 }
 0x595   : > { %v681_v40 = vpop.f32.mrb[8].mxu0 }
 0x596   : > { %v1556_v41 = vpop.f32.mrb[9].mxu0 }
 0x597   : > { %v684_v42 = vpop.f32.mrb[10].mxu0 }
 0x598   : > { %v1557_v43 = vpop.f32.mrb[11].mxu0 }
 0x5a2   : > { %v793_v44 = vpop.f32.mrb[12].mxu0 }
 0x5a3   : > { %1024 = vrot.lane.b32.xlu0 %v793_v44, %s2251_s26  ;;  %v1568_v45 = vpop.f32.mrb[13].mxu0  ;;  %s1838_s26 = smov 24  }
 0x5a4   : > { %v796_v46 = vpop.f32.mrb[14].mxu0 }
 0x5a5   : > { %v1569_v47 = vpop.f32.mrb[15].mxu0 }
 0x5ca   : > { %v905_v50 = vpop.f32.mrb[16].mxu0 }
 0x5cb   : > { %1028 = vrot.lane.b32.xlu1 %v905_v50, %s1837_s0  ;;  %v1580_v51 = vpop.f32.mrb[17].mxu0  ;;  %s1359_s0 = sshll.u32 %s2050_s25, 4  ;;  %s1733_s25 = scalar_lea.vmem %s1732_s3, 1024  ;;  %s2151_s0 = int_to_ptr.vmem [resolvable:$true] %s1359_s0 }
 0x5cc   : > { %v908_v52 = vpop.f32.mrb[18].mxu0  ;;  %s1727_s18 = scalar_lea.vmem %s2151_s0, 512  ;;  %p1734_p0 = scmp.lt.s32.totalorder %s2151_s0, %s1732_s3 }
 0x5cd   : > { %v1581_v53 = vpop.f32.mrb[19].mxu0  ;;  %p1728_p11 = scmp.ne.s32.totalorder %s2151_s0, %s1727_s18  ;;  %p1735_p1 = scmp.lt.s32.totalorder %s1733_s25, %s1727_s18 }
 0x5cf   : > { %p1729_p12 = pnand %p1728_p11, %p1955_p5  ;;  %p1736_p2 = por %p1735_p1, %p1734_p0 }
 0x5d1   : > { %p1730_p13 = pneg %p1729_p12 }
 0x5d2   : > { %v1017_v54 = vpop.f32.mrb[20].mxu0 }
 0x5d3   : > { %1032 = vrot.lane.b32.xlu0 %v1017_v54, %s1838_s26  ;;  %v1592_v55 = vpop.f32.mrb[21].mxu0  ;;  %s1503_s26 = sshll.u32 %s1938_s17, 9  ;;  %p1737_p3 = pnand %p1736_p2, %p1730_p13 }
 0x5d4   : > { %v1020_v56 = vpop.f32.mrb[22].mxu0  ;;  %s2156_s28 = scalar_lea.hbm %s2250_s14, %s1503_s26 }
 0x5d5   : > { %v1593_v57 = vpop.f32.mrb[23].mxu0 }
 0x615   : > { %v1025_v58 = vpop.permute.xlu0 %1024 }
 0x616   : > { %v1035_v60 = vsel %vm578_vm2, %v681_v40, %v1025_v58 }
 0x63d   : > { %v1029_v59 = vpop.permute.xlu1 %1028 }
 0x63e   : > { %v1037_v61 = vsel %vm1036_vm4, %v1035_v60, %v1029_v59 }
 0x645   : > { %v1033_v62 = vpop.permute.xlu0 %1032 }
 0x646   : > { %v1039_v63 = vsel %vm1038_vm5, %v1037_v61, %v1033_v62 }
 0x647   : > { %v1040_v1 = vpack.c.bf16 %v1039_v63, %v1039_v63 }
 0x649   : > { %1599 = vmatmul.mubr.msk.bf16.vlgmr.msra.gmra.mrb[12].mxu1 %vm478_vm0, %v1040_v1 }
 0x64a   : > { %1626 = vmatprep.mubr.msk.bf16.mxu1 %vm1824_vm1, %v1823_v8  ;;  %1611 = vmatpush3.bf16.msra.mxu1 %v1697_v17 }
 0x64b   : > { %1612 = vmatprep.subr.bf16.mxu1 %v1823_v8 }
 0x64e   : > { %1613 = vmatpush3.bf16.msra.mxu1 %v1698_v28 }
 0x64f   : > { %1614 = vmatprep.subr.bf16.mxu1 %v1823_v8 }
 0x652   : > { %1615 = vmatpush3.bf16.msra.mxu1 %v1699_v29 }
 0x653   : > { %1616 = vmatprep.subr.bf16.mxu1 %v1823_v8 }
 0x656   : > { %1617 = vmatpush3.bf16.msra.mxu1 %v1700_v30 }
 0x657   : > { %1618 = vmatprep.subr.bf16.mxu1 %v1823_v8 }
 0x65a   : > { %1619 = vmatpush3.bf16.msra.mxu1 %v1701_v31 }
 0x65b   : > { %1620 = vmatprep.subr.bf16.mxu1 %v1823_v8 }
 0x65e   : > { %1621 = vmatpush3.bf16.msra.mxu1 %v1702_v32 }
 0x65f   : > { %1622 = vmatprep.subr.bf16.mxu1 %v1823_v8 }
 0x662   : > { %1623 = vmatpush3.bf16.msra.mxu1 %v1703_v33 }
 0x663   : > { %1624 = vmatprep.subr.bf16.mxu1 %v1823_v8 }
 0x666   : > { %1625 = vmatpush3.bf16.msra.mxu1 %v1704_v34 }
 0x71c   : > { %v1101_v3 = vpop.f32.mrb[12].mxu1 }
 0x71d   : > { %v1102_v4 = vadd.f32 %v1477_v2, %v1101_v3  ;;  %v1600_v5 = vpop.f32.mrb[13].mxu1 }
 0x71e   : > { %v1104_v6 = vpop.f32.mrb[14].mxu1 }
 0x71f   : > { %v2095_v7 = vadd.f32 %v1102_v4, %v1970_v0  ;;  %v1601_v9 = vpop.f32.mrb[15].mxu1  ;;  %v1696_v0 = vld [vmem:[%s2245_s9 + $0x8] sm:$0xff]  }
 0x720   : > { %1605 = vmatpush3.bf16.msra.mxu0 %v1696_v0 }
 0x721   : > { %v1110_v10 = vsel %vm478_vm0, %v2095_v7, 0.0 }
 0x722   : > { %1111 = vadd.xlane.f32.xlu1 %v1110_v10 }
 0x7af   : > { %v1112_v11 = vpop.xlane.xlu1 %1111 }
 0x7b0   : > { %v1113_v12 = vmul.f32 0.03125, %v1112_v11 }
 0x7b2   : > { %v1114_v13 = vsub.f32 %v2095_v7, %v1113_v12 }
 0x7b4   : > { %v1115_v14 = vmul.f32 %v1114_v13, %v1114_v13 }
 0x7b6   : > { %v1116_v15 = vsel %vm478_vm0, %v1115_v14, 0.0 }
 0x7b7   : > { %1117 = vadd.xlane.f32.xlu0 %v1116_v15 }
 0x844   : > { %v1118_v18 = vpop.xlane.xlu0 %1117 }
 0x845   : > { %v1119_v19 = vmul.f32 0.03125, %v1118_v18 }
 0x847   : > { %v1120_v20 = vadd.f32 1e-05, %v1119_v19 }
 0x849   : > { %1723 = vrsqrt.f32 %v1120_v20 }
 0x853   : > { %v1724_v21 = vpop.eup %1723 }
 0x854   : > { %v1122_v23 = vmul.f32 %v1724_v21, %v1114_v13 }
 0x856   : > { %v1129_v25 = vmul.f32 %v1481_v22, %v1122_v23 }
 0x858   : > { %v1136_v26 = vadd.f32 %v1482_v24, %v1129_v25 }
 0x85a   : > { %v1137_v27 = vpack.c.bf16 %v1136_v26, %v1136_v26 }
 0x85c   : > { %1607 = vmatmul.mubr.msk.bf16.vlgmr.msra.gmra.mrb[24].mxu0 %vm478_vm0, %v1137_v27 }
 0x92f   : > { %v1198_v36 = vpop.f32.mrb[24].mxu0 }
 0x930   : > { %v1199_v37 = vadd.f32 %v1483_v35, %v1198_v36  ;;  %v1608_v38 = vpop.f32.mrb[25].mxu0 }
 0x931   : > { %v1201_v39 = vpop.f32.mrb[26].mxu0 }
 0x932   : > { %v1205_v40 = vmul.f32 0.044715, %v1199_v37  ;;  %v1609_v41 = vpop.f32.mrb[27].mxu0  ;;  %v1204_v46 = vmul.f32 0.5, %v1199_v37 }
 0x934   : > { %v1206_v42 = vmul.f32 %v1205_v40, %v1199_v37 }
 0x936   : > { %v1207_v43 = vmul.f32 %v1206_v42, %v1199_v37 }
 0x938   : > { %v1208_v44 = vadd.f32 %v1207_v43, %v1199_v37 }
 0x93a   : > { %v1209_v45 = vmul.f32 0.7978846, %v1208_v44 }
 0x93c   : > { %1725 = vtanh.f32 %v1209_v45 }
 0x946   : > { %v1726_v8 = vpop.eup %1725 }
 0x947   : > { %v1211_v47 = vadd.f32 1.0, %v1726_v8 }
 0x949   : > { %v1212_v48 = vmul.f32 %v1211_v47, %v1204_v46 }
 0x94b   : > { %v1213_v49 = vpack.c.bf16 %v1212_v48, %v1212_v48 }
 0x94d   : > { %1627 = vmatmul.mubr.bf16.vlgmr.msra.gmra.mrb[16].mxu1 %v1213_v49 }
 0x94e   : > { %1740 = shalt.err (!%p1737_p3)
}
 0x94f   : > { %s1741_s26 = scalar_lea.hbm %s2156_s28, 512  ;;  %s1745_s21 = scalar_lea.hbm %s2250_s14, 1024 }
 0x950   : > { %p1742_p4 = scmp.ne.s32.totalorder %s2156_s28, %s1741_s26  ;;  %p1746_p9 = scmp.lt.u32.totalorder %s2156_s28, %s2250_s14 }
 0x951   : > { %p1747_p10 = scmp.lt.u32.totalorder %s1745_s21, %s1741_s26  ;;  %p1749_p12 = scmp.lt.u32.totalorder %s1741_s26, %s2156_s28 }
 0x952   : > { %p1743_p7 = pnand %p1742_p4, %p1955_p5 }
 0x953   : > { %p1748_p11 = por %p1747_p10, %p1746_p9 }
 0x954   : > { %p1744_p8 = pneg %p1743_p7 }
 0x955   : > { %p1750_p13 = por %p1749_p12, %p1748_p11 }
 0x957   : > { %p1751_p0 = pnand %p1750_p13, %p1744_p8 }
 0x959   : > { %1754 = shalt.err (!%p1751_p0)
}
 0x95a   : > { %s1840_s18 = smov 128   ;;  %s2268_s25 = smov 8   ;;  %v1487_v50 = vld [vmem:[%s2248_s12] ss:$0 sm:$0xff] }
 0x95b   : > { %s2269_s4 = scalar_lea.sflag [#allocation5], %s2046_s20  ;;  %s1457_s2 = sshll.u32 %s2046_s20, 3 }
 0x95c   : > { %1631 = dma.vmem_to_hbm [thread:$0]  (%p1955_p5), %s2151_s0, 512, %s2156_s28, %s2269_s4, %s1840_s18, %s1840_s18, %s2268_s25  }
 0x95d   : > { %s1498_s26 = sshll.u32 %s1938_s17, 7  ;;  %s462_s21 = scalar_lea.vmem [#allocation2], %s1457_s2 }
 0x95e   : > { %s1346_s3 = sshll.u32 %s462_s21, 4  ;;  %s2192_s4 = scalar_lea.hbm %s2249_s13, %s1498_s26  ;;  %s2194_s3 = int_to_ptr.vmem [resolvable:$true] %s1346_s3 }
 0x95f   : > { %s1328_s17 = scalar_lea.sflag [#allocation3], %s2046_s20  ;;  %s1755_s0 = scalar_lea.vmem %s2194_s3, 128 }
 0x960   : > { %p1756_p1 = scmp.ne.s32.totalorder %s2194_s3, %s1755_s0  ;;  %s1841_s28 = smov [#allocation2]  }
 0x961   : > { %s1759_s18 = sshll.u32 %s1841_s28, 4  ;;  %s1760_s18 = int_to_ptr.vmem [resolvable:$false] %s1759_s18 }
 0x962   : > { %p1757_p2 = pnand %p1756_p1, %p1955_p5  ;;  %s1761_s25 = scalar_lea.vmem %s1760_s18, 256 }
 0x963   : > { %p1762_p4 = scmp.lt.s32.totalorder %s2194_s3, %s1760_s18  ;;  %p1763_p7 = scmp.lt.s32.totalorder %s1761_s25, %s1755_s0 }
 0x964   : > { %p1758_p3 = pneg %p1757_p2 }
 0x965   : > { %p1764_p8 = por %p1763_p7, %p1762_p4 }
 0x967   : > { %p1765_p9 = pnand %p1764_p8, %p1758_p3 }
 0xa20   : > { %v1319_v51 = vpop.f32.mrb[16].mxu1 }
 0xa21   : > { %v1320_v52 = vadd.f32 %v1487_v50, %v1319_v51  ;;  %v1628_v53 = vpop.f32.mrb[17].mxu1 }
 0xa22   : > { %v1322_v54 = vpop.f32.mrb[18].mxu1 }
 0xa23   : > { %v1325_v55 = vadd.f32 %v1320_v52, %v2095_v7  ;;  %v1629_v56 = vpop.f32.mrb[19].mxu1 }
 0xa25   : > { %1326 = vst.msk [vmem:[%s462_s21] sm:$0xff] %vm478_vm0, %v1325_v55 }
 0xa26   : > { %1768 = shalt.err (!%p1765_p9)
}
 0xa27   : > { %s1769_s5 = scalar_lea.hbm %s2192_s4, 128  ;;  %s1773_s2 = scalar_lea.hbm %s2249_s13, 256 }
 0xa28   : > { %p1770_p10 = scmp.ne.s32.totalorder %s2192_s4, %s1769_s5  ;;  %p1774_p13 = scmp.lt.u32.totalorder %s2192_s4, %s2249_s13 }
 0xa29   : > { %p1775_p0 = scmp.lt.u32.totalorder %s1773_s2, %s1769_s5  ;;  %p1777_p2 = scmp.lt.u32.totalorder %s1769_s5, %s2192_s4 }
 0xa2a   : > { %p1771_p11 = pnand %p1770_p10, %p1955_p5 }
 0xa2b   : > { %p1776_p1 = por %p1775_p0, %p1774_p13 }
 0xa2c   : > { %p1772_p12 = pneg %p1771_p11 }
 0xa2d   : > { %p1778_p3 = por %p1777_p2, %p1776_p1 }
 0xa2f   : > { %p1779_p4 = pnand %p1778_p3, %p1772_p12 }
 0xa31   : > { %1782 = shalt.err (!%p1779_p4)
}
 0xa32   : > { %1630 = dma.vmem_to_hbm [thread:$0]  (%p1955_p5), %s2194_s3, 128, %s2192_s4, %s1328_s17  }
 0xa33 PF: > { %p1641_p7 = scmp.ge.s32.totalorder %s1821_s16, 2  ;;  %s1374_s26 = sand.u32 1, %s1809_s29  }
 0xa34   : > { %s1375_s21 = scalar_lea.sflag [#allocation3], %s1374_s26 }
 0xa35   : > { %p1635_p8 = pnand %p1641_p7, %p1959_p6 }
 0xa37   : > { %1800 = dma.done.wait (!%p1635_p8), %s1375_s21, 128  }
 0xa38   : > { %1802 = vsyncadd (!%p1635_p8), %s1375_s21, 4294967168  ;;  %s1384_s0 = scalar_lea.sflag [#allocation5], %s1374_s26 }
 0xa39   : > { %1804 = dma.done.wait (!%p1635_p8), %s1384_s0, 512  }
 0xa3a   : > { %1806 = vsyncadd (!%p1635_p8), %s1384_s0, 4294966784  ;;  %p28_p5 = scmp.ge.s32.totalorder %s1942_s19, 4   ;;  %s2270_s29 = smov %s1813_s30 }
 0xa3b   : > { %s2271_s30 = smov %s1817_s15  ;;  %s2272_s15 = smov %s1953_s22 }
 0xa3c   : > { %s2273_s16 = smov %s1942_s19  ;;  %30 = sbr.rel (!%p28_p5) target bundleno = 13 (0xd), region = 127 }
 0xa43   :  { %1389 = vsyncpa [#allocation3], 1 }
 0xa44   :  { %1391 = vsyncpa [#allocation3 + $0x1], 1 }
 0xa45   :  { %1392 = vsyncpa [#allocation5], 1 }
 0xa46   :  { %1394 = vsyncpa [#allocation5 + $0x1], 1 }

</bundles_post_ra>
